<compile_context>
chip_gen: v7x
topology: tpu7x:2x2x1
jax: 0.10.0
libtpu: 0.0.40
codegen_flags: <defaults>
</compile_context>

<pallas_src>
import jax
import jax.numpy as jnp
import numpy as np
from jax.experimental import pallas as pl
from jax.experimental.pallas import tpu as pltpu

D = 8
W = 256
INPUT_CH = 5
INPUT_CH_VIEWS = 0
OUTPUT_CH = 2
SKIPS = (4,)

INPUT_CH_PAD = 8            # sublane-aligned LHS width for layer 0 / skip layer
OUT_PAD = 128               # lane-dense output block; wrapper slices to OUTPUT_CH
OUT_DTYPE = jnp.bfloat16    # halves padded writeback; use jnp.float32 if needed
TILE_N_CAP = 2048           # max rays per grid step (tunable)


def _nerf_kernel(x_ref, w05_ref, w_all_ref, b_all_ref, wo_ref, bo_ref, out_ref):
    """Full NeRF MLP chain for one tile of rays, entirely in VMEM."""
    pts = x_ref[...]                                   # f32 (tile, 8)

    def bias_relu(y_f32, b):
        # bf16 bias (v6e/v7x): cast accumulator first, add/max with 2x packing.
        # f32 bias (v5e): add/max in f32, then cast.
        if b.dtype == jnp.bfloat16:
            v = y_f32.astype(jnp.bfloat16) + b
        else:
            v = y_f32 + b
        return jnp.maximum(v, 0).astype(jnp.bfloat16)

    # Layer 0 + skip-layer pts contribution: one merged K=8 f32 matmul.
    z = jnp.dot(pts, w05_ref[...], preferred_element_type=jnp.float32)  # (tile, 512)
    h = bias_relu(z[:, :W], b_all_ref[0])
    skip_pre = z[:, W:]                                # f32 (tile, W), used at layer 5

    # Layers 1..4: W -> W (bf16 MXU, f32 accumulate).
    for li in range(1, 5):
        y = jnp.dot(h, w_all_ref[li - 1], preferred_element_type=jnp.float32)
        h = bias_relu(y, b_all_ref[li])

    # Skip at i=4: h = cat([input_pts, h], -1); layer 5: (W + input_ch) -> W,
    # decomposed as h @ W5[input_ch:] + (pts @ W5[:input_ch])  (= skip_pre).
    y5 = jnp.dot(h, w_all_ref[4], preferred_element_type=jnp.float32) + skip_pre
    h = bias_relu(y5, b_all_ref[5])

    # Layers 6..7: W -> W.
    for li in range(6, 8):
        y = jnp.dot(h, w_all_ref[li - 1], preferred_element_type=jnp.float32)
        h = bias_relu(y, b_all_ref[li])

    # output_linear: W -> OUT_PAD (zero-padded columns), no activation.
    out = jnp.dot(h, wo_ref[...], preferred_element_type=jnp.float32) + bo_ref[...]
    out_ref[...] = out.astype(out_ref.dtype)


def _round_up(x, m):
    return ((x + m - 1) // m) * m


def _choose_tile(n):
    # >= 2 grid steps whenever possible so v7x's second TensorCore gets work.
    half = -(-n // 2)
    return max(8, min(TILE_N_CAP, _round_up(half, 8)))


@jax.jit
def nerf_forward(x, kp):
    """x: (N, INPUT_CH + INPUT_CH_VIEWS) float32 (any N); kp: packed kernel params."""
    n = x.shape[0]
    tile = _choose_tile(n)
    num_tiles = -(-n // tile)
    n_pad = num_tiles * tile

    # Zero-pad rows to a tile multiple and features to the sublane-aligned width.
    x_pad = jnp.zeros((n_pad, INPUT_CH_PAD), jnp.float32)
    x_pad = x_pad.at[:n, :INPUT_CH].set(x[:, :INPUT_CH].astype(jnp.float32))

    weight_args = (kp["w05"], kp["w_all"], kp["b_all"], kp["w_out"], kp["b_out"])
    weight_bytes = sum(int(np.prod(a.shape)) * np.dtype(a.dtype).itemsize
                       for a in weight_args)
    out_itemsize = np.dtype(OUT_DTYPE).itemsize

    # Peak-VMEM estimate: double-buffered in/out blocks, (double-buffered)
    # resident weights, and live f32/bf16 activations, plus scheduling headroom.
    in_bytes = 2 * tile * INPUT_CH_PAD * 4
    out_bytes = 2 * tile * OUT_PAD * out_itemsize
    act_bytes = tile * (2 * W) * 4 + tile * W * 4 + 2 * tile * W * 2 + tile * W * 4
    vmem_limit = int(min(64 << 20,
                         max(32 << 20,
                             2 * weight_bytes + in_bytes + out_bytes + act_bytes
                             + (8 << 20))))

    flops = 2 * n_pad * (INPUT_CH_PAD * 2 * W + 7 * W * W + W * OUT_PAD)
    bytes_accessed = int(n_pad * INPUT_CH_PAD * 4
                         + n_pad * OUT_PAD * out_itemsize
                         + weight_bytes)

    out = pl.pallas_call(
        _nerf_kernel,
        out_shape=jax.ShapeDtypeStruct((n_pad, OUT_PAD), OUT_DTYPE),
        grid_spec=pltpu.PrefetchScalarGridSpec(
            num_scalar_prefetch=0,
            grid=(num_tiles,),
            in_specs=[
                pl.BlockSpec((tile, INPUT_CH_PAD), lambda i: (i, 0)),
                # Weight/bias blocks: full arrays, constant block index across the
                # grid -> DMA'd once, VMEM-resident.
                pl.BlockSpec((INPUT_CH_PAD, 2 * W), lambda i: (0, 0)),
                pl.BlockSpec((D - 1, W, W), lambda i: (0, 0, 0)),
                pl.BlockSpec((D, 1, W), lambda i: (0, 0, 0)),
                pl.BlockSpec((W, OUT_PAD), lambda i: (0, 0)),
                pl.BlockSpec((1, OUT_PAD), lambda i: (0, 0)),
            ],
            out_specs=pl.BlockSpec((tile, OUT_PAD), lambda i: (i, 0)),
        ),
        compiler_params=pltpu.CompilerParams(
            dimension_semantics=("parallel",),
            vmem_limit_bytes=vmem_limit,
        ),
        cost_estimate=pl.CostEstimate(flops=int(flops), transcendentals=0,
                                      bytes_accessed=bytes_accessed),
    )(x_pad, *weight_args)

    return out[:n, :OUTPUT_CH].astype(jnp.float32)


# ---------------- parameter init (deterministic, xavier-uniform like torch) ----


def _xavier_uniform(key, in_dim, out_dim, gain):
    # Matches torch.nn.init.xavier_uniform_ bound; stored as (in_dim, out_dim).
    bound = gain * float(np.sqrt(6.0 / (in_dim + out_dim)))
    return jax.random.uniform(key, (in_dim, out_dim), jnp.float32, -bound, bound)


def init_params(key):
    relu_gain = float(np.sqrt(2.0))  # calculate_gain('relu')
    sig_gain = 1.0                   # calculate_gain('sigmoid')
    keys = jax.random.split(key, 16)
    p = {}
    # pts_linears[0]: input_ch -> W
    p["w0"] = _xavier_uniform(keys[0], INPUT_CH, W, relu_gain)
    p["b0"] = jnp.zeros((1, W), jnp.float32)
    # pts_linears[1..4]: W -> W
    for li, kk in zip(range(1, 5), keys[1:5]):
        p[f"w{li}"] = _xavier_uniform(kk, W, W, relu_gain)
        p[f"b{li}"] = jnp.zeros((1, W), jnp.float32)
    # pts_linears[5]: (W + input_ch) -> W (skip layer), split into two mats
    w5_full = _xavier_uniform(keys[5], W + INPUT_CH, W, relu_gain)
    p["w5_pts"] = w5_full[:INPUT_CH, :]   # multiplies input_pts (concat order: pts first)
    p["w5_h"] = w5_full[INPUT_CH:, :]     # multiplies h
    p["b5"] = jnp.zeros((1, W), jnp.float32)
    # pts_linears[6..7]: W -> W
    for li, kk in zip(range(6, 8), keys[6:8]):
        p[f"w{li}"] = _xavier_uniform(kk, W, W, relu_gain)
        p[f"b{li}"] = jnp.zeros((1, W), jnp.float32)
    # output_linear: W -> output_ch
    p["w_out"] = _xavier_uniform(keys[8], W, OUTPUT_CH, sig_gain)
    p["b_out"] = jnp.zeros((1, OUTPUT_CH), jnp.float32)
    return p


def _bf16_vpu_available():
    try:
        kind = jax.devices()[0].device_kind.lower()
    except Exception:
        return False
    # v5e ("v5 lite") has no bf16 VALU; keep the f32 epilogue there.
    return not ("v5 lite" in kind or "v5lite" in kind or "v5e" in kind)


def pack_params(p, *, bf16_epilogue=None):
    """One-time conversion to the kernel layout: merged K=8 f32 pts weights,
    stacked bf16 W->W weights, stacked biases (bf16 on bf16-VPU chips),
    lane-dense (128-wide, zero-padded) output layer."""
    if bf16_epilogue is None:
        bf16_epilogue = _bf16_vpu_available()
    bias_dtype = jnp.bfloat16 if bf16_epilogue else jnp.float32

    kp = {}
    # Merged layer-0 / skip-layer pts weights: (INPUT_CH_PAD, 2W) f32, zero K-rows.
    w0 = jnp.zeros((INPUT_CH_PAD, W), jnp.float32).at[:INPUT_CH].set(p["w0"])
    w5p = jnp.zeros((INPUT_CH_PAD, W), jnp.float32).at[:INPUT_CH].set(p["w5_pts"])
    kp["w05"] = jnp.concatenate([w0, w5p], axis=1)
    # Layers 1..7 (index 4 holds the h-part of the skip weight): (7, W, W) bf16.
    kp["w_all"] = jnp.stack(
        [p["w1"], p["w2"], p["w3"], p["w4"], p["w5_h"], p["w6"], p["w7"]]
    ).astype(jnp.bfloat16)
    # Biases 0..7: (D, 1, W).
    kp["b_all"] = jnp.stack([p[f"b{i}"] for i in range(D)]).astype(bias_dtype)
    # Output layer: pad N from OUTPUT_CH -> OUT_PAD with zero columns.
    wo = jnp.zeros((W, OUT_PAD), jnp.float32).at[:, :OUTPUT_CH].set(p["w_out"])
    kp["w_out"] = wo.astype(jnp.bfloat16)
    kp["b_out"] = jnp.zeros((1, OUT_PAD), jnp.float32).at[:, :OUTPUT_CH].set(p["b_out"])
    return kp


# ---------------- pure-JAX reference (mirrors the PyTorch forward, f32) --------


def nerf_reference(x, p):
    input_pts = x[..., :INPUT_CH]
    h = input_pts
    for i in range(D):
        if i == 5:
            w_full = jnp.concatenate([p["w5_pts"], p["w5_h"]], axis=0)
            h = h @ w_full + p["b5"]
        else:
            h = h @ p[f"w{i}"] + p[f"b{i}"]
        h = jnp.maximum(h, 0.0)
        if i in SKIPS:
            h = jnp.concatenate([input_pts, h], axis=-1)
    return h @ p["w_out"] + p["b_out"]


# TODO(synk): use_viewdirs=True branch (feature_linear / views_linears / rgb_linear)
# is not exercised by the default module config and is not implemented here.


if __name__ == "__main__":
    key = jax.random.PRNGKey(0)
    k_x, k_p = jax.random.split(key)

    N = 300  # deliberately not tile-aligned; wrapper pads and splits into 2 grid steps
    x = jax.random.normal(k_x, (N, INPUT_CH + INPUT_CH_VIEWS), jnp.float32)
    params = init_params(k_p)
    kparams = pack_params(params)

    out = nerf_forward(x, kparams)
    out = jax.block_until_ready(out)
    assert out.shape == (N, OUTPUT_CH)

    ref = nerf_reference(x, params)
    # bf16 weights/activations (f32 accumulate) + bf16 output store -> loosened
    # tolerance vs the f32 reference.
    np.testing.assert_allclose(np.asarray(out), np.asarray(ref), rtol=5e-2, atol=5e-2)

    print("KERNEL_OK")
</pallas_src>

<mosaic_0001>
module attributes {stable_mosaic.version = 11 : i64} {
  func.func @_nerf_kernel(%arg0: i32, %arg1: memref<152x8xf32, #tpu.memory_space<vmem>>, %arg2: memref<8x512xf32, #tpu.memory_space<vmem>>, %arg3: memref<7x256x256xbf16, #tpu.memory_space<vmem>>, %arg4: memref<8x1x256xbf16, #tpu.memory_space<vmem>>, %arg5: memref<256x128xbf16, #tpu.memory_space<vmem>>, %arg6: memref<1x128xf32, #tpu.memory_space<vmem>>, %arg7: memref<152x128xbf16, #tpu.memory_space<vmem>>) attributes {dimension_semantics = [#tpu.dimension_semantics<parallel>], iteration_bounds = array<i64: 2>, scalar_prefetch = 0 : i64, scratch_operands = 0 : i64, tpu.core_type = #tpu.core_type<tc>, window_params = [{transform_indices = @transform_0, window_bounds = array<i64: 152, 8>}, {pipeline_mode = #tpu.pipeline_mode<synchronous>, transform_indices = @transform_1, window_bounds = array<i64: 8, 512>}, {pipeline_mode = #tpu.pipeline_mode<synchronous>, transform_indices = @transform_2, window_bounds = array<i64: 7, 256, 256>}, {pipeline_mode = #tpu.pipeline_mode<synchronous>, transform_indices = @transform_3, window_bounds = array<i64: 8, 1, 256>}, {pipeline_mode = #tpu.pipeline_mode<synchronous>, transform_indices = @transform_4, window_bounds = array<i64: 256, 128>}, {pipeline_mode = #tpu.pipeline_mode<synchronous>, transform_indices = @transform_5, window_bounds = array<i64: 1, 128>}, {transform_indices = @transform_6, window_bounds = array<i64: 152, 128>}]} {
    %c0 = arith.constant 0 : index
    %c0_0 = arith.constant 0 : index
    %0 = vector.load %arg1[%c0, %c0_0] : memref<152x8xf32, #tpu.memory_space<vmem>>, vector<152x8xf32>
    %c0_1 = arith.constant 0 : index
    %c0_2 = arith.constant 0 : index
    %1 = vector.load %arg2[%c0_1, %c0_2] : memref<8x512xf32, #tpu.memory_space<vmem>>, vector<8x512xf32>
    %cst = arith.constant dense<0.000000e+00> : vector<152x512xf32>
    %2 = tpu.matmul %0, %1, %cst {dimension_numbers = #tpu.dot_dimension_numbers<[1], [0], [0], [1], [0, 0, 1, 1], [], []>} : vector<152x8xf32>, vector<8x512xf32>, vector<152x512xf32> -> vector<152x512xf32>
    %3 = vector.extract_strided_slice %2 {offsets = [0, 0], sizes = [152, 256], strides = [1, 1]} : vector<152x512xf32> to vector<152x256xf32>
    %c0_3 = arith.constant 0 : index
    %c0_4 = arith.constant 0 : index
    %c0_5 = arith.constant 0 : index
    %4 = vector.load %arg4[%c0_3, %c0_4, %c0_5] : memref<8x1x256xbf16, #tpu.memory_space<vmem>>, vector<1x1x256xbf16>
    %5 = vector.shape_cast %4 : vector<1x1x256xbf16> to vector<1x256xbf16>
    %6 = arith.truncf %3 : vector<152x256xf32> to vector<152x256xbf16>
    %7 = vector.broadcast %5 : vector<1x256xbf16> to vector<152x256xbf16>
    %8 = arith.addf %6, %7 : vector<152x256xbf16>
    %cst_6 = arith.constant 0.000000e+00 : bf16
    %9 = vector.broadcast %cst_6 : bf16 to vector<152x256xbf16>
    %10 = arith.maximumf %8, %9 : vector<152x256xbf16>
    %11 = vector.extract_strided_slice %2 {offsets = [0, 256], sizes = [152, 256], strides = [1, 1]} : vector<152x512xf32> to vector<152x256xf32>
    %c0_7 = arith.constant 0 : index
    %c0_8 = arith.constant 0 : index
    %c0_9 = arith.constant 0 : index
    %12 = vector.load %arg3[%c0_7, %c0_8, %c0_9] : memref<7x256x256xbf16, #tpu.memory_space<vmem>>, vector<1x256x256xbf16>
    %13 = vector.shape_cast %12 : vector<1x256x256xbf16> to vector<256x256xbf16>
    %cst_10 = arith.constant dense<0.000000e+00> : vector<152x256xf32>
    %14 = tpu.matmul %10, %13, %cst_10 {dimension_numbers = #tpu.dot_dimension_numbers<[1], [0], [0], [1], [0, 0, 1, 1], [], []>} : vector<152x256xbf16>, vector<256x256xbf16>, vector<152x256xf32> -> vector<152x256xf32>
    %c1 = arith.constant 1 : index
    %c0_11 = arith.constant 0 : index
    %c0_12 = arith.constant 0 : index
    %15 = vector.load %arg4[%c1, %c0_11, %c0_12] : memref<8x1x256xbf16, #tpu.memory_space<vmem>>, vector<1x1x256xbf16>
    %16 = vector.shape_cast %15 : vector<1x1x256xbf16> to vector<1x256xbf16>
    %17 = arith.truncf %14 : vector<152x256xf32> to vector<152x256xbf16>
    %18 = vector.broadcast %16 : vector<1x256xbf16> to vector<152x256xbf16>
    %19 = arith.addf %17, %18 : vector<152x256xbf16>
    %cst_13 = arith.constant 0.000000e+00 : bf16
    %20 = vector.broadcast %cst_13 : bf16 to vector<152x256xbf16>
    %21 = arith.maximumf %19, %20 : vector<152x256xbf16>
    %c1_14 = arith.constant 1 : index
    %c0_15 = arith.constant 0 : index
    %c0_16 = arith.constant 0 : index
    %22 = vector.load %arg3[%c1_14, %c0_15, %c0_16] : memref<7x256x256xbf16, #tpu.memory_space<vmem>>, vector<1x256x256xbf16>
    %23 = vector.shape_cast %22 : vector<1x256x256xbf16> to vector<256x256xbf16>
    %cst_17 = arith.constant dense<0.000000e+00> : vector<152x256xf32>
    %24 = tpu.matmul %21, %23, %cst_17 {dimension_numbers = #tpu.dot_dimension_numbers<[1], [0], [0], [1], [0, 0, 1, 1], [], []>} : vector<152x256xbf16>, vector<256x256xbf16>, vector<152x256xf32> -> vector<152x256xf32>
    %c2 = arith.constant 2 : index
    %c0_18 = arith.constant 0 : index
    %c0_19 = arith.constant 0 : index
    %25 = vector.load %arg4[%c2, %c0_18, %c0_19] : memref<8x1x256xbf16, #tpu.memory_space<vmem>>, vector<1x1x256xbf16>
    %26 = vector.shape_cast %25 : vector<1x1x256xbf16> to vector<1x256xbf16>
    %27 = arith.truncf %24 : vector<152x256xf32> to vector<152x256xbf16>
    %28 = vector.broadcast %26 : vector<1x256xbf16> to vector<152x256xbf16>
    %29 = arith.addf %27, %28 : vector<152x256xbf16>
    %cst_20 = arith.constant 0.000000e+00 : bf16
    %30 = vector.broadcast %cst_20 : bf16 to vector<152x256xbf16>
    %31 = arith.maximumf %29, %30 : vector<152x256xbf16>
    %c2_21 = arith.constant 2 : index
    %c0_22 = arith.constant 0 : index
    %c0_23 = arith.constant 0 : index
    %32 = vector.load %arg3[%c2_21, %c0_22, %c0_23] : memref<7x256x256xbf16, #tpu.memory_space<vmem>>, vector<1x256x256xbf16>
    %33 = vector.shape_cast %32 : vector<1x256x256xbf16> to vector<256x256xbf16>
    %cst_24 = arith.constant dense<0.000000e+00> : vector<152x256xf32>
    %34 = tpu.matmul %31, %33, %cst_24 {dimension_numbers = #tpu.dot_dimension_numbers<[1], [0], [0], [1], [0, 0, 1, 1], [], []>} : vector<152x256xbf16>, vector<256x256xbf16>, vector<152x256xf32> -> vector<152x256xf32>
    %c3 = arith.constant 3 : index
    %c0_25 = arith.constant 0 : index
    %c0_26 = arith.constant 0 : index
    %35 = vector.load %arg4[%c3, %c0_25, %c0_26] : memref<8x1x256xbf16, #tpu.memory_space<vmem>>, vector<1x1x256xbf16>
    %36 = vector.shape_cast %35 : vector<1x1x256xbf16> to vector<1x256xbf16>
    %37 = arith.truncf %34 : vector<152x256xf32> to vector<152x256xbf16>
    %38 = vector.broadcast %36 : vector<1x256xbf16> to vector<152x256xbf16>
    %39 = arith.addf %37, %38 : vector<152x256xbf16>
    %cst_27 = arith.constant 0.000000e+00 : bf16
    %40 = vector.broadcast %cst_27 : bf16 to vector<152x256xbf16>
    %41 = arith.maximumf %39, %40 : vector<152x256xbf16>
    %c3_28 = arith.constant 3 : index
    %c0_29 = arith.constant 0 : index
    %c0_30 = arith.constant 0 : index
    %42 = vector.load %arg3[%c3_28, %c0_29, %c0_30] : memref<7x256x256xbf16, #tpu.memory_space<vmem>>, vector<1x256x256xbf16>
    %43 = vector.shape_cast %42 : vector<1x256x256xbf16> to vector<256x256xbf16>
    %cst_31 = arith.constant dense<0.000000e+00> : vector<152x256xf32>
    %44 = tpu.matmul %41, %43, %cst_31 {dimension_numbers = #tpu.dot_dimension_numbers<[1], [0], [0], [1], [0, 0, 1, 1], [], []>} : vector<152x256xbf16>, vector<256x256xbf16>, vector<152x256xf32> -> vector<152x256xf32>
    %c4 = arith.constant 4 : index
    %c0_32 = arith.constant 0 : index
    %c0_33 = arith.constant 0 : index
    %45 = vector.load %arg4[%c4, %c0_32, %c0_33] : memref<8x1x256xbf16, #tpu.memory_space<vmem>>, vector<1x1x256xbf16>
    %46 = vector.shape_cast %45 : vector<1x1x256xbf16> to vector<1x256xbf16>
    %47 = arith.truncf %44 : vector<152x256xf32> to vector<152x256xbf16>
    %48 = vector.broadcast %46 : vector<1x256xbf16> to vector<152x256xbf16>
    %49 = arith.addf %47, %48 : vector<152x256xbf16>
    %cst_34 = arith.constant 0.000000e+00 : bf16
    %50 = vector.broadcast %cst_34 : bf16 to vector<152x256xbf16>
    %51 = arith.maximumf %49, %50 : vector<152x256xbf16>
    %c4_35 = arith.constant 4 : index
    %c0_36 = arith.constant 0 : index
    %c0_37 = arith.constant 0 : index
    %52 = vector.load %arg3[%c4_35, %c0_36, %c0_37] : memref<7x256x256xbf16, #tpu.memory_space<vmem>>, vector<1x256x256xbf16>
    %53 = vector.shape_cast %52 : vector<1x256x256xbf16> to vector<256x256xbf16>
    %cst_38 = arith.constant dense<0.000000e+00> : vector<152x256xf32>
    %54 = tpu.matmul %51, %53, %cst_38 {dimension_numbers = #tpu.dot_dimension_numbers<[1], [0], [0], [1], [0, 0, 1, 1], [], []>} : vector<152x256xbf16>, vector<256x256xbf16>, vector<152x256xf32> -> vector<152x256xf32>
    %55 = arith.addf %54, %11 : vector<152x256xf32>
    %c5 = arith.constant 5 : index
    %c0_39 = arith.constant 0 : index
    %c0_40 = arith.constant 0 : index
    %56 = vector.load %arg4[%c5, %c0_39, %c0_40] : memref<8x1x256xbf16, #tpu.memory_space<vmem>>, vector<1x1x256xbf16>
    %57 = vector.shape_cast %56 : vector<1x1x256xbf16> to vector<1x256xbf16>
    %58 = arith.truncf %55 : vector<152x256xf32> to vector<152x256xbf16>
    %59 = vector.broadcast %57 : vector<1x256xbf16> to vector<152x256xbf16>
    %60 = arith.addf %58, %59 : vector<152x256xbf16>
    %cst_41 = arith.constant 0.000000e+00 : bf16
    %61 = vector.broadcast %cst_41 : bf16 to vector<152x256xbf16>
    %62 = arith.maximumf %60, %61 : vector<152x256xbf16>
    %c5_42 = arith.constant 5 : index
    %c0_43 = arith.constant 0 : index
    %c0_44 = arith.constant 0 : index
    %63 = vector.load %arg3[%c5_42, %c0_43, %c0_44] : memref<7x256x256xbf16, #tpu.memory_space<vmem>>, vector<1x256x256xbf16>
    %64 = vector.shape_cast %63 : vector<1x256x256xbf16> to vector<256x256xbf16>
    %cst_45 = arith.constant dense<0.000000e+00> : vector<152x256xf32>
    %65 = tpu.matmul %62, %64, %cst_45 {dimension_numbers = #tpu.dot_dimension_numbers<[1], [0], [0], [1], [0, 0, 1, 1], [], []>} : vector<152x256xbf16>, vector<256x256xbf16>, vector<152x256xf32> -> vector<152x256xf32>
    %c6 = arith.constant 6 : index
    %c0_46 = arith.constant 0 : index
    %c0_47 = arith.constant 0 : index
    %66 = vector.load %arg4[%c6, %c0_46, %c0_47] : memref<8x1x256xbf16, #tpu.memory_space<vmem>>, vector<1x1x256xbf16>
    %67 = vector.shape_cast %66 : vector<1x1x256xbf16> to vector<1x256xbf16>
    %68 = arith.truncf %65 : vector<152x256xf32> to vector<152x256xbf16>
    %69 = vector.broadcast %67 : vector<1x256xbf16> to vector<152x256xbf16>
    %70 = arith.addf %68, %69 : vector<152x256xbf16>
    %cst_48 = arith.constant 0.000000e+00 : bf16
    %71 = vector.broadcast %cst_48 : bf16 to vector<152x256xbf16>
    %72 = arith.maximumf %70, %71 : vector<152x256xbf16>
    %c6_49 = arith.constant 6 : index
    %c0_50 = arith.constant 0 : index
    %c0_51 = arith.constant 0 : index
    %73 = vector.load %arg3[%c6_49, %c0_50, %c0_51] : memref<7x256x256xbf16, #tpu.memory_space<vmem>>, vector<1x256x256xbf16>
    %74 = vector.shape_cast %73 : vector<1x256x256xbf16> to vector<256x256xbf16>
    %cst_52 = arith.constant dense<0.000000e+00> : vector<152x256xf32>
    %75 = tpu.matmul %72, %74, %cst_52 {dimension_numbers = #tpu.dot_dimension_numbers<[1], [0], [0], [1], [0, 0, 1, 1], [], []>} : vector<152x256xbf16>, vector<256x256xbf16>, vector<152x256xf32> -> vector<152x256xf32>
    %c7 = arith.constant 7 : index
    %c0_53 = arith.constant 0 : index
    %c0_54 = arith.constant 0 : index
    %76 = vector.load %arg4[%c7, %c0_53, %c0_54] : memref<8x1x256xbf16, #tpu.memory_space<vmem>>, vector<1x1x256xbf16>
    %77 = vector.shape_cast %76 : vector<1x1x256xbf16> to vector<1x256xbf16>
    %78 = arith.truncf %75 : vector<152x256xf32> to vector<152x256xbf16>
    %79 = vector.broadcast %77 : vector<1x256xbf16> to vector<152x256xbf16>
    %80 = arith.addf %78, %79 : vector<152x256xbf16>
    %cst_55 = arith.constant 0.000000e+00 : bf16
    %81 = vector.broadcast %cst_55 : bf16 to vector<152x256xbf16>
    %82 = arith.maximumf %80, %81 : vector<152x256xbf16>
    %c0_56 = arith.constant 0 : index
    %c0_57 = arith.constant 0 : index
    %83 = vector.load %arg5[%c0_56, %c0_57] : memref<256x128xbf16, #tpu.memory_space<vmem>>, vector<256x128xbf16>
    %cst_58 = arith.constant dense<0.000000e+00> : vector<152x128xf32>
    %84 = tpu.matmul %82, %83, %cst_58 {dimension_numbers = #tpu.dot_dimension_numbers<[1], [0], [0], [1], [0, 0, 1, 1], [], []>} : vector<152x256xbf16>, vector<256x128xbf16>, vector<152x128xf32> -> vector<152x128xf32>
    %c0_59 = arith.constant 0 : index
    %c0_60 = arith.constant 0 : index
    %85 = vector.load %arg6[%c0_59, %c0_60] : memref<1x128xf32, #tpu.memory_space<vmem>>, vector<1x128xf32>
    %86 = vector.broadcast %85 : vector<1x128xf32> to vector<152x128xf32>
    %87 = arith.addf %84, %86 : vector<152x128xf32>
    %88 = arith.truncf %87 : vector<152x128xf32> to vector<152x128xbf16>
    %c0_61 = arith.constant 0 : index
    %c0_62 = arith.constant 0 : index
    %89 = vector.load %arg7[%c0_61, %c0_62] : memref<152x128xbf16, #tpu.memory_space<vmem>>, vector<152x128xbf16>
    tpu.vector_store %arg7[%c0_61, %c0_62], %88 {strides = array<i32>} : memref<152x128xbf16, #tpu.memory_space<vmem>>, vector<152x128xbf16>,
    return
  }
  func.func @transform_0(%arg0: i32) -> (i32, i32) {
    %c0_i32 = arith.constant 0 : i32
    %c0_i32_0 = arith.constant 0 : i32
    return %arg0, %c0_i32 : i32, i32
  }
  func.func @transform_1(%arg0: i32) -> (i32, i32) {
    %c0_i32 = arith.constant 0 : i32
    %c0_i32_0 = arith.constant 0 : i32
    %c0_i32_1 = arith.constant 0 : i32
    return %c0_i32, %c0_i32_0 : i32, i32
  }
  func.func @transform_2(%arg0: i32) -> (i32, i32, i32) {
    %c0_i32 = arith.constant 0 : i32
    %c0_i32_0 = arith.constant 0 : i32
    %c0_i32_1 = arith.constant 0 : i32
    %c0_i32_2 = arith.constant 0 : i32
    return %c0_i32, %c0_i32_0, %c0_i32_1 : i32, i32, i32
  }
  func.func @transform_3(%arg0: i32) -> (i32, i32, i32) {
    %c0_i32 = arith.constant 0 : i32
    %c0_i32_0 = arith.constant 0 : i32
    %c0_i32_1 = arith.constant 0 : i32
    %c0_i32_2 = arith.constant 0 : i32
    return %c0_i32, %c0_i32_0, %c0_i32_1 : i32, i32, i32
  }
  func.func @transform_4(%arg0: i32) -> (i32, i32) {
    %c0_i32 = arith.constant 0 : i32
    %c0_i32_0 = arith.constant 0 : i32
    %c0_i32_1 = arith.constant 0 : i32
    return %c0_i32, %c0_i32_0 : i32, i32
  }
  func.func @transform_5(%arg0: i32) -> (i32, i32) {
    %c0_i32 = arith.constant 0 : i32
    %c0_i32_0 = arith.constant 0 : i32
    %c0_i32_1 = arith.constant 0 : i32
    return %c0_i32, %c0_i32_0 : i32, i32
  }
  func.func @transform_6(%arg0: i32) -> (i32, i32) {
    %c0_i32 = arith.constant 0 : i32
    %c0_i32_0 = arith.constant 0 : i32
    return %arg0, %c0_i32 : i32, i32
  }
}

</mosaic_0001>

<bundles_post_ra>
// kernel: nerf_forward.1
= control target key start
LH: loop header
LB: loop body
LE: loop exit
PB: predicated region body
PF: predicated region fallthrough
CT: control target
= control target key end

     0   :  { %11 = vsyncpa [#allocation3], 0  ;;  %s5108_s21 = smov 0   ;;  %s5966_s0 = inlined_call_operand.vmem [shape: f32[304,8], index: 0, kind: input, shape index: {}]   ;;  %s5967_s1 = inlined_call_operand.vmem [shape: f32[8,512], index: 1, kind: input, shape index: {}]   ;;  %s5968_s2 = inlined_call_operand.hbm [shape: bf16[7,256,256], index: 2, kind: input, shape index: {}]   ;;  %s5969_s3 = inlined_call_operand.vmem [shape: bf16[8,1,256], index: 3, kind: input, shape index: {}]   ;;  %s5970_s4 = inlined_call_operand.vmem [shape: bf16[256,128], index: 4, kind: input, shape index: {}]   ;;  %s5971_s5 = inlined_call_operand.vmem [shape: f32[1,128], index: 5, kind: input, shape index: {}]   ;;  %s5972_s6 = inlined_call_operand.vmem [shape: bf16[304,128], index: 6, kind: output, shape index: {}]  }
   0x1 LB: > { %s4179_s22 = sadd.s32 4294967295, %s5065_s21   ;;  %p4181_p0 = scmp.ge.s32.totalorder %s5065_s21, 1  ;;  %s5065_s21 = sphi %s5108_s21, %s17_s21  }
   0x2   : > { %p179_p1 = scmp.lt.s32.totalorder %s5065_s21, 3  ;;  %s5067_s23 = smov [#allocation2]  }
   0x3   : > { %s194_s24 = sshll.u32 %s5067_s23, 4  ;;  %p5122_p3 = scmp.eq.s32.totalorder %s4179_s22, 0  ;;  %s195_s24 = int_to_ptr.vmem [resolvable:$true] %s194_s24 }
   0x4   : > { %p5116_p2 = pnand %p4181_p0, %p179_p1  ;;  %s5027_s30 = scalar_lea.hbm %s5968_s2, 28672 }
   0x5   : > { %s5977_s26 = scalar_select %p5122_p3, 1, 0 }
   0x6   : > { %s5976_s25 = scalar_select %p5116_p2, 1, 0 }
   0x7   : > { %p4655_p4 = pneg %p5116_p2  ;;  %p5028_p6 = scmp.ne.s32.totalorder %s5968_s2, %s5027_s30 }
   0x8   : > { %p5034_p10 = scmp.lt.u32.totalorder %s5027_s30, %s5968_s2 }
   0x9   : > { %p5130_p5 = pnand %p5122_p3, %p4655_p4 }
   0xb   : > { %p5029_p7 = pneg %p5130_p5 }
   0xd   : > { %p5030_p8 = pnand %p5029_p7, %p5028_p6 }
   0xf   : > { %p5031_p9 = pneg %p5030_p8 }
  0x11   : > { %p5036_p11 = pnand %p5034_p10, %p5031_p9 }
  0x13   : > { %5039 = shalt.err (!%p5036_p11)
}
  0x14   : > { %s5040_s11 = scalar_lea.vmem %s195_s24, 28672  ;;  %p5048_p1 = scmp.lt.s32.totalorder %s195_s24, %s195_s24 }
  0x15   : > { %p5041_p12 = scmp.ne.s32.totalorder %s195_s24, %s5040_s11  ;;  %p5049_p4 = scmp.lt.s32.totalorder %s5040_s11, %s5040_s11 }
  0x17   : > { %p5043_p13 = pnand %p5041_p12, %p5029_p7  ;;  %p5050_p3 = por %p5049_p4, %p5048_p1 }
  0x19   : > { %p5044_p0 = pneg %p5043_p13 }
  0x1b   : > { %p5051_p2 = pnand %p5050_p3, %p5044_p0 }
  0x1d   : > { %5054 = shalt.err (!%p5051_p2)
}
  0x1e   : > { %s5068_s12 = smov 128   ;;  %s5069_s13 = smov 8  }
  0x1f   : > { %4658 = dma.hbm_to_vmem [thread:$0]  (!%p5130_p5), %s5968_s2, 28672, %s195_s24, [#allocation3], %s5068_s12, %s5068_s12, %s5069_s13  }
  0x20   : > { %p5979_p6 = scmp.ne.s32.totalorder %s5976_s25, 0 }
  0x21   : > { %p5980_p8 = scmp.ne.s32.totalorder (!%p5979_p6), %s5977_s26, 0 }
  0x22   : > { %228 = sbr.rel (%p5979_p6) target bundleno = 2122 (0x84a), region = 44 }
  0x29   : > { %5060 = dma.done.wait (%p5980_p8), [#allocation3], 28672  }
  0x2a   : > { %5062 = vsyncadd (%p5980_p8), [#allocation3], 4294938624  ;;  %s258_s16 = smul.u32 19, %s4179_s22  ;;  %v5070_v0 = vmov 0.0   ;;  %v291_v1 = vld [vmem:[%s5967_s1 + $0x8] sm:$0xff]  ;;  %v290_v2 = vld [vmem:[%s5967_s1] sm:$0xff] }
  0x2b   : > { %416 = vmatprep.mubr.f32.mxu0 %v5070_v0  ;;  %595 = vmatprep.mubr.f32.mxu1 %v5070_v0  ;;  %vm294_vm0 = vcmask 64512   ;;  %v4675_v6 = vld [vmem:[#allocation2] ss:$8 sps:$4 sm:$0xff]   ;;  %v4677_v7 = vld [vmem:[#allocation2 + $0x4] ss:$8 sps:$4 sm:$0xff]   ;;  %v293_v54 = vld [vmem:[%s5967_s1 + $0x18] sm:$0xff] }
  0x2c   : > { %p259_p2 = scmp.lt.s32.totalorder %s258_s16, 37  ;;  %352 = vmatprep.subr.mxu0 %v291_v1  ;;  %v4680_v8 = vld [vmem:[#allocation2 + $0x14] ss:$8 sps:$4 sm:$0xff]   ;;  %v4678_v10 = vld [vmem:[#allocation2 + $0x10] ss:$8 sps:$4 sm:$0xff]   ;;  %531 = vmatprep.subr.mxu1 %v293_v54 }
  0x2d   : > { %353 = vmatpush1.msra.mxu0 %v290_v2  ;;  %v4683_v11 = vld [vmem:[#allocation2 + $0x24] ss:$8 sps:$4 sm:$0xff]   ;;  %v4681_v13 = vld [vmem:[#allocation2 + $0x20] ss:$8 sps:$4 sm:$0xff]   ;;  %v4686_v14 = vld [vmem:[#allocation2 + $0x34] ss:$8 sps:$4 sm:$0xff]  }
  0x2e   : > { %s5982_s16 = smov (!%p259_p2, %s258_s16), 37  ;;  %1000 = vmatprep.subr.bf16.mxu0 %v4677_v7  ;;  %v4684_v16 = vld [vmem:[#allocation2 + $0x30] ss:$8 sps:$4 sm:$0xff]   ;;  %v4689_v17 = vld [vmem:[#allocation2 + $0x44] ss:$8 sps:$4 sm:$0xff]  }
  0x2f   : > { %s4186_s17 = sshll.u32 %s5982_s16, 3  ;;  %v4687_v19 = vld [vmem:[#allocation2 + $0x40] ss:$8 sps:$4 sm:$0xff]   ;;  %v4692_v20 = vld [vmem:[#allocation2 + $0x54] ss:$8 sps:$4 sm:$0xff]   ;;  %s4187_s12 = sshll.u32 %s5982_s16, 2 }
  0x30   : > { %s5172_s25 = scalar_lea.vmem %s5966_s0, %s4186_s17  ;;  %v4690_v22 = vld [vmem:[#allocation2 + $0x50] ss:$8 sps:$4 sm:$0xff]   ;;  %v4695_v23 = vld [vmem:[#allocation2 + $0x64] ss:$8 sps:$4 sm:$0xff]   ;;  %v4693_v25 = vld [vmem:[#allocation2 + $0x60] ss:$8 sps:$4 sm:$0xff]   ;;  %s5934_s15 = scalar_lea.vmem %s5972_s6, %s4187_s12 }
  0x31   : > { %v5175_v3 = vld [vmem:[%s5172_s25] sm:$0xff]  ;;  %v5181_v4 = vld [vmem:[%s5172_s25 + $0x8] sm:$0xff]  ;;  %v5186_v5 = vld [vmem:[%s5172_s25 + $0x10] sm:$0xff] }
  0x32   : > { %4188 = vmatmul.mubr.msk.f32.vlgmr.msra.gmra.mrb[0].mxu0 %vm294_vm0, %v5175_v3  ;;  %v5192_v9 = vld [vmem:[%s5172_s25 + $0x18] sm:$0xff]  ;;  %v5198_v12 = vld [vmem:[%s5172_s25 + $0x20] sm:$0xff]  ;;  %v5204_v15 = vld [vmem:[%s5172_s25 + $0x28] sm:$0xff] }
  0x33   : > { %422 = vmatprep.mubr.f32.mxu0 %v5070_v0  ;;  %1001 = vmatpush1.bf16.msra.mxu0 %v4675_v6  ;;  %v5210_v18 = vld [vmem:[%s5172_s25 + $0x30] sm:$0xff]  ;;  %v5214_v21 = vld [vmem:[%s5172_s25 + $0x38] sm:$0xff]  ;;  %v5220_v24 = vld [vmem:[%s5172_s25 + $0x40] sm:$0xff] }
  0x34   : > { %1002 = vmatprep.subr.bf16.mxu0 %v4680_v8  ;;  %v4698_v26 = vld [vmem:[#allocation2 + $0x74] ss:$8 sps:$4 sm:$0xff]   ;;  %v5226_v27 = vld [vmem:[%s5172_s25 + $0x48] sm:$0xff]  ;;  %v4696_v28 = vld [vmem:[#allocation2 + $0x70] ss:$8 sps:$4 sm:$0xff]  }
  0x35   : > { %v4701_v29 = vld [vmem:[#allocation2 + $0x84] ss:$8 sps:$4 sm:$0xff]   ;;  %v5232_v30 = vld [vmem:[%s5172_s25 + $0x50] sm:$0xff]  ;;  %v4699_v31 = vld [vmem:[#allocation2 + $0x80] ss:$8 sps:$4 sm:$0xff]  }
  0x36   : > { %4189 = vmatmul.mubr.msk.f32.gmra.mrb[2].mxu0 %vm294_vm0, %v5181_v4  ;;  %v4704_v32 = vld [vmem:[#allocation2 + $0x94] ss:$8 sps:$4 sm:$0xff]   ;;  %v4702_v34 = vld [vmem:[#allocation2 + $0x90] ss:$8 sps:$4 sm:$0xff]   ;;  %v4707_v35 = vld [vmem:[#allocation2 + $0xa4] ss:$8 sps:$4 sm:$0xff]  }
  0x37   : > { %428 = vmatprep.mubr.f32.mxu0 %v5070_v0  ;;  %1003 = vmatpush1.bf16.msra.mxu0 %v4678_v10  ;;  %v5238_v33 = vld [vmem:[%s5172_s25 + $0x58] sm:$0xff]  ;;  %v5244_v36 = vld [vmem:[%s5172_s25 + $0x60] sm:$0xff]  ;;  %v5250_v39 = vld [vmem:[%s5172_s25 + $0x68] sm:$0xff]  ;;  %v5071_v8 = vmov 1966171168   ;;  %v743_v10 = vlaneseq }
  0x38   : > { %1004 = vmatprep.subr.bf16.mxu0 %v4683_v11  ;;  %v4705_v37 = vld [vmem:[#allocation2 + $0xa0] ss:$8 sps:$4 sm:$0xff]   ;;  %v4710_v38 = vld [vmem:[#allocation2 + $0xb4] ss:$8 sps:$4 sm:$0xff]   ;;  %v4708_v40 = vld [vmem:[#allocation2 + $0xb0] ss:$8 sps:$4 sm:$0xff]  }
  0x39   : > { %v4713_v41 = vld [vmem:[#allocation2 + $0xc4] ss:$8 sps:$4 sm:$0xff]   ;;  %v5256_v42 = vld [vmem:[%s5172_s25 + $0x70] sm:$0xff]  ;;  %v4711_v43 = vld [vmem:[#allocation2 + $0xc0] ss:$8 sps:$4 sm:$0xff]  }
  0x3a   : > { %4190 = vmatmul.mubr.msk.f32.gmra.mrb[4].mxu0 %vm294_vm0, %v5186_v5  ;;  %v4716_v44 = vld [vmem:[#allocation2 + $0xd4] ss:$8 sps:$4 sm:$0xff]   ;;  %v4714_v46 = vld [vmem:[#allocation2 + $0xd0] ss:$8 sps:$4 sm:$0xff]   ;;  %v5268_v47 = vld [vmem:[%s5172_s25 + $0x80] sm:$0xff] }
  0x3b   : > { %434 = vmatprep.mubr.f32.mxu0 %v5070_v0  ;;  %1005 = vmatpush1.bf16.msra.mxu0 %v4681_v13  ;;  %v5262_v45 = vld [vmem:[%s5172_s25 + $0x78] sm:$0xff]  ;;  %v5274_v48 = vld [vmem:[%s5172_s25 + $0x88] sm:$0xff]  ;;  %v5280_v49 = vld [vmem:[%s5172_s25 + $0x90] sm:$0xff] }
  0x3c   : > { %1006 = vmatprep.subr.bf16.mxu0 %v4686_v14  ;;  %v4717_v50 = vld [vmem:[#allocation2 + $0xe0] ss:$8 sps:$4 sm:$0xff]   ;;  %v4719_v51 = vld [vmem:[#allocation2 + $0xe4] ss:$8 sps:$4 sm:$0xff]   ;;  %v4722_v52 = vld [vmem:[#allocation2 + $0xf4] ss:$8 sps:$4 sm:$0xff]  }
  0x3d   : > { %v4720_v53 = vld [vmem:[#allocation2 + $0xf0] ss:$8 sps:$4 sm:$0xff]   ;;  %v4723_v56 = vld [vmem:[#allocation2 + $0x100] ss:$8 sps:$4 sm:$0xff]   ;;  %v4725_v57 = vld [vmem:[#allocation2 + $0x104] ss:$8 sps:$4 sm:$0xff]  }
  0x3e   : > { %4191 = vmatmul.mubr.msk.f32.gmra.mrb[6].mxu0 %vm294_vm0, %v5192_v9  ;;  %v292_v55 = vld [vmem:[%s5967_s1 + $0x10] sm:$0xff]  ;;  %v4731_v60 = vld [vmem:[#allocation2 + $0x124] ss:$8 sps:$4 sm:$0xff]   ;;  %v4729_v61 = vld [vmem:[#allocation2 + $0x120] ss:$8 sps:$4 sm:$0xff]   ;;  %v744_v14 = vshrl.u32 %v743_v10, 7 }
  0x3f   : > { %440 = vmatprep.mubr.f32.mxu0 %v5070_v0  ;;  %1007 = vmatpush1.bf16.msra.mxu0 %v4684_v16  ;;  %v4728_v58 = vld [vmem:[#allocation2 + $0x114] ss:$8 sps:$4 sm:$0xff]   ;;  %v4726_v59 = vld [vmem:[#allocation2 + $0x110] ss:$8 sps:$4 sm:$0xff]   ;;  %v4737_v1 = vld [vmem:[#allocation2 + $0x144] ss:$8 sps:$4 sm:$0xff]  }
  0x40   : > { %1008 = vmatprep.subr.bf16.mxu0 %v4689_v17  ;;  %532 = vmatpush1.msra.mxu1 %v292_v55  ;;  %v4734_v62 = vld [vmem:[#allocation2 + $0x134] ss:$8 sps:$4 sm:$0xff]   ;;  %v4732_v63 = vld [vmem:[#allocation2 + $0x130] ss:$8 sps:$4 sm:$0xff]   ;;  %v4735_v2 = vld [vmem:[#allocation2 + $0x140] ss:$8 sps:$4 sm:$0xff]  }
  0x41   : > { %4207 = vmatmul.mubr.msk.f32.vlgmr.msra.gmra.mrb[0].mxu1 %vm294_vm0, %v5175_v3  ;;  %1423 = vmatprep.subr.bf16.mxu1 %v4725_v57  ;;  %v4740_v3 = vld [vmem:[#allocation2 + $0x154] ss:$8 sps:$4 sm:$0xff]   ;;  %v4741_v6 = vld [vmem:[#allocation2 + $0x160] ss:$8 sps:$4 sm:$0xff]   ;;  %v4744_v11 = vld [vmem:[#allocation2 + $0x170] ss:$8 sps:$4 sm:$0xff]  }
  0x42   : > { %4192 = vmatmul.mubr.msk.f32.gmra.mrb[8].mxu0 %vm294_vm0, %v5198_v12  ;;  %1424 = vmatpush1.bf16.msra.mxu1 %v4723_v56  ;;  %v4746_v7 = vld [vmem:[#allocation2 + $0x174] ss:$8 sps:$4 sm:$0xff]   ;;  %v4747_v16 = vld [vmem:[#allocation2 + $0x180] ss:$8 sps:$4 sm:$0xff]   ;;  %v4762_v54 = vld [vmem:[#allocation2 + $0x1d0] ss:$8 sps:$4 sm:$0xff]  }
  0x43   : > { %446 = vmatprep.mubr.f32.mxu0 %v5070_v0  ;;  %1009 = vmatpush1.bf16.msra.mxu0 %v4687_v19  ;;  %v4752_v17 = vld [vmem:[#allocation2 + $0x194] ss:$8 sps:$4 sm:$0xff]  }
  0x44   : > { %1010 = vmatprep.subr.bf16.mxu0 %v4692_v20  ;;  %601 = vmatprep.mubr.f32.mxu1 %v5070_v0  ;;  %v4750_v20 = vld [vmem:[#allocation2 + $0x190] ss:$8 sps:$4 sm:$0xff]  }
  0x45   : > { %1425 = vmatprep.subr.bf16.mxu1 %v4728_v58  ;;  %4208 = vmatmul.mubr.msk.f32.gmra.mrb[2].mxu1 %vm294_vm0, %v5181_v4  ;;  %v4738_v4 = vld [vmem:[#allocation2 + $0x150] ss:$8 sps:$4 sm:$0xff]  }
  0x46   : > { %4193 = vmatmul.mubr.msk.f32.gmra.mrb[10].mxu0 %vm294_vm0, %v5204_v15  ;;  %1426 = vmatpush1.bf16.msra.mxu1 %v4726_v59 }
  0x47   : > { %452 = vmatprep.mubr.f32.mxu0 %v5070_v0  ;;  %1011 = vmatpush1.bf16.msra.mxu0 %v4690_v22 }
  0x48   : > { %1012 = vmatprep.subr.bf16.mxu0 %v4695_v23  ;;  %607 = vmatprep.mubr.f32.mxu1 %v5070_v0 }
  0x49   : > { %1427 = vmatprep.subr.bf16.mxu1 %v4731_v60  ;;  %4209 = vmatmul.mubr.msk.f32.gmra.mrb[4].mxu1 %vm294_vm0, %v5186_v5  ;;  %v4743_v5 = vld [vmem:[#allocation2 + $0x164] ss:$8 sps:$4 sm:$0xff]  }
  0x4a   : > { %4194 = vmatmul.mubr.msk.f32.gmra.mrb[12].mxu0 %vm294_vm0, %v5210_v18  ;;  %613 = vmatprep.mubr.f32.mxu1 %v5070_v0 }
  0x4b   : > { %458 = vmatprep.mubr.f32.mxu0 %v5070_v0  ;;  %1013 = vmatpush1.bf16.msra.mxu0 %v4693_v25  ;;  %v4753_v25 = vld [vmem:[#allocation2 + $0x1a0] ss:$8 sps:$4 sm:$0xff]  }
  0x4c   : > { %1014 = vmatprep.subr.bf16.mxu0 %v4698_v26  ;;  %1428 = vmatpush1.bf16.msra.mxu1 %v4729_v61  ;;  %v4758_v26 = vld [vmem:[#allocation2 + $0x1b4] ss:$8 sps:$4 sm:$0xff]  }
  0x4d   : > { %1429 = vmatprep.subr.bf16.mxu1 %v4734_v62  ;;  %4210 = vmatmul.mubr.msk.f32.gmra.mrb[6].mxu1 %vm294_vm0, %v5192_v9  ;;  %v741_v9 = vunpack.c.l.s4 %v5071_v8 }
  0x4e   : > { %4195 = vmatmul.mubr.msk.f32.gmra.mrb[14].mxu0 %vm294_vm0, %v5214_v21  ;;  %619 = vmatprep.mubr.f32.mxu1 %v5070_v0 }
  0x4f   : > { %464 = vmatprep.mubr.f32.mxu0 %v5070_v0  ;;  %1015 = vmatpush1.bf16.msra.mxu0 %v4696_v28  ;;  %v742_v13 = vunpack.c.0.s8 %v741_v9  ;;  %v5330_v28 = vsub.s32 0, %v744_v14 }
  0x50   : > { %1016 = vmatprep.subr.bf16.mxu0 %v4701_v29  ;;  %1430 = vmatpush1.bf16.msra.mxu1 %v4732_v63 }
  0x51   : > { %1431 = vmatprep.subr.bf16.mxu1 %v4737_v1  ;;  %4211 = vmatmul.mubr.msk.f32.gmra.mrb[8].mxu1 %vm294_vm0, %v5198_v12  ;;  %v4749_v12 = vld [vmem:[#allocation2 + $0x184] ss:$8 sps:$4 sm:$0xff]  }
  0x52   : > { %4196 = vmatmul.mubr.msk.f32.gmra.mrb[16].mxu0 %vm294_vm0, %v5220_v24  ;;  %625 = vmatprep.mubr.f32.mxu1 %v5070_v0 }
  0x53   : > { %470 = vmatprep.mubr.f32.mxu0 %v5070_v0  ;;  %1017 = vmatpush1.bf16.msra.mxu0 %v4699_v31 }
  0x54   : > { %1018 = vmatprep.subr.bf16.mxu0 %v4704_v32  ;;  %1432 = vmatpush1.bf16.msra.mxu1 %v4735_v2 }
  0x55   : > { %1433 = vmatprep.subr.bf16.mxu1 %v4740_v3  ;;  %4212 = vmatmul.mubr.msk.f32.gmra.mrb[10].mxu1 %vm294_vm0, %v5204_v15  ;;  %v4226_v15 = vld.sshfl [vmem:[%s5969_s3] sm:$0x11 pattern:$0x75316420] }
  0x56   : > { %4197 = vmatmul.mubr.msk.f32.gmra.mrb[18].mxu0 %vm294_vm0, %v5226_v27  ;;  %631 = vmatprep.mubr.f32.mxu1 %v5070_v0  ;;  %v739_v19 = vcombine.high %v4226_v15, %v4226_v15 }
  0x57   : > { %476 = vmatprep.mubr.f32.mxu0 %v5070_v0  ;;  %1019 = vmatpush1.bf16.msra.mxu0 %v4702_v34  ;;  %v4756_v34 = vld [vmem:[#allocation2 + $0x1b0] ss:$8 sps:$4 sm:$0xff]  }
  0x58   : > { %1020 = vmatprep.subr.bf16.mxu0 %v4707_v35  ;;  %1434 = vmatpush1.bf16.msra.mxu1 %v4738_v4 }
  0x59   : > { %1435 = vmatprep.subr.bf16.mxu1 %v4743_v5  ;;  %4213 = vmatmul.mubr.msk.f32.gmra.mrb[12].mxu1 %vm294_vm0, %v5210_v18  ;;  %v5320_v18 = vsub.s32 %v742_v13, %v744_v14 }
  0x5a   : > { %4198 = vmatmul.mubr.msk.f32.gmra.mrb[20].mxu0 %vm294_vm0, %v5232_v30  ;;  %637 = vmatprep.mubr.f32.mxu1 %v5070_v0 }
  0x5b   : > { %482 = vmatprep.mubr.f32.mxu0 %v5070_v0  ;;  %1021 = vmatpush1.bf16.msra.mxu0 %v4705_v37  ;;  %v746_v22 = vrot.slane %v4226_v15, %v5320_v18  ;;  %v753_v23 = vrot.slane %v739_v19, %v5320_v18 }
  0x5c   : > { %1022 = vmatprep.subr.bf16.mxu0 %v4710_v38  ;;  %1436 = vmatpush1.bf16.msra.mxu1 %v4741_v6 }
  0x5d   : > { %1437 = vmatprep.subr.bf16.mxu1 %v4746_v7  ;;  %4214 = vmatmul.mubr.msk.f32.gmra.mrb[14].mxu1 %vm294_vm0, %v5214_v21  ;;  %v4755_v21 = vld [vmem:[#allocation2 + $0x1a4] ss:$8 sps:$4 sm:$0xff]   ;;  %v762_v31 = vpack.i.b16 %v753_v23, %v753_v23 }
  0x5e   : > { %4199 = vmatmul.mubr.msk.f32.gmra.mrb[22].mxu0 %vm294_vm0, %v5238_v33  ;;  %643 = vmatprep.mubr.f32.mxu1 %v5070_v0 }
  0x5f   : > { %488 = vmatprep.mubr.f32.mxu0 %v5070_v0  ;;  %1023 = vmatpush1.bf16.msra.mxu0 %v4708_v40  ;;  %v5339_v38 = vrot.slane %v762_v31, %v5330_v28 }
  0x60   : > { %1024 = vmatprep.subr.bf16.mxu0 %v4713_v41  ;;  %1438 = vmatpush1.bf16.msra.mxu1 %v4744_v11 }
  0x61   : > { %1439 = vmatprep.subr.bf16.mxu1 %v4749_v12  ;;  %4215 = vmatmul.mubr.msk.f32.gmra.mrb[16].mxu1 %vm294_vm0, %v5220_v24  ;;  %v755_v24 = vpack.i.b16 %v746_v22, %v746_v22 }
  0x62   : > { %4200 = vmatmul.mubr.msk.f32.gmra.mrb[24].mxu0 %vm294_vm0, %v5244_v36  ;;  %649 = vmatprep.mubr.f32.mxu1 %v5070_v0 }
  0x63   : > { %494 = vmatprep.mubr.f32.mxu0 %v5070_v0  ;;  %1025 = vmatpush1.bf16.msra.mxu0 %v4711_v43  ;;  %v5336_v35 = vrot.slane %v755_v24, %v5330_v28 }
  0x64   : > { %1026 = vmatprep.subr.bf16.mxu0 %v4716_v44  ;;  %1440 = vmatpush1.bf16.msra.mxu1 %v4747_v16  ;;  %v4764_v44 = vld [vmem:[#allocation2 + $0x1d4] ss:$8 sps:$4 sm:$0xff]  }
  0x65   : > { %1441 = vmatprep.subr.bf16.mxu1 %v4752_v17  ;;  %4216 = vmatmul.mubr.msk.f32.gmra.mrb[18].mxu1 %vm294_vm0, %v5226_v27  ;;  %v4761_v27 = vld [vmem:[#allocation2 + $0x1c4] ss:$8 sps:$4 sm:$0xff]  }
  0x66   : > { %4201 = vmatmul.mubr.msk.f32.gmra.mrb[26].mxu0 %vm294_vm0, %v5250_v39  ;;  %655 = vmatprep.mubr.f32.mxu1 %v5070_v0 }
  0x67   : > { %500 = vmatprep.mubr.f32.mxu0 %v5070_v0  ;;  %1027 = vmatpush1.bf16.msra.mxu0 %v4714_v46 }
  0x68   : > { %1028 = vmatprep.subr.bf16.mxu0 %v4719_v51  ;;  %1442 = vmatpush1.bf16.msra.mxu1 %v4750_v20 }
  0x69   : > { %1443 = vmatprep.subr.bf16.mxu1 %v4755_v21  ;;  %4217 = vmatmul.mubr.msk.f32.gmra.mrb[20].mxu1 %vm294_vm0, %v5232_v30  ;;  %v4759_v30 = vld [vmem:[#allocation2 + $0x1c0] ss:$8 sps:$4 sm:$0xff]  }
  0x6a   : > { %4202 = vmatmul.mubr.msk.f32.gmra.mrb[28].mxu0 %vm294_vm0, %v5256_v42  ;;  %661 = vmatprep.mubr.f32.mxu1 %v5070_v0 }
  0x6b   : > { %506 = vmatprep.mubr.f32.mxu0 %v5070_v0  ;;  %1029 = vmatpush1.bf16.msra.mxu0 %v4717_v50 }
  0x6c   : > { %1030 = vmatprep.subr.bf16.mxu0 %v4722_v52  ;;  %1444 = vmatpush1.bf16.msra.mxu1 %v4753_v25 }
  0x6d   : > { %1445 = vmatprep.subr.bf16.mxu1 %v4758_v26  ;;  %4218 = vmatmul.mubr.msk.f32.gmra.mrb[22].mxu1 %vm294_vm0, %v5238_v33  ;;  %v5072_v33 = vmov 0  }
  0x6e   : > { %4203 = vmatmul.mubr.msk.f32.gmra.mrb[30].mxu0 %vm294_vm0, %v5262_v45  ;;  %667 = vmatprep.mubr.f32.mxu1 %v5070_v0 }
  0x6f   : > { %512 = vmatprep.mubr.f32.mxu0 %v5070_v0  ;;  %1031 = vmatpush1.bf16.msra.mxu0 %v4720_v53 }
  0x70   : > { %1446 = vmatpush1.bf16.msra.mxu1 %v4756_v34 }
  0x71   : > { %1447 = vmatprep.subr.bf16.mxu1 %v4761_v27  ;;  %4219 = vmatmul.mubr.msk.f32.gmra.mrb[24].mxu1 %vm294_vm0, %v5244_v36 }
  0x72   : > { %4204 = vmatmul.mubr.msk.f32.gmra.mrb[32].mxu0 %vm294_vm0, %v5268_v47  ;;  %673 = vmatprep.mubr.f32.mxu1 %v5070_v0 }
  0x73   : > { %518 = vmatprep.mubr.f32.mxu0 %v5070_v0 }
  0x74   : > { %1448 = vmatpush1.bf16.msra.mxu1 %v4759_v30 }
  0x75   : > { %1449 = vmatprep.subr.bf16.mxu1 %v4764_v44  ;;  %4220 = vmatmul.mubr.msk.f32.gmra.mrb[26].mxu1 %vm294_vm0, %v5250_v39 }
  0x76   : > { %4205 = vmatmul.mubr.msk.f32.gmra.mrb[34].mxu0 %vm294_vm0, %v5274_v48  ;;  %679 = vmatprep.mubr.f32.mxu1 %v5070_v0 }
  0x77   : > { %524 = vmatprep.mubr.f32.mxu0 %v5070_v0 }
  0x78   : > { %1450 = vmatpush1.bf16.msra.mxu1 %v4762_v54 }
  0x79   : > { %4221 = vmatmul.mubr.msk.f32.gmra.mrb[28].mxu1 %vm294_vm0, %v5256_v42 }
  0x7a   : > { %4206 = vmatmul.mubr.msk.f32.gmra.mrb[36].mxu0 %vm294_vm0, %v5280_v49  ;;  %685 = vmatprep.mubr.f32.mxu1 %v5070_v0 }
  0x7d   : > { %4222 = vmatmul.mubr.msk.f32.gmra.mrb[30].mxu1 %vm294_vm0, %v5262_v45 }
  0x7e   : > { %691 = vmatprep.mubr.f32.mxu1 %v5070_v0 }
  0x81   : > { %4223 = vmatmul.mubr.msk.f32.gmra.mrb[32].mxu1 %vm294_vm0, %v5268_v47 }
  0x82   : > { %697 = vmatprep.mubr.f32.mxu1 %v5070_v0 }
  0x85   : > { %4224 = vmatmul.mubr.msk.f32.gmra.mrb[34].mxu1 %vm294_vm0, %v5274_v48 }
  0x86   : > { %703 = vmatprep.mubr.f32.mxu1 %v5070_v0 }
  0x89   : > { %4225 = vmatmul.mubr.msk.f32.gmra.mrb[36].mxu1 %vm294_vm0, %v5280_v49 }
 0x105   : > { %v418_v29 = vpop.f32.mrb[0].mxu0 }
 0x106   : > { %v420_v32 = vpop.f32.mrb[1].mxu0 }
 0x109   : > { %v424_v37 = vpop.f32.mrb[2].mxu0 }
 0x10a   : > { %v711_v40 = vpack.c.bf16 %v424_v37, %v418_v29  ;;  %v426_v41 = vpop.f32.mrb[3].mxu0 }
 0x10b   : > { %v712_v43 = vpack.c.bf16 %v426_v41, %v420_v32 }
 0x10c   : > { %v768_v46 = vadd.bf16 %v5336_v35, %v711_v40 }
 0x10d   : > { %v769_v50 = vadd.bf16 %v5339_v38, %v712_v43  ;;  %v430_v51 = vpop.f32.mrb[4].mxu0 }
 0x10e   : > { %v432_v52 = vpop.f32.mrb[5].mxu0  ;;  %v788_v55 = vmax.bf16 %v5072_v33, %v768_v46 }
 0x10f   : > { %v789_v53 = vmax.bf16 %v5072_v33, %v769_v50 }
 0x111   : > { %v436_v56 = vpop.f32.mrb[6].mxu0  ;;  %1032 = vmatprep.mubr.bf16.mxu0 %v789_v53 }
 0x112   : > { %v713_v57 = vpack.c.bf16 %v436_v56, %v430_v51  ;;  %v438_v58 = vpop.f32.mrb[7].mxu0  ;;  %1033 = vmatmul.mubr.bf16.vlgmr.msra.gmra.mrb[40].mxu0 %v788_v55 }
 0x113   : > { %v714_v36 = vpack.c.bf16 %v438_v58, %v432_v52 }
 0x114   : > { %v770_v59 = vadd.bf16 %v5336_v35, %v713_v57 }
 0x115   : > { %v771_v60 = vadd.bf16 %v5339_v38, %v714_v36  ;;  %v442_v61 = vpop.f32.mrb[8].mxu0 }
 0x116   : > { %v444_v62 = vpop.f32.mrb[9].mxu0  ;;  %v790_v63 = vmax.bf16 %v5072_v33, %v770_v59 }
 0x117   : > { %v791_v39 = vmax.bf16 %v5072_v33, %v771_v60 }
 0x119   : > { %v448_v1 = vpop.f32.mrb[10].mxu0  ;;  %1042 = vmatprep.mubr.bf16.mxu0 %v791_v39 }
 0x11a   : > { %v715_v2 = vpack.c.bf16 %v448_v1, %v442_v61  ;;  %v450_v3 = vpop.f32.mrb[11].mxu0  ;;  %1043 = vmatmul.mubr.bf16.gmra.mrb[44].mxu0 %v790_v63 }
 0x11b   : > { %v716_v4 = vpack.c.bf16 %v450_v3, %v444_v62 }
 0x11c   : > { %v772_v42 = vadd.bf16 %v5336_v35, %v715_v2 }
 0x11d   : > { %v773_v5 = vadd.bf16 %v5339_v38, %v716_v4  ;;  %v454_v6 = vpop.f32.mrb[12].mxu0 }
 0x11e   : > { %v456_v7 = vpop.f32.mrb[13].mxu0  ;;  %v792_v45 = vmax.bf16 %v5072_v33, %v772_v42 }
 0x11f   : > { %v793_v8 = vmax.bf16 %v5072_v33, %v773_v5 }
 0x121   : > { %v460_v9 = vpop.f32.mrb[14].mxu0  ;;  %1052 = vmatprep.mubr.bf16.mxu0 %v793_v8 }
 0x122   : > { %v717_v10 = vpack.c.bf16 %v460_v9, %v454_v6  ;;  %v462_v11 = vpop.f32.mrb[15].mxu0  ;;  %1053 = vmatmul.mubr.bf16.gmra.mrb[48].mxu0 %v792_v45 }
 0x123   : > { %v718_v12 = vpack.c.bf16 %v462_v11, %v456_v7 }
 0x124   : > { %v774_v47 = vadd.bf16 %v5336_v35, %v717_v10 }
 0x125   : > { %v775_v13 = vadd.bf16 %v5339_v38, %v718_v12  ;;  %v466_v14 = vpop.f32.mrb[16].mxu0 }
 0x126   : > { %v468_v15 = vpop.f32.mrb[17].mxu0  ;;  %v794_v17 = vmax.bf16 %v5072_v33, %v774_v47 }
 0x127   : > { %v795_v16 = vmax.bf16 %v5072_v33, %v775_v13 }
 0x129   : > { %v472_v48 = vpop.f32.mrb[18].mxu0  ;;  %1062 = vmatprep.mubr.bf16.mxu0 %v795_v16  ;;  %v4767_v16 = vld [vmem:[#allocation2 + $0x1e4] ss:$8 sps:$4 sm:$0xff]  }
 0x12a   : > { %v719_v19 = vpack.c.bf16 %v472_v48, %v466_v14  ;;  %v474_v20 = vpop.f32.mrb[19].mxu0  ;;  %1063 = vmatmul.mubr.bf16.gmra.mrb[52].mxu0 %v794_v17  ;;  %1451 = vmatprep.subr.bf16.mxu1 %v4767_v16  ;;  %v4770_v17 = vld [vmem:[#allocation2 + $0x1f4] ss:$8 sps:$4 sm:$0xff]   ;;  %v4768_v48 = vld [vmem:[#allocation2 + $0x1f0] ss:$8 sps:$4 sm:$0xff]  }
 0x12b   : > { %v720_v0 = vpack.c.bf16 %v474_v20, %v468_v15  ;;  %v4765_v15 = vld [vmem:[#allocation2 + $0x1e0] ss:$8 sps:$4 sm:$0xff]   ;;  %v4773_v20 = vld [vmem:[#allocation2 + $0x204] ss:$8 sps:$4 sm:$0xff]  }
 0x12c   : > { %v776_v21 = vadd.bf16 %v5336_v35, %v719_v19  ;;  %1452 = vmatpush1.bf16.msra.mxu1 %v4765_v15  ;;  %v5404_v19 = vpop.f32.mrb[0].mxu1  ;;  %1846 = vmatprep.subr.bf16.mxu0 %v4773_v20  ;;  %v4809_v15 = vld [vmem:[#allocation2 + $0x2c4] ss:$8 sps:$4 sm:$0xff]  }
 0x12d   : > { %v777_v22 = vadd.bf16 %v5339_v38, %v720_v0  ;;  %v478_v23 = vpop.f32.mrb[20].mxu0  ;;  %1453 = vmatprep.subr.bf16.mxu1 %v4770_v17  ;;  %v5406_v0 = vpop.f32.mrb[1].mxu1 }
 0x12e   : > { %v480_v25 = vpop.f32.mrb[21].mxu0  ;;  %v796_v49 = vmax.bf16 %v5072_v33, %v776_v21  ;;  %v5408_v21 = vpop.f32.mrb[2].mxu1 }
 0x12f   : > { %v797_v26 = vmax.bf16 %v5072_v33, %v777_v22  ;;  %v5410_v22 = vpop.f32.mrb[3].mxu1 }
 0x130   : > { %1454 = vmatpush1.bf16.msra.mxu1 %v4768_v48 }
 0x131   : > { %v484_v24 = vpop.f32.mrb[22].mxu0  ;;  %1072 = vmatprep.mubr.bf16.mxu0 %v797_v26  ;;  %v4779_v26 = vld [vmem:[#allocation2 + $0x224] ss:$8 sps:$4 sm:$0xff]  }
 0x132   : > { %v721_v29 = vpack.c.bf16 %v484_v24, %v478_v23  ;;  %v486_v31 = vpop.f32.mrb[23].mxu0  ;;  %1073 = vmatmul.mubr.bf16.gmra.mrb[56].mxu0 %v796_v49  ;;  %v4774_v23 = vld [vmem:[#allocation2 + $0x210] ss:$8 sps:$4 sm:$0xff]  }
 0x133   : > { %v722_v32 = vpack.c.bf16 %v486_v31, %v480_v25  ;;  %v5412_v25 = vpop.f32.mrb[4].mxu1  ;;  %v4777_v31 = vld [vmem:[#allocation2 + $0x220] ss:$8 sps:$4 sm:$0xff]  }
 0x134   : > { %v778_v34 = vadd.bf16 %v5336_v35, %v721_v29  ;;  %v5414_v49 = vpop.f32.mrb[5].mxu1 }
 0x135   : > { %v779_v27 = vadd.bf16 %v5339_v38, %v722_v32  ;;  %v490_v37 = vpop.f32.mrb[24].mxu0  ;;  %v5416_v24 = vpop.f32.mrb[6].mxu1 }
 0x136   : > { %v492_v40 = vpop.f32.mrb[25].mxu0  ;;  %v798_v30 = vmax.bf16 %v5072_v33, %v778_v34  ;;  %v5418_v29 = vpop.f32.mrb[7].mxu1  ;;  %v4782_v34 = vld [vmem:[#allocation2 + $0x234] ss:$8 sps:$4 sm:$0xff]  }
 0x137   : > { %v799_v41 = vmax.bf16 %v5072_v33, %v779_v27  ;;  %v5420_v32 = vpop.f32.mrb[8].mxu1 }
 0x138   : > { %v5422_v27 = vpop.f32.mrb[9].mxu1 }
 0x139   : > { %v496_v43 = vpop.f32.mrb[26].mxu0  ;;  %1082 = vmatprep.mubr.bf16.mxu0 %v799_v41  ;;  %v4785_v41 = vld [vmem:[#allocation2 + $0x244] ss:$8 sps:$4 sm:$0xff]  }
 0x13a   : > { %v723_v44 = vpack.c.bf16 %v496_v43, %v490_v37  ;;  %v498_v46 = vpop.f32.mrb[27].mxu0  ;;  %1083 = vmatmul.mubr.bf16.gmra.mrb[60].mxu0 %v798_v30  ;;  %v4780_v37 = vld [vmem:[#allocation2 + $0x230] ss:$8 sps:$4 sm:$0xff]   ;;  %v4783_v43 = vld [vmem:[#allocation2 + $0x240] ss:$8 sps:$4 sm:$0xff]  }
 0x13b   : > { %v724_v50 = vpack.c.bf16 %v498_v46, %v492_v40  ;;  %v5424_v40 = vpop.f32.mrb[10].mxu1  ;;  %v4788_v46 = vld [vmem:[#allocation2 + $0x254] ss:$8 sps:$4 sm:$0xff]  }
 0x13c   : > { %v780_v51 = vadd.bf16 %v5336_v35, %v723_v44  ;;  %v5426_v30 = vpop.f32.mrb[11].mxu1 }
 0x13d   : > { %v781_v52 = vadd.bf16 %v5339_v38, %v724_v50  ;;  %v502_v53 = vpop.f32.mrb[28].mxu0  ;;  %v5428_v44 = vpop.f32.mrb[12].mxu1 }
 0x13e   : > { %v504_v54 = vpop.f32.mrb[29].mxu0  ;;  %v800_v56 = vmax.bf16 %v5072_v33, %v780_v51  ;;  %v5430_v50 = vpop.f32.mrb[13].mxu1  ;;  %v4786_v51 = vld [vmem:[#allocation2 + $0x250] ss:$8 sps:$4 sm:$0xff]  }
 0x13f   : > { %v801_v55 = vmax.bf16 %v5072_v33, %v781_v52  ;;  %v5432_v52 = vpop.f32.mrb[14].mxu1 }
 0x141   : > { %v508_v57 = vpop.f32.mrb[30].mxu0  ;;  %1092 = vmatprep.mubr.bf16.mxu0 %v801_v55  ;;  %v4789_v55 = vld [vmem:[#allocation2 + $0x260] ss:$8 sps:$4 sm:$0xff]  }
 0x142   : > { %v725_v58 = vpack.c.bf16 %v508_v57, %v502_v53  ;;  %v510_v36 = vpop.f32.mrb[31].mxu0  ;;  %1093 = vmatmul.mubr.bf16.gmra.mrb[64].mxu0 %v800_v56  ;;  %v4791_v53 = vld [vmem:[#allocation2 + $0x264] ss:$8 sps:$4 sm:$0xff]   ;;  %v4794_v57 = vld [vmem:[#allocation2 + $0x274] ss:$8 sps:$4 sm:$0xff]  }
 0x143   : > { %v726_v59 = vpack.c.bf16 %v510_v36, %v504_v54  ;;  %v5434_v54 = vpop.f32.mrb[15].mxu1  ;;  %v4792_v36 = vld [vmem:[#allocation2 + $0x270] ss:$8 sps:$4 sm:$0xff]  }
 0x144   : > { %v782_v60 = vadd.bf16 %v5336_v35, %v725_v58  ;;  %v5436_v56 = vpop.f32.mrb[16].mxu1 }
 0x145   : > { %v783_v61 = vadd.bf16 %v5339_v38, %v726_v59  ;;  %v514_v62 = vpop.f32.mrb[32].mxu0  ;;  %v5438_v58 = vpop.f32.mrb[17].mxu1 }
 0x146   : > { %v516_v39 = vpop.f32.mrb[33].mxu0  ;;  %v802_v1 = vmax.bf16 %v5072_v33, %v782_v60  ;;  %v5440_v59 = vpop.f32.mrb[18].mxu1  ;;  %v4797_v60 = vld [vmem:[#allocation2 + $0x284] ss:$8 sps:$4 sm:$0xff]  }
 0x147   : > { %v803_v63 = vmax.bf16 %v5072_v33, %v783_v61  ;;  %v5442_v61 = vpop.f32.mrb[19].mxu1 }
 0x149   : > { %v520_v2 = vpop.f32.mrb[34].mxu0  ;;  %1102 = vmatprep.mubr.bf16.mxu0 %v803_v63  ;;  %v5447_v63 = vpop.f32.mrb[20].mxu1 }
 0x14a   : > { %v727_v3 = vpack.c.bf16 %v520_v2, %v514_v62  ;;  %v522_v4 = vpop.f32.mrb[35].mxu0  ;;  %1103 = vmatmul.mubr.bf16.gmra.mrb[68].mxu0 %v802_v1  ;;  %v4260_v62 = vld.sshfl [vmem:[%s5969_s3 + $0x2] sm:$0x11 pattern:$0x75316420]  ;;  %v5449_v2 = vpop.f32.mrb[21].mxu1 }
 0x14b   : > { %v728_v42 = vpack.c.bf16 %v522_v4, %v516_v39  ;;  %v4795_v39 = vld [vmem:[#allocation2 + $0x280] ss:$8 sps:$4 sm:$0xff]   ;;  %v4800_v1 = vld [vmem:[#allocation2 + $0x294] ss:$8 sps:$4 sm:$0xff]   ;;  %v4798_v4 = vld [vmem:[#allocation2 + $0x290] ss:$8 sps:$4 sm:$0xff]  }
 0x14c   : > { %v784_v5 = vadd.bf16 %v5336_v35, %v727_v3  ;;  %v1161_v3 = vcombine.high %v4260_v62, %v4260_v62 }
 0x14d   : > { %v785_v6 = vadd.bf16 %v5339_v38, %v728_v42  ;;  %v526_v7 = vpop.f32.mrb[36].mxu0  ;;  %v5451_v42 = vpop.f32.mrb[22].mxu1 }
 0x14e   : > { %v729_v8 = vpack.c.bf16 %v526_v7, %v526_v7  ;;  %v528_v45 = vpop.f32.mrb[37].mxu0  ;;  %v804_v11 = vmax.bf16 %v5072_v33, %v784_v5  ;;  %v4803_v5 = vld [vmem:[#allocation2 + $0x2a4] ss:$8 sps:$4 sm:$0xff]   ;;  %v1168_v7 = vrot.slane %v4260_v62, %v5320_v18 }
 0x14f   : > { %v805_v9 = vmax.bf16 %v5072_v33, %v785_v6  ;;  %v730_v10 = vpack.c.bf16 %v528_v45, %v528_v45  ;;  %v5453_v6 = vpop.f32.mrb[23].mxu1  ;;  %v4801_v45 = vld [vmem:[#allocation2 + $0x2a0] ss:$8 sps:$4 sm:$0xff]  }
 0x150   : > { %v786_v47 = vadd.bf16 %v5336_v35, %v729_v8  ;;  %v4776_v35 = vld [vmem:[#allocation2 + $0x214] ss:$8 sps:$4 sm:$0xff]   ;;  %v1175_v8 = vrot.slane %v1161_v3, %v5320_v18 }
 0x151   : > { %1112 = vmatprep.mubr.bf16.mxu0 %v805_v9  ;;  %v787_v12 = vadd.bf16 %v5339_v38, %v730_v10  ;;  %v4771_v38 = vld [vmem:[#allocation2 + $0x200] ss:$8 sps:$4 sm:$0xff]   ;;  %v5457_v9 = vpop.f32.mrb[24].mxu1  ;;  %v4806_v10 = vld [vmem:[#allocation2 + $0x2b4] ss:$8 sps:$4 sm:$0xff]  }
 0x152   : > { %1113 = vmatmul.mubr.bf16.gmra.mrb[72].mxu0 %v804_v11  ;;  %v806_v14 = vmax.bf16 %v5072_v33, %v786_v47  ;;  %v5459_v11 = vpop.f32.mrb[25].mxu1  ;;  %v1184_v47 = vpack.i.b16 %v1175_v8, %v1175_v8 }
 0x153   : > { %v807_v13 = vmax.bf16 %v5072_v33, %v787_v12  ;;  %1847 = vmatpush1.bf16.msra.mxu0 %v4771_v38  ;;  %v1177_v12 = vpack.i.b16 %v1168_v7, %v1168_v7 }
 0x154   : > { %1848 = vmatprep.subr.bf16.mxu0 %v4776_v35  ;;  %v5469_v35 = vrot.slane %v1184_v47, %v5330_v28 }
 0x155   : > { %1122 = vmatprep.mubr.bf16.mxu0 %v807_v13  ;;  %v4804_v13 = vld [vmem:[#allocation2 + $0x2b0] ss:$8 sps:$4 sm:$0xff]   ;;  %v5466_v38 = vrot.slane %v1177_v12, %v5330_v28 }
 0x157   : > { %1849 = vmatpush1.bf16.msra.mxu0 %v4774_v23  ;;  %v4807_v23 = vld [vmem:[#allocation2 + $0x2c0] ss:$8 sps:$4 sm:$0xff]  }
 0x158   : > { %1850 = vmatprep.subr.bf16.mxu0 %v4779_v26 }
 0x15a   : > { %1123 = vmatmul.mubr.bf16.gmra.mrb[76].mxu0 %v806_v14  ;;  %v5461_v14 = vpop.f32.mrb[26].mxu1 }
 0x15b   : > { %1851 = vmatpush1.bf16.msra.mxu0 %v4777_v31  ;;  %v5463_v17 = vpop.f32.mrb[27].mxu1 }
 0x15c   : > { %1852 = vmatprep.subr.bf16.mxu0 %v4782_v34  ;;  %v5471_v34 = vpop.f32.mrb[28].mxu1 }
 0x15f   : > { %1853 = vmatpush1.bf16.msra.mxu0 %v4780_v37  ;;  %v4812_v37 = vld [vmem:[#allocation2 + $0x2d4] ss:$8 sps:$4 sm:$0xff]  }
 0x160   : > { %1854 = vmatprep.subr.bf16.mxu0 %v4785_v41 }
 0x163   : > { %1855 = vmatpush1.bf16.msra.mxu0 %v4783_v43  ;;  %v5473_v43 = vpop.f32.mrb[29].mxu1 }
 0x164   : > { %1856 = vmatprep.subr.bf16.mxu0 %v4788_v46 }
 0x167   : > { %1857 = vmatpush1.bf16.msra.mxu0 %v4786_v51 }
 0x168   : > { %1858 = vmatprep.subr.bf16.mxu0 %v4791_v53  ;;  %v4810_v53 = vld [vmem:[#allocation2 + $0x2d0] ss:$8 sps:$4 sm:$0xff]  }
 0x16b   : > { %1859 = vmatpush1.bf16.msra.mxu0 %v4789_v55  ;;  %v5477_v55 = vpop.f32.mrb[30].mxu1 }
 0x16c   : > { %1860 = vmatprep.subr.bf16.mxu0 %v4794_v57 }
 0x16f   : > { %1861 = vmatpush1.bf16.msra.mxu0 %v4792_v36 }
 0x170   : > { %1862 = vmatprep.subr.bf16.mxu0 %v4797_v60  ;;  %v5480_v60 = vpop.f32.mrb[31].mxu1 }
 0x173   : > { %1863 = vmatpush1.bf16.msra.mxu0 %v4795_v39 }
 0x174   : > { %1864 = vmatprep.subr.bf16.mxu0 %v4800_v1 }
 0x177   : > { %1865 = vmatpush1.bf16.msra.mxu0 %v4798_v4 }
 0x178   : > { %1866 = vmatprep.subr.bf16.mxu0 %v4803_v5  ;;  %v5483_v5 = vpop.f32.mrb[32].mxu1 }
 0x179   : > { %v5485_v8 = vpop.f32.mrb[33].mxu1 }
 0x17a   : > { %v5489_v12 = vpop.f32.mrb[34].mxu1 }
 0x17b   : > { %1867 = vmatpush1.bf16.msra.mxu0 %v4801_v45 }
 0x17c   : > { %1868 = vmatprep.subr.bf16.mxu0 %v4806_v10 }
 0x17f   : > { %1869 = vmatpush1.bf16.msra.mxu0 %v4804_v13 }
 0x180   : > { %1870 = vmatprep.subr.bf16.mxu0 %v4809_v15  ;;  %v5492_v15 = vpop.f32.mrb[35].mxu1 }
 0x183   : > { %1871 = vmatpush1.bf16.msra.mxu0 %v4807_v23 }
 0x184   : > { %1872 = vmatprep.subr.bf16.mxu0 %v4812_v37 }
 0x187   : > { %1873 = vmatpush1.bf16.msra.mxu0 %v4810_v53 }
 0x1e5   : > { %v1034_v16 = vpop.f32.mrb[40].mxu0 }
 0x1e6   : > { %v1036_v48 = vpop.f32.mrb[41].mxu0 }
 0x1e7   : > { %v1038_v20 = vpop.f32.mrb[42].mxu0 }
 0x1e8   : > { %v1133_v26 = vpack.c.bf16 %v1038_v20, %v1034_v16  ;;  %v1040_v31 = vpop.f32.mrb[43].mxu0 }
 0x1e9   : > { %v1134_v41 = vpack.c.bf16 %v1040_v31, %v1036_v48  ;;  %v5495_v31 = vpop.f32.mrb[36].mxu1 }
 0x1ea   : > { %v1190_v46 = vadd.bf16 %v5466_v38, %v1133_v26 }
 0x1eb   : > { %v1191_v51 = vadd.bf16 %v5469_v35, %v1134_v41  ;;  %v5497_v41 = vpop.f32.mrb[37].mxu1 }
 0x1ec   : > { %v1210_v62 = vmax.bf16 %v5072_v33, %v1190_v46 }
 0x1ed   : > { %v1044_v57 = vpop.f32.mrb[44].mxu0  ;;  %v1211_v36 = vmax.bf16 %v5072_v33, %v1191_v51 }
 0x1ee   : > { %v1046_v39 = vpop.f32.mrb[45].mxu0 }
 0x1ef   : > { %v1048_v1 = vpop.f32.mrb[46].mxu0  ;;  %1455 = vmatprep.mubr.bf16.mxu1 %v1211_v36 }
 0x1f0   : > { %v1135_v3 = vpack.c.bf16 %v1048_v1, %v1044_v57  ;;  %v1050_v4 = vpop.f32.mrb[47].mxu0  ;;  %1456 = vmatmul.mubr.bf16.vlgmr.msra.gmra.mrb[40].mxu1 %v1210_v62 }
 0x1f1   : > { %v1136_v7 = vpack.c.bf16 %v1050_v4, %v1046_v39 }
 0x1f2   : > { %v1192_v45 = vadd.bf16 %v5466_v38, %v1135_v3 }
 0x1f3   : > { %v1193_v10 = vadd.bf16 %v5469_v35, %v1136_v7 }
 0x1f4   : > { %v1212_v48 = vmax.bf16 %v5072_v33, %v1192_v45 }
 0x1f5   : > { %v1054_v47 = vpop.f32.mrb[48].mxu0  ;;  %v1213_v13 = vmax.bf16 %v5072_v33, %v1193_v10 }
 0x1f6   : > { %v1056_v16 = vpop.f32.mrb[49].mxu0 }
 0x1f7   : > { %v1058_v20 = vpop.f32.mrb[50].mxu0  ;;  %1465 = vmatprep.mubr.bf16.mxu1 %v1213_v13 }
 0x1f8   : > { %v1137_v23 = vpack.c.bf16 %v1058_v20, %v1054_v47  ;;  %v1060_v26 = vpop.f32.mrb[51].mxu0  ;;  %1466 = vmatmul.mubr.bf16.gmra.mrb[44].mxu1 %v1212_v48 }
 0x1f9   : > { %v1138_v37 = vpack.c.bf16 %v1060_v26, %v1056_v16 }
 0x1fa   : > { %v1194_v46 = vadd.bf16 %v5466_v38, %v1137_v23 }
 0x1fb   : > { %v1195_v51 = vadd.bf16 %v5469_v35, %v1138_v37 }
 0x1fc   : > { %v1214_v62 = vmax.bf16 %v5072_v33, %v1194_v46 }
 0x1fd   : > { %v1064_v53 = vpop.f32.mrb[52].mxu0  ;;  %v1215_v57 = vmax.bf16 %v5072_v33, %v1195_v51 }
 0x1fe   : > { %v1066_v36 = vpop.f32.mrb[53].mxu0 }
 0x1ff   : > { %v1068_v39 = vpop.f32.mrb[54].mxu0  ;;  %1475 = vmatprep.mubr.bf16.mxu1 %v1215_v57 }
 0x200   : > { %v1139_v1 = vpack.c.bf16 %v1068_v39, %v1064_v53  ;;  %v1070_v3 = vpop.f32.mrb[55].mxu0  ;;  %1476 = vmatmul.mubr.bf16.gmra.mrb[48].mxu1 %v1214_v62 }
 0x201   : > { %v1140_v4 = vpack.c.bf16 %v1070_v3, %v1066_v36 }
 0x202   : > { %v1196_v7 = vadd.bf16 %v5466_v38, %v1139_v1 }
 0x203   : > { %v1197_v45 = vadd.bf16 %v5469_v35, %v1140_v4 }
 0x204   : > { %v1216_v16 = vmax.bf16 %v5072_v33, %v1196_v7 }
 0x205   : > { %v1074_v10 = vpop.f32.mrb[56].mxu0  ;;  %v1217_v47 = vmax.bf16 %v5072_v33, %v1197_v45 }
 0x206   : > { %v1076_v13 = vpop.f32.mrb[57].mxu0 }
 0x207   : > { %v1078_v48 = vpop.f32.mrb[58].mxu0  ;;  %1485 = vmatprep.mubr.bf16.mxu1 %v1217_v47 }
 0x208   : > { %v1141_v20 = vpack.c.bf16 %v1078_v48, %v1074_v10  ;;  %v1080_v23 = vpop.f32.mrb[59].mxu0  ;;  %1486 = vmatmul.mubr.bf16.gmra.mrb[52].mxu1 %v1216_v16 }
 0x209   : > { %v1142_v26 = vpack.c.bf16 %v1080_v23, %v1076_v13 }
 0x20a   : > { %v1198_v37 = vadd.bf16 %v5466_v38, %v1141_v20 }
 0x20b   : > { %v1199_v46 = vadd.bf16 %v5469_v35, %v1142_v26 }
 0x20c   : > { %v1218_v36 = vmax.bf16 %v5072_v33, %v1198_v37 }
 0x20d   : > { %v1084_v51 = vpop.f32.mrb[60].mxu0  ;;  %v1219_v53 = vmax.bf16 %v5072_v33, %v1199_v46 }
 0x20e   : > { %v1086_v57 = vpop.f32.mrb[61].mxu0 }
 0x20f   : > { %v1088_v62 = vpop.f32.mrb[62].mxu0  ;;  %1495 = vmatprep.mubr.bf16.mxu1 %v1219_v53 }
 0x210   : > { %v1143_v39 = vpack.c.bf16 %v1088_v62, %v1084_v51  ;;  %v1090_v1 = vpop.f32.mrb[63].mxu0  ;;  %1496 = vmatmul.mubr.bf16.gmra.mrb[56].mxu1 %v1218_v36 }
 0x211   : > { %v1144_v3 = vpack.c.bf16 %v1090_v1, %v1086_v57 }
 0x212   : > { %v1200_v4 = vadd.bf16 %v5466_v38, %v1143_v39 }
 0x213   : > { %v1201_v7 = vadd.bf16 %v5469_v35, %v1144_v3 }
 0x214   : > { %v1220_v13 = vmax.bf16 %v5072_v33, %v1200_v4 }
 0x215   : > { %v1094_v45 = vpop.f32.mrb[64].mxu0  ;;  %v1221_v10 = vmax.bf16 %v5072_v33, %v1201_v7 }
 0x216   : > { %v1096_v47 = vpop.f32.mrb[65].mxu0 }
 0x217   : > { %v1098_v16 = vpop.f32.mrb[66].mxu0  ;;  %1505 = vmatprep.mubr.bf16.mxu1 %v1221_v10 }
 0x218   : > { %v1145_v48 = vpack.c.bf16 %v1098_v16, %v1094_v45  ;;  %v1100_v20 = vpop.f32.mrb[67].mxu0  ;;  %1506 = vmatmul.mubr.bf16.gmra.mrb[60].mxu1 %v1220_v13 }
 0x219   : > { %v1146_v23 = vpack.c.bf16 %v1100_v20, %v1096_v47 }
 0x21a   : > { %v1202_v26 = vadd.bf16 %v5466_v38, %v1145_v48 }
 0x21b   : > { %v1203_v37 = vadd.bf16 %v5469_v35, %v1146_v23 }
 0x21c   : > { %v1222_v57 = vmax.bf16 %v5072_v33, %v1202_v26 }
 0x21d   : > { %v1104_v46 = vpop.f32.mrb[68].mxu0  ;;  %v1223_v51 = vmax.bf16 %v5072_v33, %v1203_v37 }
 0x21e   : > { %v1106_v53 = vpop.f32.mrb[69].mxu0 }
 0x21f   : > { %v1108_v36 = vpop.f32.mrb[70].mxu0  ;;  %1515 = vmatprep.mubr.bf16.mxu1 %v1223_v51 }
 0x220   : > { %v1147_v62 = vpack.c.bf16 %v1108_v36, %v1104_v46  ;;  %v1110_v39 = vpop.f32.mrb[71].mxu0  ;;  %1516 = vmatmul.mubr.bf16.gmra.mrb[64].mxu1 %v1222_v57 }
 0x221   : > { %v1148_v1 = vpack.c.bf16 %v1110_v39, %v1106_v53 }
 0x222   : > { %v1204_v3 = vadd.bf16 %v5466_v38, %v1147_v62 }
 0x223   : > { %v1205_v4 = vadd.bf16 %v5469_v35, %v1148_v1 }
 0x224   : > { %v1224_v47 = vmax.bf16 %v5072_v33, %v1204_v3 }
 0x225   : > { %v1114_v7 = vpop.f32.mrb[72].mxu0  ;;  %v1225_v45 = vmax.bf16 %v5072_v33, %v1205_v4 }
 0x226   : > { %v1116_v10 = vpop.f32.mrb[73].mxu0 }
 0x227   : > { %v1118_v13 = vpop.f32.mrb[74].mxu0  ;;  %1525 = vmatprep.mubr.bf16.mxu1 %v1225_v45  ;;  %v4813_v45 = vld [vmem:[#allocation2 + $0x2e0] ss:$8 sps:$4 sm:$0xff]  }
 0x228   : > { %v1149_v16 = vpack.c.bf16 %v1118_v13, %v1114_v7  ;;  %v1120_v48 = vpop.f32.mrb[75].mxu0  ;;  %1526 = vmatmul.mubr.bf16.gmra.mrb[68].mxu1 %v1224_v47  ;;  %v4818_v47 = vld [vmem:[#allocation2 + $0x2f4] ss:$8 sps:$4 sm:$0xff]   ;;  %v4816_v13 = vld [vmem:[#allocation2 + $0x2f0] ss:$8 sps:$4 sm:$0xff]  }
 0x229   : > { %v1150_v20 = vpack.c.bf16 %v1120_v48, %v1116_v10  ;;  %v4815_v10 = vld [vmem:[#allocation2 + $0x2e4] ss:$8 sps:$4 sm:$0xff]  }
 0x22a   : > { %v1206_v23 = vadd.bf16 %v5466_v38, %v1149_v16  ;;  %1874 = vmatprep.subr.bf16.mxu0 %v4815_v10  ;;  %v4819_v16 = vld [vmem:[#allocation2 + $0x300] ss:$8 sps:$4 sm:$0xff]   ;;  %v4821_v48 = vld [vmem:[#allocation2 + $0x304] ss:$8 sps:$4 sm:$0xff]  }
 0x22b   : > { %v1207_v26 = vadd.bf16 %v5469_v35, %v1150_v20  ;;  %1875 = vmatpush1.bf16.msra.mxu0 %v4813_v45  ;;  %2269 = vmatprep.subr.bf16.mxu1 %v4821_v48  ;;  %v4827_v20 = vld [vmem:[#allocation2 + $0x324] ss:$8 sps:$4 sm:$0xff]   ;;  %v4848_v45 = vld [vmem:[#allocation2 + $0x394] ss:$8 sps:$4 sm:$0xff]  }
 0x22c   : > { %v1226_v51 = vmax.bf16 %v5072_v33, %v1206_v23  ;;  %1876 = vmatprep.subr.bf16.mxu0 %v4818_v47  ;;  %2270 = vmatpush1.bf16.msra.mxu1 %v4819_v16  ;;  %v4825_v23 = vld [vmem:[#allocation2 + $0x320] ss:$8 sps:$4 sm:$0xff]   ;;  %v4846_v47 = vld [vmem:[#allocation2 + $0x390] ss:$8 sps:$4 sm:$0xff]  }
 0x22d   : > { %v1227_v37 = vmax.bf16 %v5072_v33, %v1207_v26  ;;  %v1124_v46 = vpop.f32.mrb[76].mxu0  ;;  %v4830_v26 = vld [vmem:[#allocation2 + $0x334] ss:$8 sps:$4 sm:$0xff]  }
 0x22e   : > { %v1151_v53 = vpack.c.bf16 %v1124_v46, %v1124_v46  ;;  %v1126_v57 = vpop.f32.mrb[77].mxu0  ;;  %v4833_v46 = vld [vmem:[#allocation2 + $0x344] ss:$8 sps:$4 sm:$0xff]  }
 0x22f   : > { %1535 = vmatprep.mubr.bf16.mxu1 %v1227_v37  ;;  %v1152_v36 = vpack.c.bf16 %v1126_v57, %v1126_v57  ;;  %v1128_v62 = vpop.f32.mrb[78].mxu0  ;;  %1877 = vmatpush1.bf16.msra.mxu0 %v4816_v13  ;;  %v4828_v37 = vld [vmem:[#allocation2 + $0x330] ss:$8 sps:$4 sm:$0xff]   ;;  %v4851_v13 = vld [vmem:[#allocation2 + $0x3a4] ss:$8 sps:$4 sm:$0xff]  }
 0x230   : > { %1536 = vmatmul.mubr.bf16.gmra.mrb[72].mxu1 %v1226_v51  ;;  %v1208_v39 = vadd.bf16 %v5466_v38, %v1151_v53  ;;  %v1129_v1 = vpop.f32.mrb[79].mxu0  ;;  %v4824_v38 = vld [vmem:[#allocation2 + $0x314] ss:$8 sps:$4 sm:$0xff]   ;;  %v4831_v51 = vld [vmem:[#allocation2 + $0x340] ss:$8 sps:$4 sm:$0xff]  }
 0x231   : > { %v1209_v3 = vadd.bf16 %v5469_v35, %v1152_v36  ;;  %v4822_v35 = vld [vmem:[#allocation2 + $0x310] ss:$8 sps:$4 sm:$0xff]   ;;  %2271 = vmatprep.subr.bf16.mxu1 %v4824_v38  ;;  %v4836_v53 = vld [vmem:[#allocation2 + $0x354] ss:$8 sps:$4 sm:$0xff]   ;;  %v4839_v36 = vld [vmem:[#allocation2 + $0x364] ss:$8 sps:$4 sm:$0xff]  }
 0x232   : > { %v1228_v7 = vmax.bf16 %v5072_v33, %v1208_v39  ;;  %2272 = vmatpush1.bf16.msra.mxu1 %v4822_v35  ;;  %v4834_v57 = vld [vmem:[#allocation2 + $0x350] ss:$8 sps:$4 sm:$0xff]   ;;  %v4837_v62 = vld [vmem:[#allocation2 + $0x360] ss:$8 sps:$4 sm:$0xff]   ;;  %v4842_v39 = vld [vmem:[#allocation2 + $0x374] ss:$8 sps:$4 sm:$0xff]  }
 0x233   : > { %v1229_v4 = vmax.bf16 %v5072_v33, %v1209_v3  ;;  %2273 = vmatprep.subr.bf16.mxu1 %v4827_v20  ;;  %v4840_v1 = vld [vmem:[#allocation2 + $0x370] ss:$8 sps:$4 sm:$0xff]   ;;  %v4845_v3 = vld [vmem:[#allocation2 + $0x384] ss:$8 sps:$4 sm:$0xff]   ;;  %v4849_v38 = vld [vmem:[#allocation2 + $0x3a0] ss:$8 sps:$4 sm:$0xff]  }
 0x234   : > { %v4854_v35 = vld [vmem:[#allocation2 + $0x3b4] ss:$8 sps:$4 sm:$0xff]  }
 0x235   : > { %1545 = vmatprep.mubr.bf16.mxu1 %v1229_v4  ;;  %v4843_v4 = vld [vmem:[#allocation2 + $0x380] ss:$8 sps:$4 sm:$0xff]  }
 0x236   : > { %2274 = vmatpush1.bf16.msra.mxu1 %v4825_v23 }
 0x237   : > { %2275 = vmatprep.subr.bf16.mxu1 %v4830_v26  ;;  %v4852_v26 = vld [vmem:[#allocation2 + $0x3b0] ss:$8 sps:$4 sm:$0xff]  }
 0x238   : > { %1546 = vmatmul.mubr.bf16.gmra.mrb[76].mxu1 %v1228_v7  ;;  %v4294_v7 = vld.sshfl [vmem:[%s5969_s3 + $0x4] sm:$0x11 pattern:$0x75316420] }
 0x239   : > { %v1584_v10 = vcombine.high %v4294_v7, %v4294_v7  ;;  %v1591_v16 = vrot.slane %v4294_v7, %v5320_v18 }
 0x23a   : > { %2276 = vmatpush1.bf16.msra.mxu1 %v4828_v37  ;;  %v4857_v37 = vld [vmem:[#allocation2 + $0x3c4] ss:$8 sps:$4 sm:$0xff]  }
 0x23b   : > { %2277 = vmatprep.subr.bf16.mxu1 %v4833_v46  ;;  %v1598_v48 = vrot.slane %v1584_v10, %v5320_v18  ;;  %v1600_v20 = vpack.i.b16 %v1591_v16, %v1591_v16  ;;  %v4858_v10 = vld [vmem:[#allocation2 + $0x3d0] ss:$8 sps:$4 sm:$0xff]  }
 0x23d   : > { %v1607_v23 = vpack.i.b16 %v1598_v48, %v1598_v48 }
 0x23e   : > { %2278 = vmatpush1.bf16.msra.mxu1 %v4831_v51 }
 0x23f   : > { %2279 = vmatprep.subr.bf16.mxu1 %v4836_v53  ;;  %v5537_v53 = vrot.slane %v1600_v20, %v5330_v28 }
 0x242   : > { %2280 = vmatpush1.bf16.msra.mxu1 %v4834_v57 }
 0x243   : > { %2281 = vmatprep.subr.bf16.mxu1 %v4839_v36  ;;  %v5540_v36 = vrot.slane %v1607_v23, %v5330_v28 }
 0x246   : > { %2282 = vmatpush1.bf16.msra.mxu1 %v4837_v62  ;;  %v4855_v62 = vld [vmem:[#allocation2 + $0x3c0] ss:$8 sps:$4 sm:$0xff]  }
 0x247   : > { %2283 = vmatprep.subr.bf16.mxu1 %v4842_v39 }
 0x24a   : > { %2284 = vmatpush1.bf16.msra.mxu1 %v4840_v1 }
 0x24b   : > { %2285 = vmatprep.subr.bf16.mxu1 %v4845_v3  ;;  %v4860_v3 = vld [vmem:[#allocation2 + $0x3d4] ss:$8 sps:$4 sm:$0xff]  }
 0x24e   : > { %2286 = vmatpush1.bf16.msra.mxu1 %v4843_v4 }
 0x24f   : > { %2287 = vmatprep.subr.bf16.mxu1 %v4848_v45 }
 0x252   : > { %2288 = vmatpush1.bf16.msra.mxu1 %v4846_v47 }
 0x253   : > { %2289 = vmatprep.subr.bf16.mxu1 %v4851_v13 }
 0x256   : > { %2290 = vmatpush1.bf16.msra.mxu1 %v4849_v38 }
 0x257   : > { %2291 = vmatprep.subr.bf16.mxu1 %v4854_v35 }
 0x25a   : > { %2292 = vmatpush1.bf16.msra.mxu1 %v4852_v26 }
 0x25b   : > { %2293 = vmatprep.subr.bf16.mxu1 %v4857_v37 }
 0x25e   : > { %2294 = vmatpush1.bf16.msra.mxu1 %v4855_v62 }
 0x25f   : > { %2295 = vmatprep.subr.bf16.mxu1 %v4860_v3 }
 0x262   : > { %2296 = vmatpush1.bf16.msra.mxu1 %v4858_v10 }
 0x2c3   : > { %v1457_v46 = vpop.f32.mrb[40].mxu1 }
 0x2c4   : > { %v1459_v51 = vpop.f32.mrb[41].mxu1 }
 0x2c5   : > { %v1461_v57 = vpop.f32.mrb[42].mxu1 }
 0x2c6   : > { %v1556_v39 = vpack.c.bf16 %v1461_v57, %v1457_v46  ;;  %v1463_v1 = vpop.f32.mrb[43].mxu1 }
 0x2c7   : > { %v1557_v4 = vpack.c.bf16 %v1463_v1, %v1459_v51 }
 0x2c8   : > { %v1613_v7 = vadd.bf16 %v5537_v53, %v1556_v39 }
 0x2c9   : > { %v1614_v45 = vadd.bf16 %v5540_v36, %v1557_v4 }
 0x2ca   : > { %v1633_v16 = vmax.bf16 %v5072_v33, %v1613_v7 }
 0x2cb   : > { %v1467_v47 = vpop.f32.mrb[44].mxu1  ;;  %v1634_v13 = vmax.bf16 %v5072_v33, %v1614_v45 }
 0x2cc   : > { %v1469_v48 = vpop.f32.mrb[45].mxu1 }
 0x2cd   : > { %v1471_v38 = vpop.f32.mrb[46].mxu1  ;;  %1878 = vmatprep.mubr.bf16.mxu0 %v1634_v13 }
 0x2ce   : > { %v1558_v35 = vpack.c.bf16 %v1471_v38, %v1467_v47  ;;  %v1473_v20 = vpop.f32.mrb[47].mxu1  ;;  %1879 = vmatmul.mubr.bf16.vlgmr.msra.gmra.mrb[80].mxu0 %v1633_v16 }
 0x2cf   : > { %v1559_v23 = vpack.c.bf16 %v1473_v20, %v1469_v48 }
 0x2d0   : > { %v1615_v26 = vadd.bf16 %v5537_v53, %v1558_v35 }
 0x2d1   : > { %v1616_v37 = vadd.bf16 %v5540_v36, %v1559_v23 }
 0x2d2   : > { %v1635_v62 = vmax.bf16 %v5072_v33, %v1615_v26 }
 0x2d3   : > { %v1477_v46 = vpop.f32.mrb[48].mxu1  ;;  %v1636_v51 = vmax.bf16 %v5072_v33, %v1616_v37 }
 0x2d4   : > { %v1479_v57 = vpop.f32.mrb[49].mxu1 }
 0x2d5   : > { %v1481_v39 = vpop.f32.mrb[50].mxu1  ;;  %1888 = vmatprep.mubr.bf16.mxu0 %v1636_v51 }
 0x2d6   : > { %v1560_v1 = vpack.c.bf16 %v1481_v39, %v1477_v46  ;;  %v1483_v3 = vpop.f32.mrb[51].mxu1  ;;  %1889 = vmatmul.mubr.bf16.gmra.mrb[84].mxu0 %v1635_v62 }
 0x2d7   : > { %v1561_v4 = vpack.c.bf16 %v1483_v3, %v1479_v57 }
 0x2d8   : > { %v1617_v7 = vadd.bf16 %v5537_v53, %v1560_v1 }
 0x2d9   : > { %v1618_v45 = vadd.bf16 %v5540_v36, %v1561_v4 }
 0x2da   : > { %v1637_v16 = vmax.bf16 %v5072_v33, %v1617_v7 }
 0x2db   : > { %v1487_v10 = vpop.f32.mrb[52].mxu1  ;;  %v1638_v47 = vmax.bf16 %v5072_v33, %v1618_v45 }
 0x2dc   : > { %v1489_v13 = vpop.f32.mrb[53].mxu1 }
 0x2dd   : > { %v1491_v48 = vpop.f32.mrb[54].mxu1  ;;  %1898 = vmatprep.mubr.bf16.mxu0 %v1638_v47 }
 0x2de   : > { %v1562_v38 = vpack.c.bf16 %v1491_v48, %v1487_v10  ;;  %v1493_v35 = vpop.f32.mrb[55].mxu1  ;;  %1899 = vmatmul.mubr.bf16.gmra.mrb[88].mxu0 %v1637_v16 }
 0x2df   : > { %v1563_v20 = vpack.c.bf16 %v1493_v35, %v1489_v13 }
 0x2e0   : > { %v1619_v23 = vadd.bf16 %v5537_v53, %v1562_v38 }
 0x2e1   : > { %v1620_v26 = vadd.bf16 %v5540_v36, %v1563_v20 }
 0x2e2   : > { %v1639_v57 = vmax.bf16 %v5072_v33, %v1619_v23 }
 0x2e3   : > { %v1497_v37 = vpop.f32.mrb[56].mxu1  ;;  %v1640_v46 = vmax.bf16 %v5072_v33, %v1620_v26 }
 0x2e4   : > { %v1499_v51 = vpop.f32.mrb[57].mxu1 }
 0x2e5   : > { %v1501_v62 = vpop.f32.mrb[58].mxu1  ;;  %1908 = vmatprep.mubr.bf16.mxu0 %v1640_v46 }
 0x2e6   : > { %v1564_v39 = vpack.c.bf16 %v1501_v62, %v1497_v37  ;;  %v1503_v1 = vpop.f32.mrb[59].mxu1  ;;  %1909 = vmatmul.mubr.bf16.gmra.mrb[92].mxu0 %v1639_v57 }
 0x2e7   : > { %v1565_v3 = vpack.c.bf16 %v1503_v1, %v1499_v51 }
 0x2e8   : > { %v1621_v4 = vadd.bf16 %v5537_v53, %v1564_v39 }
 0x2e9   : > { %v1622_v7 = vadd.bf16 %v5540_v36, %v1565_v3 }
 0x2ea   : > { %v1641_v13 = vmax.bf16 %v5072_v33, %v1621_v4 }
 0x2eb   : > { %v1507_v45 = vpop.f32.mrb[60].mxu1  ;;  %v1642_v10 = vmax.bf16 %v5072_v33, %v1622_v7 }
 0x2ec   : > { %v1509_v47 = vpop.f32.mrb[61].mxu1 }
 0x2ed   : > { %v1511_v16 = vpop.f32.mrb[62].mxu1  ;;  %1918 = vmatprep.mubr.bf16.mxu0 %v1642_v10 }
 0x2ee   : > { %v1566_v48 = vpack.c.bf16 %v1511_v16, %v1507_v45  ;;  %v1513_v38 = vpop.f32.mrb[63].mxu1  ;;  %1919 = vmatmul.mubr.bf16.gmra.mrb[96].mxu0 %v1641_v13 }
 0x2ef   : > { %v1567_v35 = vpack.c.bf16 %v1513_v38, %v1509_v47 }
 0x2f0   : > { %v1623_v20 = vadd.bf16 %v5537_v53, %v1566_v48 }
 0x2f1   : > { %v1624_v23 = vadd.bf16 %v5540_v36, %v1567_v35 }
 0x2f2   : > { %v1643_v51 = vmax.bf16 %v5072_v33, %v1623_v20 }
 0x2f3   : > { %v1517_v26 = vpop.f32.mrb[64].mxu1  ;;  %v1644_v37 = vmax.bf16 %v5072_v33, %v1624_v23 }
 0x2f4   : > { %v1519_v46 = vpop.f32.mrb[65].mxu1 }
 0x2f5   : > { %v1521_v57 = vpop.f32.mrb[66].mxu1  ;;  %1928 = vmatprep.mubr.bf16.mxu0 %v1644_v37 }
 0x2f6   : > { %v1568_v62 = vpack.c.bf16 %v1521_v57, %v1517_v26  ;;  %v1523_v39 = vpop.f32.mrb[67].mxu1  ;;  %1929 = vmatmul.mubr.bf16.gmra.mrb[100].mxu0 %v1643_v51 }
 0x2f7   : > { %v1569_v1 = vpack.c.bf16 %v1523_v39, %v1519_v46 }
 0x2f8   : > { %v1625_v3 = vadd.bf16 %v5537_v53, %v1568_v62 }
 0x2f9   : > { %v1626_v4 = vadd.bf16 %v5540_v36, %v1569_v1 }
 0x2fa   : > { %v1645_v47 = vmax.bf16 %v5072_v33, %v1625_v3 }
 0x2fb   : > { %v1527_v7 = vpop.f32.mrb[68].mxu1  ;;  %v1646_v45 = vmax.bf16 %v5072_v33, %v1626_v4 }
 0x2fc   : > { %v1529_v10 = vpop.f32.mrb[69].mxu1 }
 0x2fd   : > { %v1531_v13 = vpop.f32.mrb[70].mxu1  ;;  %1938 = vmatprep.mubr.bf16.mxu0 %v1646_v45 }
 0x2fe   : > { %v1570_v16 = vpack.c.bf16 %v1531_v13, %v1527_v7  ;;  %v1533_v48 = vpop.f32.mrb[71].mxu1  ;;  %1939 = vmatmul.mubr.bf16.gmra.mrb[104].mxu0 %v1645_v47 }
 0x2ff   : > { %v1571_v38 = vpack.c.bf16 %v1533_v48, %v1529_v10 }
 0x300   : > { %v1627_v35 = vadd.bf16 %v5537_v53, %v1570_v16 }
 0x301   : > { %v1628_v20 = vadd.bf16 %v5540_v36, %v1571_v38 }
 0x302   : > { %v1647_v46 = vmax.bf16 %v5072_v33, %v1627_v35 }
 0x303   : > { %v1537_v23 = vpop.f32.mrb[72].mxu1  ;;  %v1648_v26 = vmax.bf16 %v5072_v33, %v1628_v20 }
 0x304   : > { %v1539_v37 = vpop.f32.mrb[73].mxu1 }
 0x305   : > { %v1541_v51 = vpop.f32.mrb[74].mxu1  ;;  %1948 = vmatprep.mubr.bf16.mxu0 %v1648_v26  ;;  %v4861_v26 = vld [vmem:[#allocation2 + $0x3e0] ss:$8 sps:$4 sm:$0xff]  }
 0x306   : > { %v1572_v57 = vpack.c.bf16 %v1541_v51, %v1537_v23  ;;  %v1543_v62 = vpop.f32.mrb[75].mxu1  ;;  %1949 = vmatmul.mubr.bf16.gmra.mrb[108].mxu0 %v1647_v46  ;;  %v4866_v46 = vld [vmem:[#allocation2 + $0x3f4] ss:$8 sps:$4 sm:$0xff]   ;;  %v4864_v51 = vld [vmem:[#allocation2 + $0x3f0] ss:$8 sps:$4 sm:$0xff]  }
 0x307   : > { %v1573_v39 = vpack.c.bf16 %v1543_v62, %v1539_v37  ;;  %v4863_v37 = vld [vmem:[#allocation2 + $0x3e4] ss:$8 sps:$4 sm:$0xff]   ;;  %v4872_v62 = vld [vmem:[#allocation2 + $0x414] ss:$8 sps:$4 sm:$0xff]  }
 0x308   : > { %v1629_v1 = vadd.bf16 %v5537_v53, %v1572_v57  ;;  %2297 = vmatprep.subr.bf16.mxu1 %v4863_v37  ;;  %v4867_v57 = vld [vmem:[#allocation2 + $0x400] ss:$8 sps:$4 sm:$0xff]  }
 0x309   : > { %v1630_v3 = vadd.bf16 %v5540_v36, %v1573_v39  ;;  %2298 = vmatpush1.bf16.msra.mxu1 %v4861_v26  ;;  %v4875_v39 = vld [vmem:[#allocation2 + $0x424] ss:$8 sps:$4 sm:$0xff]   ;;  %v4896_v26 = vld [vmem:[#allocation2 + $0x494] ss:$8 sps:$4 sm:$0xff]  }
 0x30a   : > { %v1649_v10 = vmax.bf16 %v5072_v33, %v1629_v1  ;;  %2299 = vmatprep.subr.bf16.mxu1 %v4866_v46  ;;  %v4873_v1 = vld [vmem:[#allocation2 + $0x420] ss:$8 sps:$4 sm:$0xff]   ;;  %v4894_v46 = vld [vmem:[#allocation2 + $0x490] ss:$8 sps:$4 sm:$0xff]  }
 0x30b   : > { %v1650_v4 = vmax.bf16 %v5072_v33, %v1630_v3  ;;  %v1547_v7 = vpop.f32.mrb[76].mxu1  ;;  %v4878_v3 = vld [vmem:[#allocation2 + $0x434] ss:$8 sps:$4 sm:$0xff]  }
 0x30c   : > { %v1574_v45 = vpack.c.bf16 %v1547_v7, %v1547_v7  ;;  %v1549_v47 = vpop.f32.mrb[77].mxu1  ;;  %v4881_v7 = vld [vmem:[#allocation2 + $0x444] ss:$8 sps:$4 sm:$0xff]  }
 0x30d   : > { %1958 = vmatprep.mubr.bf16.mxu0 %v1650_v4  ;;  %v1575_v13 = vpack.c.bf16 %v1549_v47, %v1549_v47  ;;  %v1551_v16 = vpop.f32.mrb[78].mxu1  ;;  %2300 = vmatpush1.bf16.msra.mxu1 %v4864_v51  ;;  %v4876_v4 = vld [vmem:[#allocation2 + $0x430] ss:$8 sps:$4 sm:$0xff]   ;;  %v4899_v51 = vld [vmem:[#allocation2 + $0x4a4] ss:$8 sps:$4 sm:$0xff]  }
 0x30e   : > { %v1631_v48 = vadd.bf16 %v5537_v53, %v1574_v45  ;;  %1959 = vmatmul.mubr.bf16.gmra.mrb[112].mxu0 %v1649_v10  ;;  %v1552_v38 = vpop.f32.mrb[79].mxu1  ;;  %v4869_v53 = vld [vmem:[#allocation2 + $0x404] ss:$8 sps:$4 sm:$0xff]   ;;  %v4879_v45 = vld [vmem:[#allocation2 + $0x440] ss:$8 sps:$4 sm:$0xff]  }
 0x30f   : > { %v1632_v35 = vadd.bf16 %v5540_v36, %v1575_v13  ;;  %2692 = vmatprep.subr.bf16.mxu0 %v4869_v53  ;;  %v4870_v36 = vld [vmem:[#allocation2 + $0x410] ss:$8 sps:$4 sm:$0xff]   ;;  %v4884_v10 = vld [vmem:[#allocation2 + $0x454] ss:$8 sps:$4 sm:$0xff]   ;;  %v4887_v13 = vld [vmem:[#allocation2 + $0x464] ss:$8 sps:$4 sm:$0xff]  }
 0x310   : > { %v1651_v23 = vmax.bf16 %v5072_v33, %v1631_v48  ;;  %2693 = vmatpush1.bf16.msra.mxu0 %v4867_v57  ;;  %v4882_v47 = vld [vmem:[#allocation2 + $0x450] ss:$8 sps:$4 sm:$0xff]   ;;  %v4885_v16 = vld [vmem:[#allocation2 + $0x460] ss:$8 sps:$4 sm:$0xff]   ;;  %v4890_v48 = vld [vmem:[#allocation2 + $0x474] ss:$8 sps:$4 sm:$0xff]  }
 0x311   : > { %v1652_v20 = vmax.bf16 %v5072_v33, %v1632_v35  ;;  %2694 = vmatprep.subr.bf16.mxu0 %v4872_v62  ;;  %v4888_v38 = vld [vmem:[#allocation2 + $0x470] ss:$8 sps:$4 sm:$0xff]   ;;  %v4893_v35 = vld [vmem:[#allocation2 + $0x484] ss:$8 sps:$4 sm:$0xff]   ;;  %v4897_v62 = vld [vmem:[#allocation2 + $0x4a0] ss:$8 sps:$4 sm:$0xff]  }
 0x313   : > { %1968 = vmatprep.mubr.bf16.mxu0 %v1652_v20  ;;  %v4891_v20 = vld [vmem:[#allocation2 + $0x480] ss:$8 sps:$4 sm:$0xff]  }
 0x314   : > { %2695 = vmatpush1.bf16.msra.mxu0 %v4870_v36  ;;  %v4902_v36 = vld [vmem:[#allocation2 + $0x4b4] ss:$8 sps:$4 sm:$0xff]  }
 0x315   : > { %2696 = vmatprep.subr.bf16.mxu0 %v4875_v39 }
 0x316   : > { %1969 = vmatmul.mubr.bf16.gmra.mrb[116].mxu0 %v1651_v23  ;;  %v4328_v23 = vld.sshfl [vmem:[%s5969_s3 + $0x6] sm:$0x11 pattern:$0x75316420] }
 0x317   : > { %v2007_v37 = vcombine.high %v4328_v23, %v4328_v23  ;;  %v2014_v57 = vrot.slane %v4328_v23, %v5320_v18 }
 0x318   : > { %2697 = vmatpush1.bf16.msra.mxu0 %v4873_v1 }
 0x319   : > { %2698 = vmatprep.subr.bf16.mxu0 %v4878_v3  ;;  %v2021_v53 = vrot.slane %v2007_v37, %v5320_v18  ;;  %v2023_v39 = vpack.i.b16 %v2014_v57, %v2014_v57  ;;  %v4900_v3 = vld [vmem:[#allocation2 + $0x4b0] ss:$8 sps:$4 sm:$0xff]  }
 0x31a   : > { %v4906_v37 = vld [vmem:[#allocation2 + $0x4d0] ss:$8 sps:$4 sm:$0xff]  }
 0x31b   : > { %v2030_v1 = vpack.i.b16 %v2021_v53, %v2021_v53 }
 0x31c   : > { %2699 = vmatpush1.bf16.msra.mxu0 %v4876_v4  ;;  %v4905_v4 = vld [vmem:[#allocation2 + $0x4c4] ss:$8 sps:$4 sm:$0xff]  }
 0x31d   : > { %2700 = vmatprep.subr.bf16.mxu0 %v4881_v7 }
 0x320   : > { %2701 = vmatpush1.bf16.msra.mxu0 %v4879_v45 }
 0x321   : > { %2702 = vmatprep.subr.bf16.mxu0 %v4884_v10  ;;  %v5588_v10 = vrot.slane %v2023_v39, %v5330_v28 }
 0x324   : > { %2703 = vmatpush1.bf16.msra.mxu0 %v4882_v47 }
 0x325   : > { %2704 = vmatprep.subr.bf16.mxu0 %v4887_v13  ;;  %v5591_v13 = vrot.slane %v2030_v1, %v5330_v28 }
 0x328   : > { %2705 = vmatpush1.bf16.msra.mxu0 %v4885_v16  ;;  %v4903_v16 = vld [vmem:[#allocation2 + $0x4c0] ss:$8 sps:$4 sm:$0xff]  }
 0x329   : > { %2706 = vmatprep.subr.bf16.mxu0 %v4890_v48 }
 0x32c   : > { %2707 = vmatpush1.bf16.msra.mxu0 %v4888_v38 }
 0x32d   : > { %2708 = vmatprep.subr.bf16.mxu0 %v4893_v35  ;;  %v4908_v35 = vld [vmem:[#allocation2 + $0x4d4] ss:$8 sps:$4 sm:$0xff]  }
 0x330   : > { %2709 = vmatpush1.bf16.msra.mxu0 %v4891_v20 }
 0x331   : > { %2710 = vmatprep.subr.bf16.mxu0 %v4896_v26 }
 0x334   : > { %2711 = vmatpush1.bf16.msra.mxu0 %v4894_v46 }
 0x335   : > { %2712 = vmatprep.subr.bf16.mxu0 %v4899_v51 }
 0x338   : > { %2713 = vmatpush1.bf16.msra.mxu0 %v4897_v62 }
 0x339   : > { %2714 = vmatprep.subr.bf16.mxu0 %v4902_v36 }
 0x33c   : > { %2715 = vmatpush1.bf16.msra.mxu0 %v4900_v3 }
 0x33d   : > { %2716 = vmatprep.subr.bf16.mxu0 %v4905_v4 }
 0x340   : > { %2717 = vmatpush1.bf16.msra.mxu0 %v4903_v16 }
 0x341   : > { %2718 = vmatprep.subr.bf16.mxu0 %v4908_v35 }
 0x344   : > { %2719 = vmatpush1.bf16.msra.mxu0 %v4906_v37 }
 0x3a1   : > { %v1880_v7 = vpop.f32.mrb[80].mxu0 }
 0x3a2   : > { %v1882_v45 = vpop.f32.mrb[81].mxu0 }
 0x3a3   : > { %v1884_v47 = vpop.f32.mrb[82].mxu0 }
 0x3a4   : > { %v1979_v48 = vpack.c.bf16 %v1884_v47, %v1880_v7  ;;  %v1886_v38 = vpop.f32.mrb[83].mxu0 }
 0x3a5   : > { %v1980_v20 = vpack.c.bf16 %v1886_v38, %v1882_v45 }
 0x3a6   : > { %v2036_v23 = vadd.bf16 %v5588_v10, %v1979_v48 }
 0x3a7   : > { %v2037_v26 = vadd.bf16 %v5591_v13, %v1980_v20 }
 0x3a8   : > { %v2056_v57 = vmax.bf16 %v5072_v33, %v2036_v23 }
 0x3a9   : > { %v1890_v46 = vpop.f32.mrb[84].mxu0  ;;  %v2057_v51 = vmax.bf16 %v5072_v33, %v2037_v26 }
 0x3aa   : > { %v1892_v53 = vpop.f32.mrb[85].mxu0 }
 0x3ab   : > { %v1894_v62 = vpop.f32.mrb[86].mxu0  ;;  %2301 = vmatprep.mubr.bf16.mxu1 %v2057_v51 }
 0x3ac   : > { %v1981_v36 = vpack.c.bf16 %v1894_v62, %v1890_v46  ;;  %v1896_v39 = vpop.f32.mrb[87].mxu0  ;;  %2302 = vmatmul.mubr.bf16.vlgmr.msra.gmra.mrb[80].mxu1 %v2056_v57 }
 0x3ad   : > { %v1982_v1 = vpack.c.bf16 %v1896_v39, %v1892_v53 }
 0x3ae   : > { %v2038_v3 = vadd.bf16 %v5588_v10, %v1981_v36 }
 0x3af   : > { %v2039_v4 = vadd.bf16 %v5591_v13, %v1982_v1 }
 0x3b0   : > { %v2058_v16 = vmax.bf16 %v5072_v33, %v2038_v3 }
 0x3b1   : > { %v1900_v7 = vpop.f32.mrb[88].mxu0  ;;  %v2059_v45 = vmax.bf16 %v5072_v33, %v2039_v4 }
 0x3b2   : > { %v1902_v47 = vpop.f32.mrb[89].mxu0 }
 0x3b3   : > { %v1904_v48 = vpop.f32.mrb[90].mxu0  ;;  %2311 = vmatprep.mubr.bf16.mxu1 %v2059_v45 }
 0x3b4   : > { %v1983_v38 = vpack.c.bf16 %v1904_v48, %v1900_v7  ;;  %v1906_v35 = vpop.f32.mrb[91].mxu0  ;;  %2312 = vmatmul.mubr.bf16.gmra.mrb[84].mxu1 %v2058_v16 }
 0x3b5   : > { %v1984_v20 = vpack.c.bf16 %v1906_v35, %v1902_v47 }
 0x3b6   : > { %v2040_v23 = vadd.bf16 %v5588_v10, %v1983_v38 }
 0x3b7   : > { %v2041_v26 = vadd.bf16 %v5591_v13, %v1984_v20 }
 0x3b8   : > { %v2060_v57 = vmax.bf16 %v5072_v33, %v2040_v23 }
 0x3b9   : > { %v1910_v37 = vpop.f32.mrb[92].mxu0  ;;  %v2061_v46 = vmax.bf16 %v5072_v33, %v2041_v26 }
 0x3ba   : > { %v1912_v51 = vpop.f32.mrb[93].mxu0 }
 0x3bb   : > { %v1914_v53 = vpop.f32.mrb[94].mxu0  ;;  %2321 = vmatprep.mubr.bf16.mxu1 %v2061_v46 }
 0x3bc   : > { %v1985_v62 = vpack.c.bf16 %v1914_v53, %v1910_v37  ;;  %v1916_v36 = vpop.f32.mrb[95].mxu0  ;;  %2322 = vmatmul.mubr.bf16.gmra.mrb[88].mxu1 %v2060_v57 }
 0x3bd   : > { %v1986_v39 = vpack.c.bf16 %v1916_v36, %v1912_v51 }
 0x3be   : > { %v2042_v1 = vadd.bf16 %v5588_v10, %v1985_v62 }
 0x3bf   : > { %v2043_v3 = vadd.bf16 %v5591_v13, %v1986_v39 }
 0x3c0   : > { %v2062_v47 = vmax.bf16 %v5072_v33, %v2042_v1 }
 0x3c1   : > { %v1920_v4 = vpop.f32.mrb[96].mxu0  ;;  %v2063_v7 = vmax.bf16 %v5072_v33, %v2043_v3 }
 0x3c2   : > { %v1922_v45 = vpop.f32.mrb[97].mxu0 }
 0x3c3   : > { %v1924_v16 = vpop.f32.mrb[98].mxu0  ;;  %2331 = vmatprep.mubr.bf16.mxu1 %v2063_v7 }
 0x3c4   : > { %v1987_v48 = vpack.c.bf16 %v1924_v16, %v1920_v4  ;;  %v1926_v38 = vpop.f32.mrb[99].mxu0  ;;  %2332 = vmatmul.mubr.bf16.gmra.mrb[92].mxu1 %v2062_v47 }
 0x3c5   : > { %v1988_v35 = vpack.c.bf16 %v1926_v38, %v1922_v45 }
 0x3c6   : > { %v2044_v20 = vadd.bf16 %v5588_v10, %v1987_v48 }
 0x3c7   : > { %v2045_v23 = vadd.bf16 %v5591_v13, %v1988_v35 }
 0x3c8   : > { %v2064_v51 = vmax.bf16 %v5072_v33, %v2044_v20 }
 0x3c9   : > { %v1930_v26 = vpop.f32.mrb[100].mxu0  ;;  %v2065_v37 = vmax.bf16 %v5072_v33, %v2045_v23 }
 0x3ca   : > { %v1932_v46 = vpop.f32.mrb[101].mxu0 }
 0x3cb   : > { %v1934_v57 = vpop.f32.mrb[102].mxu0  ;;  %2341 = vmatprep.mubr.bf16.mxu1 %v2065_v37 }
 0x3cc   : > { %v1989_v53 = vpack.c.bf16 %v1934_v57, %v1930_v26  ;;  %v1936_v62 = vpop.f32.mrb[103].mxu0  ;;  %2342 = vmatmul.mubr.bf16.gmra.mrb[96].mxu1 %v2064_v51 }
 0x3cd   : > { %v1990_v36 = vpack.c.bf16 %v1936_v62, %v1932_v46 }
 0x3ce   : > { %v2046_v39 = vadd.bf16 %v5588_v10, %v1989_v53 }
 0x3cf   : > { %v2047_v1 = vadd.bf16 %v5591_v13, %v1990_v36 }
 0x3d0   : > { %v2066_v45 = vmax.bf16 %v5072_v33, %v2046_v39 }
 0x3d1   : > { %v1940_v3 = vpop.f32.mrb[104].mxu0  ;;  %v2067_v4 = vmax.bf16 %v5072_v33, %v2047_v1 }
 0x3d2   : > { %v1942_v7 = vpop.f32.mrb[105].mxu0 }
 0x3d3   : > { %v1944_v47 = vpop.f32.mrb[106].mxu0  ;;  %2351 = vmatprep.mubr.bf16.mxu1 %v2067_v4 }
 0x3d4   : > { %v1991_v16 = vpack.c.bf16 %v1944_v47, %v1940_v3  ;;  %v1946_v48 = vpop.f32.mrb[107].mxu0  ;;  %2352 = vmatmul.mubr.bf16.gmra.mrb[100].mxu1 %v2066_v45 }
 0x3d5   : > { %v1992_v38 = vpack.c.bf16 %v1946_v48, %v1942_v7 }
 0x3d6   : > { %v2048_v35 = vadd.bf16 %v5588_v10, %v1991_v16 }
 0x3d7   : > { %v2049_v20 = vadd.bf16 %v5591_v13, %v1992_v38 }
 0x3d8   : > { %v2068_v46 = vmax.bf16 %v5072_v33, %v2048_v35 }
 0x3d9   : > { %v1950_v23 = vpop.f32.mrb[108].mxu0  ;;  %v2069_v26 = vmax.bf16 %v5072_v33, %v2049_v20 }
 0x3da   : > { %v1952_v37 = vpop.f32.mrb[109].mxu0 }
 0x3db   : > { %v1954_v51 = vpop.f32.mrb[110].mxu0  ;;  %2361 = vmatprep.mubr.bf16.mxu1 %v2069_v26 }
 0x3dc   : > { %v1993_v57 = vpack.c.bf16 %v1954_v51, %v1950_v23  ;;  %v1956_v53 = vpop.f32.mrb[111].mxu0  ;;  %2362 = vmatmul.mubr.bf16.gmra.mrb[104].mxu1 %v2068_v46 }
 0x3dd   : > { %v1994_v62 = vpack.c.bf16 %v1956_v53, %v1952_v37 }
 0x3de   : > { %v2050_v36 = vadd.bf16 %v5588_v10, %v1993_v57 }
 0x3df   : > { %v2051_v39 = vadd.bf16 %v5591_v13, %v1994_v62 }
 0x3e0   : > { %v2070_v7 = vmax.bf16 %v5072_v33, %v2050_v36 }
 0x3e1   : > { %v1960_v1 = vpop.f32.mrb[112].mxu0  ;;  %v2071_v3 = vmax.bf16 %v5072_v33, %v2051_v39 }
 0x3e2   : > { %v1962_v4 = vpop.f32.mrb[113].mxu0 }
 0x3e3   : > { %v1964_v45 = vpop.f32.mrb[114].mxu0  ;;  %2371 = vmatprep.mubr.bf16.mxu1 %v2071_v3  ;;  %v4909_v3 = vld [vmem:[#allocation2 + $0x4e0] ss:$8 sps:$4 sm:$0xff]  }
 0x3e4   : > { %v1995_v47 = vpack.c.bf16 %v1964_v45, %v1960_v1  ;;  %v1966_v16 = vpop.f32.mrb[115].mxu0  ;;  %2372 = vmatmul.mubr.bf16.gmra.mrb[108].mxu1 %v2070_v7  ;;  %v4914_v7 = vld [vmem:[#allocation2 + $0x4f4] ss:$8 sps:$4 sm:$0xff]   ;;  %v4912_v45 = vld [vmem:[#allocation2 + $0x4f0] ss:$8 sps:$4 sm:$0xff]  }
 0x3e5   : > { %v1996_v48 = vpack.c.bf16 %v1966_v16, %v1962_v4  ;;  %v4911_v4 = vld [vmem:[#allocation2 + $0x4e4] ss:$8 sps:$4 sm:$0xff]   ;;  %v4920_v16 = vld [vmem:[#allocation2 + $0x514] ss:$8 sps:$4 sm:$0xff]  }
 0x3e6   : > { %v2052_v38 = vadd.bf16 %v5588_v10, %v1995_v47  ;;  %2720 = vmatprep.subr.bf16.mxu0 %v4911_v4  ;;  %v4915_v47 = vld [vmem:[#allocation2 + $0x500] ss:$8 sps:$4 sm:$0xff]  }
 0x3e7   : > { %v2053_v35 = vadd.bf16 %v5591_v13, %v1996_v48  ;;  %2721 = vmatpush1.bf16.msra.mxu0 %v4909_v3  ;;  %v4923_v48 = vld [vmem:[#allocation2 + $0x524] ss:$8 sps:$4 sm:$0xff]   ;;  %v4944_v3 = vld [vmem:[#allocation2 + $0x594] ss:$8 sps:$4 sm:$0xff]  }
 0x3e8   : > { %v2072_v46 = vmax.bf16 %v5072_v33, %v2052_v38  ;;  %2722 = vmatprep.subr.bf16.mxu0 %v4914_v7  ;;  %v4921_v38 = vld [vmem:[#allocation2 + $0x520] ss:$8 sps:$4 sm:$0xff]   ;;  %v4942_v7 = vld [vmem:[#allocation2 + $0x590] ss:$8 sps:$4 sm:$0xff]  }
 0x3e9   : > { %v1970_v20 = vpop.f32.mrb[116].mxu0  ;;  %v2073_v23 = vmax.bf16 %v5072_v33, %v2053_v35  ;;  %v4926_v35 = vld [vmem:[#allocation2 + $0x534] ss:$8 sps:$4 sm:$0xff]  }
 0x3ea   : > { %v1997_v26 = vpack.c.bf16 %v1970_v20, %v1970_v20  ;;  %v1972_v37 = vpop.f32.mrb[117].mxu0  ;;  %v4924_v20 = vld [vmem:[#allocation2 + $0x530] ss:$8 sps:$4 sm:$0xff]  }
 0x3eb   : > { %v1998_v51 = vpack.c.bf16 %v1972_v37, %v1972_v37  ;;  %2381 = vmatprep.mubr.bf16.mxu1 %v2073_v23  ;;  %v1974_v57 = vpop.f32.mrb[118].mxu0  ;;  %2723 = vmatpush1.bf16.msra.mxu0 %v4912_v45  ;;  %v4929_v23 = vld [vmem:[#allocation2 + $0x544] ss:$8 sps:$4 sm:$0xff]   ;;  %v4932_v37 = vld [vmem:[#allocation2 + $0x554] ss:$8 sps:$4 sm:$0xff]  }
 0x3ec   : > { %v2054_v53 = vadd.bf16 %v5588_v10, %v1997_v26  ;;  %2382 = vmatmul.mubr.bf16.gmra.mrb[112].mxu1 %v2072_v46  ;;  %v1975_v62 = vpop.f32.mrb[119].mxu0  ;;  %v4917_v10 = vld [vmem:[#allocation2 + $0x504] ss:$8 sps:$4 sm:$0xff]   ;;  %v4927_v26 = vld [vmem:[#allocation2 + $0x540] ss:$8 sps:$4 sm:$0xff]  }
 0x3ed   : > { %v2055_v36 = vadd.bf16 %v5591_v13, %v1998_v51  ;;  %3115 = vmatprep.subr.bf16.mxu1 %v4917_v10  ;;  %v4918_v13 = vld [vmem:[#allocation2 + $0x510] ss:$8 sps:$4 sm:$0xff]   ;;  %v4935_v51 = vld [vmem:[#allocation2 + $0x564] ss:$8 sps:$4 sm:$0xff]   ;;  %v4933_v57 = vld [vmem:[#allocation2 + $0x560] ss:$8 sps:$4 sm:$0xff]  }
 0x3ee   : > { %v2074_v1 = vmax.bf16 %v5072_v33, %v2054_v53  ;;  %3116 = vmatpush1.bf16.msra.mxu1 %v4915_v47  ;;  %v4930_v46 = vld [vmem:[#allocation2 + $0x550] ss:$8 sps:$4 sm:$0xff]   ;;  %v4938_v53 = vld [vmem:[#allocation2 + $0x574] ss:$8 sps:$4 sm:$0xff]   ;;  %v4947_v45 = vld [vmem:[#allocation2 + $0x5a4] ss:$8 sps:$4 sm:$0xff]  }
 0x3ef   : > { %v2075_v39 = vmax.bf16 %v5072_v33, %v2055_v36  ;;  %3117 = vmatprep.subr.bf16.mxu1 %v4920_v16  ;;  %v4936_v62 = vld [vmem:[#allocation2 + $0x570] ss:$8 sps:$4 sm:$0xff]   ;;  %v4941_v36 = vld [vmem:[#allocation2 + $0x584] ss:$8 sps:$4 sm:$0xff]   ;;  %v4945_v16 = vld [vmem:[#allocation2 + $0x5a0] ss:$8 sps:$4 sm:$0xff]  }
 0x3f1   : > { %2391 = vmatprep.mubr.bf16.mxu1 %v2075_v39  ;;  %v4939_v39 = vld [vmem:[#allocation2 + $0x580] ss:$8 sps:$4 sm:$0xff]  }
 0x3f2   : > { %3118 = vmatpush1.bf16.msra.mxu1 %v4918_v13  ;;  %v4950_v13 = vld [vmem:[#allocation2 + $0x5b4] ss:$8 sps:$4 sm:$0xff]  }
 0x3f3   : > { %3119 = vmatprep.subr.bf16.mxu1 %v4923_v48 }
 0x3f4   : > { %2392 = vmatmul.mubr.bf16.gmra.mrb[116].mxu1 %v2074_v1  ;;  %v4362_v1 = vld.sshfl [vmem:[%s5969_s3 + $0x8] sm:$0x11 pattern:$0x75316420] }
 0x3f5   : > { %v2430_v4 = vcombine.high %v4362_v1, %v4362_v1  ;;  %v2437_v47 = vrot.slane %v4362_v1, %v5320_v18 }
 0x3f6   : > { %3120 = vmatpush1.bf16.msra.mxu1 %v4921_v38 }
 0x3f7   : > { %3121 = vmatprep.subr.bf16.mxu1 %v4926_v35  ;;  %v2444_v10 = vrot.slane %v2430_v4, %v5320_v18  ;;  %v2446_v48 = vpack.i.b16 %v2437_v47, %v2437_v47  ;;  %v4948_v35 = vld [vmem:[#allocation2 + $0x5b0] ss:$8 sps:$4 sm:$0xff]  }
 0x3f8   : > { %v4954_v4 = vld [vmem:[#allocation2 + $0x5d0] ss:$8 sps:$4 sm:$0xff]  }
 0x3f9   : > { %v2453_v38 = vpack.i.b16 %v2444_v10, %v2444_v10 }
 0x3fa   : > { %3122 = vmatpush1.bf16.msra.mxu1 %v4924_v20  ;;  %v4953_v20 = vld [vmem:[#allocation2 + $0x5c4] ss:$8 sps:$4 sm:$0xff]  }
 0x3fb   : > { %3123 = vmatprep.subr.bf16.mxu1 %v4929_v23 }
 0x3fe   : > { %3124 = vmatpush1.bf16.msra.mxu1 %v4927_v26 }
 0x3ff   : > { %3125 = vmatprep.subr.bf16.mxu1 %v4932_v37  ;;  %v5639_v37 = vrot.slane %v2446_v48, %v5330_v28 }
 0x402   : > { %3126 = vmatpush1.bf16.msra.mxu1 %v4930_v46 }
 0x403   : > { %3127 = vmatprep.subr.bf16.mxu1 %v4935_v51  ;;  %v5642_v51 = vrot.slane %v2453_v38, %v5330_v28 }
 0x406   : > { %3128 = vmatpush1.bf16.msra.mxu1 %v4933_v57  ;;  %v4951_v57 = vld [vmem:[#allocation2 + $0x5c0] ss:$8 sps:$4 sm:$0xff]  }
 0x407   : > { %3129 = vmatprep.subr.bf16.mxu1 %v4938_v53 }
 0x40a   : > { %3130 = vmatpush1.bf16.msra.mxu1 %v4936_v62 }
 0x40b   : > { %3131 = vmatprep.subr.bf16.mxu1 %v4941_v36  ;;  %v4956_v36 = vld [vmem:[#allocation2 + $0x5d4] ss:$8 sps:$4 sm:$0xff]  }
 0x40e   : > { %3132 = vmatpush1.bf16.msra.mxu1 %v4939_v39 }
 0x40f   : > { %3133 = vmatprep.subr.bf16.mxu1 %v4944_v3 }
 0x412   : > { %3134 = vmatpush1.bf16.msra.mxu1 %v4942_v7 }
 0x413   : > { %3135 = vmatprep.subr.bf16.mxu1 %v4947_v45 }
 0x416   : > { %3136 = vmatpush1.bf16.msra.mxu1 %v4945_v16 }
 0x417   : > { %3137 = vmatprep.subr.bf16.mxu1 %v4950_v13 }
 0x41a   : > { %3138 = vmatpush1.bf16.msra.mxu1 %v4948_v35 }
 0x41b   : > { %3139 = vmatprep.subr.bf16.mxu1 %v4953_v20 }
 0x41e   : > { %3140 = vmatpush1.bf16.msra.mxu1 %v4951_v57 }
 0x41f   : > { %3141 = vmatprep.subr.bf16.mxu1 %v4956_v36 }
 0x422   : > { %3142 = vmatpush1.bf16.msra.mxu1 %v4954_v4 }
 0x47f   : > { %v2303_v23 = vpop.f32.mrb[80].mxu1 }
 0x480   : > { %v2305_v26 = vpop.f32.mrb[81].mxu1 }
 0x481   : > { %v2307_v46 = vpop.f32.mrb[82].mxu1 }
 0x482   : > { %v2402_v53 = vpack.c.bf16 %v2307_v46, %v2303_v23  ;;  %v2309_v62 = vpop.f32.mrb[83].mxu1 }
 0x483   : > { %v2403_v39 = vpack.c.bf16 %v2309_v62, %v2305_v26 }
 0x484   : > { %v2459_v1 = vadd.bf16 %v5639_v37, %v2402_v53 }
 0x485   : > { %v2460_v3 = vadd.bf16 %v5642_v51, %v2403_v39 }
 0x486   : > { %v2479_v47 = vmax.bf16 %v5072_v33, %v2459_v1 }
 0x487   : > { %v2313_v7 = vpop.f32.mrb[84].mxu1  ;;  %v2480_v45 = vmax.bf16 %v5072_v33, %v2460_v3 }
 0x488   : > { %v2315_v10 = vpop.f32.mrb[85].mxu1 }
 0x489   : > { %v2317_v16 = vpop.f32.mrb[86].mxu1  ;;  %2724 = vmatprep.mubr.bf16.mxu0 %v2480_v45 }
 0x48a   : > { %v2404_v13 = vpack.c.bf16 %v2317_v16, %v2313_v7  ;;  %v2319_v48 = vpop.f32.mrb[87].mxu1  ;;  %2725 = vmatmul.mubr.bf16.vlgmr.msra.gmra.mrb[120].mxu0 %v2479_v47 }
 0x48b   : > { %v2405_v38 = vpack.c.bf16 %v2319_v48, %v2315_v10 }
 0x48c   : > { %v2461_v35 = vadd.bf16 %v5639_v37, %v2404_v13 }
 0x48d   : > { %v2462_v20 = vadd.bf16 %v5642_v51, %v2405_v38 }
 0x48e   : > { %v2481_v57 = vmax.bf16 %v5072_v33, %v2461_v35 }
 0x48f   : > { %v2323_v23 = vpop.f32.mrb[88].mxu1  ;;  %v2482_v26 = vmax.bf16 %v5072_v33, %v2462_v20 }
 0x490   : > { %v2325_v46 = vpop.f32.mrb[89].mxu1 }
 0x491   : > { %v2327_v53 = vpop.f32.mrb[90].mxu1  ;;  %2734 = vmatprep.mubr.bf16.mxu0 %v2482_v26 }
 0x492   : > { %v2406_v62 = vpack.c.bf16 %v2327_v53, %v2323_v23  ;;  %v2329_v36 = vpop.f32.mrb[91].mxu1  ;;  %2735 = vmatmul.mubr.bf16.gmra.mrb[124].mxu0 %v2481_v57 }
 0x493   : > { %v2407_v39 = vpack.c.bf16 %v2329_v36, %v2325_v46 }
 0x494   : > { %v2463_v1 = vadd.bf16 %v5639_v37, %v2406_v62 }
 0x495   : > { %v2464_v3 = vadd.bf16 %v5642_v51, %v2407_v39 }
 0x496   : > { %v2483_v47 = vmax.bf16 %v5072_v33, %v2463_v1 }
 0x497   : > { %v2333_v4 = vpop.f32.mrb[92].mxu1  ;;  %v2484_v7 = vmax.bf16 %v5072_v33, %v2464_v3 }
 0x498   : > { %v2335_v45 = vpop.f32.mrb[93].mxu1 }
 0x499   : > { %v2337_v10 = vpop.f32.mrb[94].mxu1  ;;  %2744 = vmatprep.mubr.bf16.mxu0 %v2484_v7 }
 0x49a   : > { %v2408_v16 = vpack.c.bf16 %v2337_v10, %v2333_v4  ;;  %v2339_v13 = vpop.f32.mrb[95].mxu1  ;;  %2745 = vmatmul.mubr.bf16.gmra.mrb[128].mxu0 %v2483_v47 }
 0x49b   : > { %v2409_v48 = vpack.c.bf16 %v2339_v13, %v2335_v45 }
 0x49c   : > { %v2465_v38 = vadd.bf16 %v5639_v37, %v2408_v16 }
 0x49d   : > { %v2466_v35 = vadd.bf16 %v5642_v51, %v2409_v48 }
 0x49e   : > { %v2485_v46 = vmax.bf16 %v5072_v33, %v2465_v38 }
 0x49f   : > { %v2343_v20 = vpop.f32.mrb[96].mxu1  ;;  %v2486_v23 = vmax.bf16 %v5072_v33, %v2466_v35 }
 0x4a0   : > { %v2345_v26 = vpop.f32.mrb[97].mxu1 }
 0x4a1   : > { %v2347_v57 = vpop.f32.mrb[98].mxu1  ;;  %2754 = vmatprep.mubr.bf16.mxu0 %v2486_v23 }
 0x4a2   : > { %v2410_v53 = vpack.c.bf16 %v2347_v57, %v2343_v20  ;;  %v2349_v62 = vpop.f32.mrb[99].mxu1  ;;  %2755 = vmatmul.mubr.bf16.gmra.mrb[132].mxu0 %v2485_v46 }
 0x4a3   : > { %v2411_v36 = vpack.c.bf16 %v2349_v62, %v2345_v26 }
 0x4a4   : > { %v2467_v39 = vadd.bf16 %v5639_v37, %v2410_v53 }
 0x4a5   : > { %v2468_v1 = vadd.bf16 %v5642_v51, %v2411_v36 }
 0x4a6   : > { %v2487_v45 = vmax.bf16 %v5072_v33, %v2467_v39 }
 0x4a7   : > { %v2353_v3 = vpop.f32.mrb[100].mxu1  ;;  %v2488_v4 = vmax.bf16 %v5072_v33, %v2468_v1 }
 0x4a8   : > { %v2355_v7 = vpop.f32.mrb[101].mxu1 }
 0x4a9   : > { %v2357_v47 = vpop.f32.mrb[102].mxu1  ;;  %2764 = vmatprep.mubr.bf16.mxu0 %v2488_v4 }
 0x4aa   : > { %v2412_v10 = vpack.c.bf16 %v2357_v47, %v2353_v3  ;;  %v2359_v16 = vpop.f32.mrb[103].mxu1  ;;  %2765 = vmatmul.mubr.bf16.gmra.mrb[136].mxu0 %v2487_v45 }
 0x4ab   : > { %v2413_v13 = vpack.c.bf16 %v2359_v16, %v2355_v7 }
 0x4ac   : > { %v2469_v48 = vadd.bf16 %v5639_v37, %v2412_v10 }
 0x4ad   : > { %v2470_v38 = vadd.bf16 %v5642_v51, %v2413_v13 }
 0x4ae   : > { %v2489_v26 = vmax.bf16 %v5072_v33, %v2469_v48 }
 0x4af   : > { %v2363_v35 = vpop.f32.mrb[104].mxu1  ;;  %v2490_v20 = vmax.bf16 %v5072_v33, %v2470_v38 }
 0x4b0   : > { %v2365_v23 = vpop.f32.mrb[105].mxu1 }
 0x4b1   : > { %v2367_v46 = vpop.f32.mrb[106].mxu1  ;;  %2774 = vmatprep.mubr.bf16.mxu0 %v2490_v20 }
 0x4b2   : > { %v2414_v57 = vpack.c.bf16 %v2367_v46, %v2363_v35  ;;  %v2369_v53 = vpop.f32.mrb[107].mxu1  ;;  %2775 = vmatmul.mubr.bf16.gmra.mrb[140].mxu0 %v2489_v26 }
 0x4b3   : > { %v2415_v62 = vpack.c.bf16 %v2369_v53, %v2365_v23 }
 0x4b4   : > { %v2471_v36 = vadd.bf16 %v5639_v37, %v2414_v57 }
 0x4b5   : > { %v2472_v39 = vadd.bf16 %v5642_v51, %v2415_v62 }
 0x4b6   : > { %v2491_v7 = vmax.bf16 %v5072_v33, %v2471_v36 }
 0x4b7   : > { %v2373_v1 = vpop.f32.mrb[108].mxu1  ;;  %v2492_v3 = vmax.bf16 %v5072_v33, %v2472_v39 }
 0x4b8   : > { %v2375_v4 = vpop.f32.mrb[109].mxu1 }
 0x4b9   : > { %v2377_v45 = vpop.f32.mrb[110].mxu1  ;;  %2784 = vmatprep.mubr.bf16.mxu0 %v2492_v3 }
 0x4ba   : > { %v2416_v47 = vpack.c.bf16 %v2377_v45, %v2373_v1  ;;  %v2379_v10 = vpop.f32.mrb[111].mxu1  ;;  %2785 = vmatmul.mubr.bf16.gmra.mrb[144].mxu0 %v2491_v7 }
 0x4bb   : > { %v2417_v16 = vpack.c.bf16 %v2379_v10, %v2375_v4 }
 0x4bc   : > { %v2473_v13 = vadd.bf16 %v5639_v37, %v2416_v47 }
 0x4bd   : > { %v2474_v48 = vadd.bf16 %v5642_v51, %v2417_v16 }
 0x4be   : > { %v2493_v23 = vmax.bf16 %v5072_v33, %v2473_v13 }
 0x4bf   : > { %v2383_v38 = vpop.f32.mrb[112].mxu1  ;;  %v2494_v35 = vmax.bf16 %v5072_v33, %v2474_v48 }
 0x4c0   : > { %v2385_v20 = vpop.f32.mrb[113].mxu1 }
 0x4c1   : > { %v2387_v26 = vpop.f32.mrb[114].mxu1  ;;  %2794 = vmatprep.mubr.bf16.mxu0 %v2494_v35  ;;  %v4959_v35 = vld [vmem:[#allocation2 + $0x5e4] ss:$8 sps:$4 sm:$0xff]  }
 0x4c2   : > { %v2418_v46 = vpack.c.bf16 %v2387_v26, %v2383_v38  ;;  %v2389_v57 = vpop.f32.mrb[115].mxu1  ;;  %2795 = vmatmul.mubr.bf16.gmra.mrb[148].mxu0 %v2493_v23  ;;  %3143 = vmatprep.subr.bf16.mxu1 %v4959_v35  ;;  %v4962_v23 = vld [vmem:[#allocation2 + $0x5f4] ss:$8 sps:$4 sm:$0xff]   ;;  %v4960_v26 = vld [vmem:[#allocation2 + $0x5f0] ss:$8 sps:$4 sm:$0xff]  }
 0x4c3   : > { %v2419_v53 = vpack.c.bf16 %v2389_v57, %v2385_v20  ;;  %v4957_v20 = vld [vmem:[#allocation2 + $0x5e0] ss:$8 sps:$4 sm:$0xff]   ;;  %v4965_v57 = vld [vmem:[#allocation2 + $0x604] ss:$8 sps:$4 sm:$0xff]   ;;  %v4992_v35 = vld [vmem:[#allocation2 + $0x694] ss:$8 sps:$4 sm:$0xff]  }
 0x4c4   : > { %v2475_v62 = vadd.bf16 %v5639_v37, %v2418_v46  ;;  %3144 = vmatpush1.bf16.msra.mxu1 %v4957_v20  ;;  %v4963_v46 = vld [vmem:[#allocation2 + $0x600] ss:$8 sps:$4 sm:$0xff]   ;;  %3538 = vmatprep.subr.bf16.mxu0 %v4965_v57 }
 0x4c5   : > { %v2476_v36 = vadd.bf16 %v5642_v51, %v2419_v53  ;;  %3145 = vmatprep.subr.bf16.mxu1 %v4962_v23  ;;  %v4968_v53 = vld [vmem:[#allocation2 + $0x614] ss:$8 sps:$4 sm:$0xff]   ;;  %3539 = vmatpush1.bf16.msra.mxu0 %v4963_v46  ;;  %v4990_v23 = vld [vmem:[#allocation2 + $0x690] ss:$8 sps:$4 sm:$0xff]  }
 0x4c6   : > { %v2495_v7 = vmax.bf16 %v5072_v33, %v2475_v62  ;;  %3540 = vmatprep.subr.bf16.mxu0 %v4968_v53  ;;  %v4969_v62 = vld [vmem:[#allocation2 + $0x620] ss:$8 sps:$4 sm:$0xff]  }
 0x4c7   : > { %v2393_v39 = vpop.f32.mrb[116].mxu1  ;;  %v2496_v1 = vmax.bf16 %v5072_v33, %v2476_v36  ;;  %v4974_v36 = vld [vmem:[#allocation2 + $0x634] ss:$8 sps:$4 sm:$0xff]   ;;  %v4993_v53 = vld [vmem:[#allocation2 + $0x6a0] ss:$8 sps:$4 sm:$0xff]  }
 0x4c8   : > { %v2420_v3 = vpack.c.bf16 %v2393_v39, %v2393_v39  ;;  %v2395_v4 = vpop.f32.mrb[117].mxu1  ;;  %3146 = vmatpush1.bf16.msra.mxu1 %v4960_v26  ;;  %v4972_v39 = vld [vmem:[#allocation2 + $0x630] ss:$8 sps:$4 sm:$0xff]   ;;  %v4995_v26 = vld [vmem:[#allocation2 + $0x6a4] ss:$8 sps:$4 sm:$0xff]  }
 0x4c9   : > { %v2421_v45 = vpack.c.bf16 %v2395_v4, %v2395_v4  ;;  %v2397_v47 = vpop.f32.mrb[118].mxu1  ;;  %2804 = vmatprep.mubr.bf16.mxu0 %v2496_v1  ;;  %v4977_v1 = vld [vmem:[#allocation2 + $0x644] ss:$8 sps:$4 sm:$0xff]   ;;  %v4980_v4 = vld [vmem:[#allocation2 + $0x654] ss:$8 sps:$4 sm:$0xff]  }
 0x4ca   : > { %v2398_v10 = vpop.f32.mrb[119].mxu1  ;;  %2805 = vmatmul.mubr.bf16.gmra.mrb[152].mxu0 %v2495_v7  ;;  %v2477_v13 = vadd.bf16 %v5639_v37, %v2420_v3  ;;  %v4966_v37 = vld [vmem:[#allocation2 + $0x610] ss:$8 sps:$4 sm:$0xff]   ;;  %v4975_v3 = vld [vmem:[#allocation2 + $0x640] ss:$8 sps:$4 sm:$0xff]  }
 0x4cb   : > { %v2478_v16 = vadd.bf16 %v5642_v51, %v2421_v45  ;;  %v4971_v51 = vld [vmem:[#allocation2 + $0x624] ss:$8 sps:$4 sm:$0xff]   ;;  %3541 = vmatpush1.bf16.msra.mxu0 %v4966_v37  ;;  %v4978_v7 = vld [vmem:[#allocation2 + $0x650] ss:$8 sps:$4 sm:$0xff]   ;;  %v4981_v47 = vld [vmem:[#allocation2 + $0x660] ss:$8 sps:$4 sm:$0xff]  }
 0x4cc   : > { %v2497_v38 = vmax.bf16 %v5072_v33, %v2477_v13  ;;  %3542 = vmatprep.subr.bf16.mxu0 %v4971_v51  ;;  %v4983_v45 = vld [vmem:[#allocation2 + $0x664] ss:$8 sps:$4 sm:$0xff]   ;;  %v4986_v10 = vld [vmem:[#allocation2 + $0x674] ss:$8 sps:$4 sm:$0xff]  }
 0x4cd   : > { %v2498_v48 = vmax.bf16 %v5072_v33, %v2478_v16  ;;  %v4984_v16 = vld [vmem:[#allocation2 + $0x670] ss:$8 sps:$4 sm:$0xff]   ;;  %v4989_v13 = vld [vmem:[#allocation2 + $0x684] ss:$8 sps:$4 sm:$0xff]   ;;  %v4998_v37 = vld [vmem:[#allocation2 + $0x6b4] ss:$8 sps:$4 sm:$0xff]  }
 0x4cf   : > { %2814 = vmatprep.mubr.bf16.mxu0 %v2498_v48  ;;  %3543 = vmatpush1.bf16.msra.mxu0 %v4969_v62  ;;  %v4987_v48 = vld [vmem:[#allocation2 + $0x680] ss:$8 sps:$4 sm:$0xff]  }
 0x4d0   : > { %3544 = vmatprep.subr.bf16.mxu0 %v4974_v36 }
 0x4d2   : > { %2815 = vmatmul.mubr.bf16.gmra.mrb[156].mxu0 %v2497_v38  ;;  %v4396_v38 = vld.sshfl [vmem:[%s5969_s3 + $0xa] sm:$0x11 pattern:$0x75316420] }
 0x4d3   : > { %3545 = vmatpush1.bf16.msra.mxu0 %v4972_v39  ;;  %v2853_v20 = vcombine.high %v4396_v38, %v4396_v38  ;;  %v2860_v46 = vrot.slane %v4396_v38, %v5320_v18  ;;  %v4996_v39 = vld [vmem:[#allocation2 + $0x6b0] ss:$8 sps:$4 sm:$0xff]   ;;  %v4999_v38 = vld [vmem:[#allocation2 + $0x6c0] ss:$8 sps:$4 sm:$0xff]  }
 0x4d4   : > { %3546 = vmatprep.subr.bf16.mxu0 %v4977_v1 }
 0x4d5   : > { %v2867_v57 = vrot.slane %v2853_v20, %v5320_v18  ;;  %v2869_v51 = vpack.i.b16 %v2860_v46, %v2860_v46 }
 0x4d7   : > { %3547 = vmatpush1.bf16.msra.mxu0 %v4975_v3  ;;  %v2876_v36 = vpack.i.b16 %v2867_v57, %v2867_v57 }
 0x4d8   : > { %3548 = vmatprep.subr.bf16.mxu0 %v4980_v4  ;;  %v5001_v4 = vld [vmem:[#allocation2 + $0x6c4] ss:$8 sps:$4 sm:$0xff]  }
 0x4db   : > { %3549 = vmatpush1.bf16.msra.mxu0 %v4978_v7 }
 0x4dc   : > { %3550 = vmatprep.subr.bf16.mxu0 %v4983_v45 }
 0x4df   : > { %3551 = vmatpush1.bf16.msra.mxu0 %v4981_v47 }
 0x4e0   : > { %3552 = vmatprep.subr.bf16.mxu0 %v4986_v10  ;;  %v5693_v10 = vrot.slane %v2869_v51, %v5330_v28 }
 0x4e3   : > { %3553 = vmatpush1.bf16.msra.mxu0 %v4984_v16 }
 0x4e4   : > { %3554 = vmatprep.subr.bf16.mxu0 %v4989_v13 }
 0x4e7   : > { %3555 = vmatpush1.bf16.msra.mxu0 %v4987_v48  ;;  %v5697_v48 = vrot.slane %v2876_v36, %v5330_v28 }
 0x4e8   : > { %3556 = vmatprep.subr.bf16.mxu0 %v4992_v35  ;;  %v5004_v35 = vld [vmem:[#allocation2 + $0x6d4] ss:$8 sps:$4 sm:$0xff]  }
 0x4eb   : > { %3557 = vmatpush1.bf16.msra.mxu0 %v4990_v23 }
 0x4ec   : > { %3558 = vmatprep.subr.bf16.mxu0 %v4995_v26  ;;  %v5002_v26 = vld [vmem:[#allocation2 + $0x6d0] ss:$8 sps:$4 sm:$0xff]  }
 0x4ef   : > { %3559 = vmatpush1.bf16.msra.mxu0 %v4993_v53 }
 0x4f0   : > { %3560 = vmatprep.subr.bf16.mxu0 %v4998_v37 }
 0x4f3   : > { %3561 = vmatpush1.bf16.msra.mxu0 %v4996_v39 }
 0x4f4   : > { %3562 = vmatprep.subr.bf16.mxu0 %v5001_v4 }
 0x4f7   : > { %3563 = vmatpush1.bf16.msra.mxu0 %v4999_v38 }
 0x4f8   : > { %3564 = vmatprep.subr.bf16.mxu0 %v5004_v35 }
 0x4fb   : > { %3565 = vmatpush1.bf16.msra.mxu0 %v5002_v26 }
 0x55d   : > { %v2726_v62 = vpop.f32.mrb[120].mxu0 }
 0x55e   : > { %v2727_v1 = vadd.f32 %v2726_v62, %v5404_v19  ;;  %v2728_v3 = vpop.f32.mrb[121].mxu0 }
 0x55f   : > { %v2729_v7 = vadd.f32 %v2728_v3, %v5406_v0  ;;  %v2730_v45 = vpop.f32.mrb[122].mxu0 }
 0x560   : > { %v2731_v47 = vadd.f32 %v2730_v45, %v5408_v21  ;;  %v2732_v16 = vpop.f32.mrb[123].mxu0 }
 0x561   : > { %v2733_v13 = vadd.f32 %v2732_v16, %v5410_v22 }
 0x562   : > { %v2825_v19 = vpack.c.bf16 %v2731_v47, %v2727_v1 }
 0x563   : > { %v2826_v20 = vpack.c.bf16 %v2733_v13, %v2729_v7 }
 0x564   : > { %v2882_v0 = vadd.bf16 %v5693_v10, %v2825_v19 }
 0x565   : > { %v2883_v23 = vadd.bf16 %v5697_v48, %v2826_v20  ;;  %v2736_v21 = vpop.f32.mrb[124].mxu0 }
 0x566   : > { %v2737_v46 = vadd.f32 %v2736_v21, %v5412_v25  ;;  %v2738_v57 = vpop.f32.mrb[125].mxu0  ;;  %v2902_v51 = vmax.bf16 %v5072_v33, %v2882_v0 }
 0x567   : > { %v2739_v22 = vadd.f32 %v2738_v57, %v5414_v49  ;;  %v2740_v53 = vpop.f32.mrb[126].mxu0  ;;  %v2903_v37 = vmax.bf16 %v5072_v33, %v2883_v23 }
 0x568   : > { %v2741_v62 = vadd.f32 %v2740_v53, %v5416_v24  ;;  %v2742_v36 = vpop.f32.mrb[127].mxu0 }
 0x569   : > { %v2743_v39 = vadd.f32 %v2742_v36, %v5418_v29  ;;  %3147 = vmatprep.mubr.bf16.mxu1 %v2903_v37 }
 0x56a   : > { %v2827_v1 = vpack.c.bf16 %v2741_v62, %v2737_v46  ;;  %3148 = vmatmul.mubr.bf16.vlgmr.msra.gmra.mrb[120].mxu1 %v2902_v51 }
 0x56b   : > { %v2828_v3 = vpack.c.bf16 %v2743_v39, %v2739_v22 }
 0x56c   : > { %v2884_v25 = vadd.bf16 %v5693_v10, %v2827_v1 }
 0x56d   : > { %v2885_v4 = vadd.bf16 %v5697_v48, %v2828_v3  ;;  %v2746_v49 = vpop.f32.mrb[128].mxu0 }
 0x56e   : > { %v2747_v7 = vadd.f32 %v2746_v49, %v5420_v32  ;;  %v2748_v45 = vpop.f32.mrb[129].mxu0  ;;  %v2904_v38 = vmax.bf16 %v5072_v33, %v2884_v25 }
 0x56f   : > { %v2749_v47 = vadd.f32 %v2748_v45, %v5422_v27  ;;  %v2750_v16 = vpop.f32.mrb[130].mxu0  ;;  %v2905_v24 = vmax.bf16 %v5072_v33, %v2885_v4 }
 0x570   : > { %v2751_v29 = vadd.f32 %v2750_v16, %v5424_v40  ;;  %v2752_v13 = vpop.f32.mrb[131].mxu0 }
 0x571   : > { %v2753_v19 = vadd.f32 %v2752_v13, %v5426_v30  ;;  %3157 = vmatprep.mubr.bf16.mxu1 %v2905_v24 }
 0x572   : > { %v2829_v35 = vpack.c.bf16 %v2751_v29, %v2747_v7  ;;  %3158 = vmatmul.mubr.bf16.gmra.mrb[124].mxu1 %v2904_v38 }
 0x573   : > { %v2830_v20 = vpack.c.bf16 %v2753_v19, %v2749_v47 }
 0x574   : > { %v2886_v0 = vadd.bf16 %v5693_v10, %v2829_v35 }
 0x575   : > { %v2887_v32 = vadd.bf16 %v5697_v48, %v2830_v20  ;;  %v2756_v23 = vpop.f32.mrb[132].mxu0 }
 0x576   : > { %v2757_v27 = vadd.f32 %v2756_v23, %v5428_v44  ;;  %v2758_v21 = vpop.f32.mrb[133].mxu0  ;;  %v2906_v22 = vmax.bf16 %v5072_v33, %v2886_v0 }
 0x577   : > { %v2759_v26 = vadd.f32 %v2758_v21, %v5430_v50  ;;  %v2760_v40 = vpop.f32.mrb[134].mxu0  ;;  %v2907_v46 = vmax.bf16 %v5072_v33, %v2887_v32 }
 0x578   : > { %v2761_v57 = vadd.f32 %v2760_v40, %v5432_v52  ;;  %v2762_v30 = vpop.f32.mrb[135].mxu0 }
 0x579   : > { %v2763_v53 = vadd.f32 %v2762_v30, %v5434_v54  ;;  %3167 = vmatprep.mubr.bf16.mxu1 %v2907_v46 }
 0x57a   : > { %v2831_v37 = vpack.c.bf16 %v2761_v57, %v2757_v27  ;;  %3168 = vmatmul.mubr.bf16.gmra.mrb[128].mxu1 %v2906_v22 }
 0x57b   : > { %v2832_v51 = vpack.c.bf16 %v2763_v53, %v2759_v26 }
 0x57c   : > { %v2888_v62 = vadd.bf16 %v5693_v10, %v2831_v37 }
 0x57d   : > { %v2889_v44 = vadd.bf16 %v5697_v48, %v2832_v51  ;;  %v2766_v36 = vpop.f32.mrb[136].mxu0 }
 0x57e   : > { %v2767_v50 = vadd.f32 %v2766_v36, %v5436_v56  ;;  %v2768_v39 = vpop.f32.mrb[137].mxu0  ;;  %v2908_v4 = vmax.bf16 %v5072_v33, %v2888_v62 }
 0x57f   : > { %v2769_v1 = vadd.f32 %v2768_v39, %v5438_v58  ;;  %v2770_v52 = vpop.f32.mrb[138].mxu0  ;;  %v2909_v3 = vmax.bf16 %v5072_v33, %v2889_v44 }
 0x580   : > { %v2771_v25 = vadd.f32 %v2770_v52, %v5440_v59  ;;  %v2772_v54 = vpop.f32.mrb[139].mxu0 }
 0x581   : > { %v2773_v49 = vadd.f32 %v2772_v54, %v5442_v61  ;;  %3177 = vmatprep.mubr.bf16.mxu1 %v2909_v3 }
 0x582   : > { %v2833_v7 = vpack.c.bf16 %v2771_v25, %v2767_v50  ;;  %3178 = vmatmul.mubr.bf16.gmra.mrb[132].mxu1 %v2908_v4 }
 0x583   : > { %v2834_v45 = vpack.c.bf16 %v2773_v49, %v2769_v1 }
 0x584   : > { %v2890_v47 = vadd.bf16 %v5693_v10, %v2833_v7 }
 0x585   : > { %v2891_v56 = vadd.bf16 %v5697_v48, %v2834_v45  ;;  %v2776_v16 = vpop.f32.mrb[140].mxu0 }
 0x586   : > { %v2777_v58 = vadd.f32 %v2776_v16, %v5447_v63  ;;  %v2778_v24 = vpop.f32.mrb[141].mxu0  ;;  %v2910_v19 = vmax.bf16 %v5072_v33, %v2890_v47 }
 0x587   : > { %v2779_v29 = vadd.f32 %v2778_v24, %v5449_v2  ;;  %v2780_v59 = vpop.f32.mrb[142].mxu0  ;;  %v2911_v13 = vmax.bf16 %v5072_v33, %v2891_v56 }
 0x588   : > { %v2781_v38 = vadd.f32 %v2780_v59, %v5451_v42  ;;  %v2782_v61 = vpop.f32.mrb[143].mxu0 }
 0x589   : > { %v2783_v35 = vadd.f32 %v2782_v61, %v5453_v6  ;;  %3187 = vmatprep.mubr.bf16.mxu1 %v2911_v13 }
 0x58a   : > { %v2835_v20 = vpack.c.bf16 %v2781_v38, %v2777_v58  ;;  %3188 = vmatmul.mubr.bf16.gmra.mrb[136].mxu1 %v2910_v19 }
 0x58b   : > { %v2836_v0 = vpack.c.bf16 %v2783_v35, %v2779_v29 }
 0x58c   : > { %v2892_v32 = vadd.bf16 %v5693_v10, %v2835_v20 }
 0x58d   : > { %v2893_v63 = vadd.bf16 %v5697_v48, %v2836_v0  ;;  %v2786_v23 = vpop.f32.mrb[144].mxu0 }
 0x58e   : > { %v2787_v2 = vadd.f32 %v2786_v23, %v5457_v9  ;;  %v2788_v27 = vpop.f32.mrb[145].mxu0  ;;  %v2912_v46 = vmax.bf16 %v5072_v33, %v2892_v32  ;;  %v5007_v32 = vld [vmem:[#allocation2 + $0x6e4] ss:$8 sps:$4 sm:$0xff]   ;;  %v5008_v23 = vld [vmem:[#allocation2 + $0x6f0] ss:$8 sps:$4 sm:$0xff]  }
 0x58f   : > { %v2789_v21 = vadd.f32 %v2788_v27, %v5459_v11  ;;  %v2790_v42 = vpop.f32.mrb[146].mxu0  ;;  %v2913_v26 = vmax.bf16 %v5072_v33, %v2893_v63  ;;  %3566 = vmatprep.subr.bf16.mxu0 %v5007_v32  ;;  %v5010_v63 = vld [vmem:[#allocation2 + $0x6f4] ss:$8 sps:$4 sm:$0xff]   ;;  %v5014_v27 = vld [vmem:[%s5970_s4 + $0x8] sm:$0xff]  }
 0x590   : > { %v2791_v40 = vadd.f32 %v2790_v42, %v5461_v14  ;;  %v2792_v6 = vpop.f32.mrb[147].mxu0  ;;  %v5016_v42 = vld [vmem:[%s5970_s4 + $0x10] sm:$0xff]  }
 0x591   : > { %v2793_v57 = vadd.f32 %v2792_v6, %v5463_v17  ;;  %3197 = vmatprep.mubr.bf16.mxu1 %v2913_v26  ;;  %v5017_v26 = vld [vmem:[%s5970_s4 + $0x58] sm:$0xff]   ;;  %v5019_v6 = vld [vmem:[%s5970_s4 + $0x60] sm:$0xff]  }
 0x592   : > { %v2837_v30 = vpack.c.bf16 %v2791_v40, %v2787_v2  ;;  %3198 = vmatmul.mubr.bf16.gmra.mrb[140].mxu1 %v2912_v46  ;;  %v5013_v2 = vld [vmem:[%s5970_s4 + $0x48] sm:$0xff]   ;;  %v5018_v40 = vld [vmem:[%s5970_s4 + $0x18] sm:$0xff]   ;;  %v5020_v46 = vld [vmem:[%s5970_s4 + $0x20] sm:$0xff]  }
 0x593   : > { %v2838_v22 = vpack.c.bf16 %v2793_v57, %v2789_v21  ;;  %v5015_v21 = vld [vmem:[%s5970_s4 + $0x50] sm:$0xff]   ;;  %v5021_v57 = vld [vmem:[%s5970_s4 + $0x68] sm:$0xff]  }
 0x594   : > { %v2894_v53 = vadd.bf16 %v5693_v10, %v2837_v30  ;;  %v5022_v30 = vld [vmem:[%s5970_s4 + $0x28] sm:$0xff]  }
 0x595   : > { %v2895_v9 = vadd.bf16 %v5697_v48, %v2838_v22  ;;  %v2796_v37 = vpop.f32.mrb[148].mxu0  ;;  %v5023_v22 = vld [vmem:[%s5970_s4 + $0x70] sm:$0xff]  }
 0x596   : > { %v2797_v11 = vadd.f32 %v2796_v37, %v5471_v34  ;;  %v2798_v51 = vpop.f32.mrb[149].mxu0  ;;  %v2914_v50 = vmax.bf16 %v5072_v33, %v2894_v53  ;;  %v5024_v53 = vld [vmem:[%s5970_s4 + $0x30] sm:$0xff]  }
 0x597   : > { %v2799_v62 = vadd.f32 %v2798_v51, %v5473_v43  ;;  %v2800_v14 = vpop.f32.mrb[150].mxu0  ;;  %v2915_v44 = vmax.bf16 %v5072_v33, %v2895_v9  ;;  %v4430_v9 = vld.sshfl [vmem:[%s5969_s3 + $0xc] sm:$0x11 pattern:$0x75316420] }
 0x598   : > { %v2801_v36 = vadd.f32 %v2800_v14, %v5477_v55  ;;  %v2802_v17 = vpop.f32.mrb[151].mxu0  ;;  %v3276_v37 = vcombine.high %v4430_v9, %v4430_v9 }
 0x599   : > { %v2803_v39 = vadd.f32 %v2802_v17, %v5480_v60  ;;  %3207 = vmatprep.mubr.bf16.mxu1 %v2915_v44 }
 0x59a   : > { %v2839_v1 = vpack.c.bf16 %v2801_v36, %v2797_v11  ;;  %3208 = vmatmul.mubr.bf16.gmra.mrb[144].mxu1 %v2914_v50  ;;  %v3283_v11 = vrot.slane %v4430_v9, %v5320_v18  ;;  %v3290_v51 = vrot.slane %v3276_v37, %v5320_v18 }
 0x59b   : > { %v2840_v52 = vpack.c.bf16 %v2803_v39, %v2799_v62 }
 0x59c   : > { %v2896_v3 = vadd.bf16 %v5693_v10, %v2839_v1  ;;  %v3292_v62 = vpack.i.b16 %v3283_v11, %v3283_v11  ;;  %v3299_v14 = vpack.i.b16 %v3290_v51, %v3290_v51 }
 0x59d   : > { %v2897_v34 = vadd.bf16 %v5697_v48, %v2840_v52  ;;  %v2806_v25 = vpop.f32.mrb[152].mxu0 }
 0x59e   : > { %v2807_v43 = vadd.f32 %v2806_v25, %v5483_v5  ;;  %v2808_v54 = vpop.f32.mrb[153].mxu0  ;;  %v2916_v45 = vmax.bf16 %v5072_v33, %v2896_v3  ;;  %v5821_v17 = vrot.slane %v3292_v62, %v5330_v28  ;;  %v5824_v39 = vrot.slane %v3299_v14, %v5330_v28 }
 0x59f   : > { %v2809_v4 = vadd.f32 %v2808_v54, %v5485_v8  ;;  %v2810_v55 = vpop.f32.mrb[154].mxu0  ;;  %v2917_v49 = vmax.bf16 %v5072_v33, %v2897_v34 }
 0x5a0   : > { %v2811_v7 = vadd.f32 %v2810_v55, %v5489_v12  ;;  %v2812_v60 = vpop.f32.mrb[155].mxu0 }
 0x5a1   : > { %v2813_v47 = vadd.f32 %v2812_v60, %v5492_v15  ;;  %3217 = vmatprep.mubr.bf16.mxu1 %v2917_v49 }
 0x5a2   : > { %v2841_v56 = vpack.c.bf16 %v2811_v7, %v2807_v43  ;;  %3218 = vmatmul.mubr.bf16.gmra.mrb[148].mxu1 %v2916_v45 }
 0x5a3   : > { %v2842_v16 = vpack.c.bf16 %v2813_v47, %v2809_v4 }
 0x5a4   : > { %v2898_v58 = vadd.bf16 %v5693_v10, %v2841_v56 }
 0x5a5   : > { %v2899_v5 = vadd.bf16 %v5697_v48, %v2842_v16  ;;  %v2816_v24 = vpop.f32.mrb[156].mxu0 }
 0x5a6   : > { %v2817_v8 = vadd.f32 %v2816_v24, %v5495_v31  ;;  %v2818_v29 = vpop.f32.mrb[157].mxu0  ;;  %v2918_v15 = vmax.bf16 %v5072_v33, %v2898_v58 }
 0x5a7   : > { %v2819_v59 = vadd.f32 %v2818_v29, %v5497_v41  ;;  %v2820_v12 = vpop.f32.mrb[158].mxu0  ;;  %v2919_v13 = vmax.bf16 %v5072_v33, %v2899_v5  ;;  %v5005_v41 = vld [vmem:[#allocation2 + $0x6e0] ss:$8 sps:$4 sm:$0xff]  }
 0x5a8   : > { %v2843_v38 = vpack.c.bf16 %v2817_v8, %v2817_v8  ;;  %v2821_v61 = vpop.f32.mrb[159].mxu0  ;;  %3567 = vmatpush1.bf16.msra.mxu0 %v5005_v41 }
 0x5a9   : > { %v2844_v19 = vpack.c.bf16 %v2819_v59, %v2819_v59  ;;  %3227 = vmatprep.mubr.bf16.mxu1 %v2919_v13  ;;  %3568 = vmatprep.subr.bf16.mxu0 %v5010_v63 }
 0x5aa   : > { %3228 = vmatmul.mubr.bf16.gmra.mrb[152].mxu1 %v2918_v15  ;;  %v2900_v20 = vadd.bf16 %v5693_v10, %v2843_v38  ;;  %v5012_v10 = vld [vmem:[%s5970_s4] sm:$0xff]  }
 0x5ab   : > { %v2901_v35 = vadd.bf16 %v5697_v48, %v2844_v19  ;;  %v5011_v48 = vld [vmem:[%s5970_s4 + $0x40] sm:$0xff]  }
 0x5ac   : > { %v2920_v31 = vmax.bf16 %v5072_v33, %v2900_v20  ;;  %3569 = vmatpush1.bf16.msra.mxu0 %v5008_v23  ;;  %4575 = vmatprep.subr.bf16.mxu1 %v5011_v48 }
 0x5ad   : > { %v2921_v0 = vmax.bf16 %v5072_v33, %v2901_v35  ;;  %4576 = vmatpush3.bf16.msra.mxu1 %v5012_v10 }
 0x5ae   : > { %4577 = vmatprep.subr.bf16.mxu1 %v5013_v2 }
 0x5af   : > { %3237 = vmatprep.mubr.bf16.mxu1 %v2921_v0 }
 0x5b1   : > { %4578 = vmatpush3.bf16.msra.mxu1 %v5014_v27 }
 0x5b2   : > { %3238 = vmatmul.mubr.bf16.gmra.mrb[156].mxu1 %v2920_v31  ;;  %4579 = vmatprep.subr.bf16.mxu1 %v5015_v21 }
 0x5b5   : > { %4580 = vmatpush3.bf16.msra.mxu1 %v5016_v42 }
 0x5b6   : > { %4581 = vmatprep.subr.bf16.mxu1 %v5017_v26 }
 0x5b9   : > { %4582 = vmatpush3.bf16.msra.mxu1 %v5018_v40 }
 0x5ba   : > { %4583 = vmatprep.subr.bf16.mxu1 %v5019_v6 }
 0x5bd   : > { %4584 = vmatpush3.bf16.msra.mxu1 %v5020_v46 }
 0x5be   : > { %4585 = vmatprep.subr.bf16.mxu1 %v5021_v57 }
 0x5c1   : > { %4586 = vmatpush3.bf16.msra.mxu1 %v5022_v30 }
 0x5c2   : > { %4587 = vmatprep.subr.bf16.mxu1 %v5023_v22 }
 0x5c5   : > { %4588 = vmatpush3.bf16.msra.mxu1 %v5024_v53 }
 0x63d   : > { %v3149_v44 = vpop.f32.mrb[120].mxu1 }
 0x63e   : > { %v3151_v36 = vpop.f32.mrb[121].mxu1 }
 0x63f   : > { %v3153_v50 = vpop.f32.mrb[122].mxu1 }
 0x640   : > { %v3248_v1 = vpack.c.bf16 %v3153_v50, %v3149_v44  ;;  %v3155_v52 = vpop.f32.mrb[123].mxu1 }
 0x641   : > { %v3249_v3 = vpack.c.bf16 %v3155_v52, %v3151_v36 }
 0x642   : > { %v3305_v34 = vadd.bf16 %v5821_v17, %v3248_v1 }
 0x643   : > { %v3306_v25 = vadd.bf16 %v5824_v39, %v3249_v3 }
 0x644   : > { %v3325_v4 = vmax.bf16 %v5072_v33, %v3305_v34 }
 0x645   : > { %v3159_v43 = vpop.f32.mrb[124].mxu1  ;;  %v3326_v54 = vmax.bf16 %v5072_v33, %v3306_v25 }
 0x646   : > { %v3161_v55 = vpop.f32.mrb[125].mxu1 }
 0x647   : > { %v3163_v49 = vpop.f32.mrb[126].mxu1  ;;  %3570 = vmatprep.mubr.bf16.mxu0 %v3326_v54 }
 0x648   : > { %v3250_v7 = vpack.c.bf16 %v3163_v49, %v3159_v43  ;;  %v3165_v60 = vpop.f32.mrb[127].mxu1  ;;  %3571 = vmatmul.mubr.bf16.vlgmr.msra.gmra.mrb[160].mxu0 %v3325_v4 }
 0x649   : > { %v3251_v45 = vpack.c.bf16 %v3165_v60, %v3161_v55 }
 0x64a   : > { %v3307_v47 = vadd.bf16 %v5821_v17, %v3250_v7 }
 0x64b   : > { %v3308_v56 = vadd.bf16 %v5824_v39, %v3251_v45 }
 0x64c   : > { %v3327_v24 = vmax.bf16 %v5072_v33, %v3307_v47 }
 0x64d   : > { %v3169_v16 = vpop.f32.mrb[128].mxu1  ;;  %v3328_v58 = vmax.bf16 %v5072_v33, %v3308_v56 }
 0x64e   : > { %v3171_v5 = vpop.f32.mrb[129].mxu1 }
 0x64f   : > { %v3173_v8 = vpop.f32.mrb[130].mxu1  ;;  %3580 = vmatprep.mubr.bf16.mxu0 %v3328_v58 }
 0x650   : > { %v3252_v29 = vpack.c.bf16 %v3173_v8, %v3169_v16  ;;  %v3175_v59 = vpop.f32.mrb[131].mxu1  ;;  %3581 = vmatmul.mubr.bf16.gmra.mrb[164].mxu0 %v3327_v24 }
 0x651   : > { %v3253_v12 = vpack.c.bf16 %v3175_v59, %v3171_v5 }
 0x652   : > { %v3309_v13 = vadd.bf16 %v5821_v17, %v3252_v29 }
 0x653   : > { %v3310_v38 = vadd.bf16 %v5824_v39, %v3253_v12 }
 0x654   : > { %v3329_v35 = vmax.bf16 %v5072_v33, %v3309_v13 }
 0x655   : > { %v3179_v61 = vpop.f32.mrb[132].mxu1  ;;  %v3330_v15 = vmax.bf16 %v5072_v33, %v3310_v38 }
 0x656   : > { %v3181_v19 = vpop.f32.mrb[133].mxu1 }
 0x657   : > { %v3183_v20 = vpop.f32.mrb[134].mxu1  ;;  %3590 = vmatprep.mubr.bf16.mxu0 %v3330_v15 }
 0x658   : > { %v3254_v0 = vpack.c.bf16 %v3183_v20, %v3179_v61  ;;  %v3185_v31 = vpop.f32.mrb[135].mxu1  ;;  %3591 = vmatmul.mubr.bf16.gmra.mrb[168].mxu0 %v3329_v35 }
 0x659   : > { %v3255_v41 = vpack.c.bf16 %v3185_v31, %v3181_v19 }
 0x65a   : > { %v3311_v32 = vadd.bf16 %v5821_v17, %v3254_v0 }
 0x65b   : > { %v3312_v63 = vadd.bf16 %v5824_v39, %v3255_v41 }
 0x65c   : > { %v3331_v2 = vmax.bf16 %v5072_v33, %v3311_v32 }
 0x65d   : > { %v3189_v23 = vpop.f32.mrb[136].mxu1  ;;  %v3332_v48 = vmax.bf16 %v5072_v33, %v3312_v63 }
 0x65e   : > { %v3191_v10 = vpop.f32.mrb[137].mxu1 }
 0x65f   : > { %v3193_v27 = vpop.f32.mrb[138].mxu1  ;;  %3600 = vmatprep.mubr.bf16.mxu0 %v3332_v48 }
 0x660   : > { %v3256_v21 = vpack.c.bf16 %v3193_v27, %v3189_v23  ;;  %v3195_v42 = vpop.f32.mrb[139].mxu1  ;;  %3601 = vmatmul.mubr.bf16.gmra.mrb[172].mxu0 %v3331_v2  ;;  %v5025_v2 = vld [vmem:[%s5970_s4 + $0x78] sm:$0xff]  }
 0x661   : > { %v3257_v26 = vpack.c.bf16 %v3195_v42, %v3191_v10  ;;  %v5026_v27 = vld [vmem:[%s5970_s4 + $0x38] sm:$0xff]   ;;  %4589 = vmatprep.subr.bf16.mxu1 %v5025_v2 }
 0x662   : > { %v3313_v40 = vadd.bf16 %v5821_v17, %v3256_v21  ;;  %4590 = vmatpush3.bf16.msra.mxu1 %v5026_v27 }
 0x663   : > { %v3314_v6 = vadd.bf16 %v5824_v39, %v3257_v26 }
 0x664   : > { %v3333_v22 = vmax.bf16 %v5072_v33, %v3313_v40 }
 0x665   : > { %v3199_v46 = vpop.f32.mrb[140].mxu1  ;;  %v3334_v57 = vmax.bf16 %v5072_v33, %v3314_v6 }
 0x666   : > { %v3201_v30 = vpop.f32.mrb[141].mxu1 }
 0x667   : > { %v3203_v53 = vpop.f32.mrb[142].mxu1  ;;  %3610 = vmatprep.mubr.bf16.mxu0 %v3334_v57 }
 0x668   : > { %v3258_v9 = vpack.c.bf16 %v3203_v53, %v3199_v46  ;;  %v3205_v37 = vpop.f32.mrb[143].mxu1  ;;  %3611 = vmatmul.mubr.bf16.gmra.mrb[176].mxu0 %v3333_v22 }
 0x669   : > { %v3259_v11 = vpack.c.bf16 %v3205_v37, %v3201_v30 }
 0x66a   : > { %v3315_v51 = vadd.bf16 %v5821_v17, %v3258_v9 }
 0x66b   : > { %v3316_v62 = vadd.bf16 %v5824_v39, %v3259_v11 }
 0x66c   : > { %v3335_v50 = vmax.bf16 %v5072_v33, %v3315_v51 }
 0x66d   : > { %v3209_v14 = vpop.f32.mrb[144].mxu1  ;;  %v3336_v44 = vmax.bf16 %v5072_v33, %v3316_v62 }
 0x66e   : > { %v3211_v36 = vpop.f32.mrb[145].mxu1 }
 0x66f   : > { %v3213_v1 = vpop.f32.mrb[146].mxu1  ;;  %3620 = vmatprep.mubr.bf16.mxu0 %v3336_v44 }
 0x670   : > { %v3260_v52 = vpack.c.bf16 %v3213_v1, %v3209_v14  ;;  %v3215_v3 = vpop.f32.mrb[147].mxu1  ;;  %3621 = vmatmul.mubr.bf16.gmra.mrb[180].mxu0 %v3335_v50 }
 0x671   : > { %v3261_v34 = vpack.c.bf16 %v3215_v3, %v3211_v36 }
 0x672   : > { %v3317_v25 = vadd.bf16 %v5821_v17, %v3260_v52 }
 0x673   : > { %v3318_v43 = vadd.bf16 %v5824_v39, %v3261_v34 }
 0x674   : > { %v3337_v49 = vmax.bf16 %v5072_v33, %v3317_v25 }
 0x675   : > { %v3219_v54 = vpop.f32.mrb[148].mxu1  ;;  %v3338_v4 = vmax.bf16 %v5072_v33, %v3318_v43 }
 0x676   : > { %v3221_v55 = vpop.f32.mrb[149].mxu1 }
 0x677   : > { %v3223_v7 = vpop.f32.mrb[150].mxu1  ;;  %3630 = vmatprep.mubr.bf16.mxu0 %v3338_v4 }
 0x678   : > { %v3262_v60 = vpack.c.bf16 %v3223_v7, %v3219_v54  ;;  %v3225_v45 = vpop.f32.mrb[151].mxu1  ;;  %3631 = vmatmul.mubr.bf16.gmra.mrb[184].mxu0 %v3337_v49 }
 0x679   : > { %v3263_v47 = vpack.c.bf16 %v3225_v45, %v3221_v55 }
 0x67a   : > { %v3319_v56 = vadd.bf16 %v5821_v17, %v3262_v60 }
 0x67b   : > { %v3320_v16 = vadd.bf16 %v5824_v39, %v3263_v47 }
 0x67c   : > { %v3339_v8 = vmax.bf16 %v5072_v33, %v3319_v56 }
 0x67d   : > { %v3229_v58 = vpop.f32.mrb[152].mxu1  ;;  %v3340_v5 = vmax.bf16 %v5072_v33, %v3320_v16 }
 0x67e   : > { %v3231_v24 = vpop.f32.mrb[153].mxu1 }
 0x67f   : > { %v3233_v29 = vpop.f32.mrb[154].mxu1  ;;  %3640 = vmatprep.mubr.bf16.mxu0 %v3340_v5 }
 0x680   : > { %v3264_v59 = vpack.c.bf16 %v3233_v29, %v3229_v58  ;;  %v3235_v12 = vpop.f32.mrb[155].mxu1  ;;  %3641 = vmatmul.mubr.bf16.gmra.mrb[188].mxu0 %v3339_v8 }
 0x681   : > { %v3265_v13 = vpack.c.bf16 %v3235_v12, %v3231_v24 }
 0x682   : > { %v3321_v38 = vadd.bf16 %v5821_v17, %v3264_v59 }
 0x683   : > { %v3322_v61 = vadd.bf16 %v5824_v39, %v3265_v13 }
 0x684   : > { %v3341_v0 = vmax.bf16 %v5072_v33, %v3321_v38 }
 0x685   : > { %v3239_v15 = vpop.f32.mrb[156].mxu1  ;;  %v3342_v19 = vmax.bf16 %v5072_v33, %v3322_v61 }
 0x686   : > { %v3266_v35 = vpack.c.bf16 %v3239_v15, %v3239_v15  ;;  %v3241_v20 = vpop.f32.mrb[157].mxu1 }
 0x687   : > { %v3267_v31 = vpack.c.bf16 %v3241_v20, %v3241_v20  ;;  %v3243_v41 = vpop.f32.mrb[158].mxu1  ;;  %3650 = vmatprep.mubr.bf16.mxu0 %v3342_v19 }
 0x688   : > { %v3244_v32 = vpop.f32.mrb[159].mxu1  ;;  %3651 = vmatmul.mubr.bf16.gmra.mrb[192].mxu0 %v3341_v0  ;;  %v3323_v23 = vadd.bf16 %v5821_v17, %v3266_v35  ;;  %v4464_v17 = vld.sshfl [vmem:[%s5969_s3 + $0xe] sm:$0x11 pattern:$0x75316420] }
 0x689   : > { %v3324_v63 = vadd.bf16 %v5824_v39, %v3267_v31  ;;  %v3699_v39 = vcombine.high %v4464_v17, %v4464_v17  ;;  %v3706_v21 = vrot.slane %v4464_v17, %v5320_v18 }
 0x68a   : > { %v3343_v10 = vmax.bf16 %v5072_v33, %v3323_v23 }
 0x68b   : > { %v3344_v48 = vmax.bf16 %v5072_v33, %v3324_v63  ;;  %v3713_v42 = vrot.slane %v3699_v39, %v5320_v18  ;;  %v3715_v26 = vpack.i.b16 %v3706_v21, %v3706_v21 }
 0x68d   : > { %3660 = vmatprep.mubr.bf16.mxu0 %v3344_v48  ;;  %v3722_v40 = vpack.i.b16 %v3713_v42, %v3713_v42  ;;  %v5878_v57 = vrot.slane %v3715_v26, %v5330_v28 }
 0x68f   : > { %v5881_v22 = vrot.slane %v3722_v40, %v5330_v28 }
 0x690   : > { %3661 = vmatmul.mubr.bf16.gmra.mrb[196].mxu0 %v3343_v10 }
 0x71b   : > { %v3572_v6 = vpop.f32.mrb[160].mxu0 }
 0x71c   : > { %v3574_v46 = vpop.f32.mrb[161].mxu0 }
 0x71d   : > { %v3576_v30 = vpop.f32.mrb[162].mxu0 }
 0x71e   : > { %v3671_v53 = vpack.c.bf16 %v3576_v30, %v3572_v6  ;;  %v3578_v9 = vpop.f32.mrb[163].mxu0 }
 0x71f   : > { %v3672_v37 = vpack.c.bf16 %v3578_v9, %v3574_v46 }
 0x720   : > { %v3728_v11 = vadd.bf16 %v5878_v57, %v3671_v53 }
 0x721   : > { %v3729_v51 = vadd.bf16 %v5881_v22, %v3672_v37 }
 0x722   : > { %v3748_v14 = vmax.bf16 %v5072_v33, %v3728_v11 }
 0x723   : > { %v3582_v62 = vpop.f32.mrb[164].mxu0  ;;  %v3749_v18 = vmax.bf16 %v5072_v33, %v3729_v51 }
 0x724   : > { %v3584_v44 = vpop.f32.mrb[165].mxu0 }
 0x725   : > { %v3586_v36 = vpop.f32.mrb[166].mxu0  ;;  %3935 = vmatprep.mubr.bf16.mxu1 %v3749_v18 }
 0x726   : > { %v3673_v50 = vpack.c.bf16 %v3586_v36, %v3582_v62  ;;  %v3588_v1 = vpop.f32.mrb[167].mxu0  ;;  %3936 = vmatmul.mubr.bf16.vlgmr.msra.gmra.mrb[160].mxu1 %v3748_v14 }
 0x727   : > { %v3674_v28 = vpack.c.bf16 %v3588_v1, %v3584_v44 }
 0x728   : > { %v3730_v52 = vadd.bf16 %v5878_v57, %v3673_v50 }
 0x729   : > { %v3731_v3 = vadd.bf16 %v5881_v22, %v3674_v28 }
 0x72a   : > { %v3750_v54 = vmax.bf16 %v5072_v33, %v3730_v52 }
 0x72b   : > { %v3592_v34 = vpop.f32.mrb[168].mxu0  ;;  %v3751_v25 = vmax.bf16 %v5072_v33, %v3731_v3 }
 0x72c   : > { %v3594_v43 = vpop.f32.mrb[169].mxu0 }
 0x72d   : > { %v3596_v4 = vpop.f32.mrb[170].mxu0  ;;  %3943 = vmatprep.mubr.bf16.mxu1 %v3751_v25 }
 0x72e   : > { %v3675_v55 = vpack.c.bf16 %v3596_v4, %v3592_v34  ;;  %v3598_v49 = vpop.f32.mrb[171].mxu0  ;;  %3944 = vmatmul.mubr.bf16.gmra.mrb[164].mxu1 %v3750_v54 }
 0x72f   : > { %v3676_v7 = vpack.c.bf16 %v3598_v49, %v3594_v43 }
 0x730   : > { %v3732_v60 = vadd.bf16 %v5878_v57, %v3675_v55 }
 0x731   : > { %v3733_v45 = vadd.bf16 %v5881_v22, %v3676_v7 }
 0x732   : > { %v3752_v58 = vmax.bf16 %v5072_v33, %v3732_v60 }
 0x733   : > { %v3602_v47 = vpop.f32.mrb[172].mxu0  ;;  %v3753_v56 = vmax.bf16 %v5072_v33, %v3733_v45 }
 0x734   : > { %v3604_v16 = vpop.f32.mrb[173].mxu0 }
 0x735   : > { %v3606_v5 = vpop.f32.mrb[174].mxu0  ;;  %3951 = vmatprep.mubr.bf16.mxu1 %v3753_v56 }
 0x736   : > { %v3677_v24 = vpack.c.bf16 %v3606_v5, %v3602_v47  ;;  %v3608_v8 = vpop.f32.mrb[175].mxu0  ;;  %3952 = vmatmul.mubr.bf16.gmra.mrb[168].mxu1 %v3752_v58 }
 0x737   : > { %v3678_v29 = vpack.c.bf16 %v3608_v8, %v3604_v16 }
 0x738   : > { %v3734_v59 = vadd.bf16 %v5878_v57, %v3677_v24 }
 0x739   : > { %v3735_v12 = vadd.bf16 %v5881_v22, %v3678_v29 }
 0x73a   : > { %v3754_v15 = vmax.bf16 %v5072_v33, %v3734_v59 }
 0x73b   : > { %v3612_v13 = vpop.f32.mrb[176].mxu0  ;;  %v3755_v38 = vmax.bf16 %v5072_v33, %v3735_v12 }
 0x73c   : > { %v3614_v61 = vpop.f32.mrb[177].mxu0 }
 0x73d   : > { %v3616_v19 = vpop.f32.mrb[178].mxu0  ;;  %3959 = vmatprep.mubr.bf16.mxu1 %v3755_v38 }
 0x73e   : > { %v3679_v35 = vpack.c.bf16 %v3616_v19, %v3612_v13  ;;  %v3618_v20 = vpop.f32.mrb[179].mxu0  ;;  %3960 = vmatmul.mubr.bf16.gmra.mrb[172].mxu1 %v3754_v15 }
 0x73f   : > { %v3680_v0 = vpack.c.bf16 %v3618_v20, %v3614_v61 }
 0x740   : > { %v3736_v31 = vadd.bf16 %v5878_v57, %v3679_v35  ;;  %v5926_v35 = vld [vmem:[%s5971_s5] ss:$0 sm:$0xff] }
 0x741   : > { %v3737_v41 = vadd.bf16 %v5881_v22, %v3680_v0 }
 0x742   : > { %v3756_v48 = vmax.bf16 %v5072_v33, %v3736_v31 }
 0x743   : > { %v3622_v32 = vpop.f32.mrb[180].mxu0  ;;  %v3757_v63 = vmax.bf16 %v5072_v33, %v3737_v41 }
 0x744   : > { %v3624_v23 = vpop.f32.mrb[181].mxu0 }
 0x745   : > { %v3626_v10 = vpop.f32.mrb[182].mxu0  ;;  %3967 = vmatprep.mubr.bf16.mxu1 %v3757_v63 }
 0x746   : > { %v3681_v2 = vpack.c.bf16 %v3626_v10, %v3622_v32  ;;  %v3628_v27 = vpop.f32.mrb[183].mxu0  ;;  %3968 = vmatmul.mubr.bf16.gmra.mrb[176].mxu1 %v3756_v48 }
 0x747   : > { %v3682_v17 = vpack.c.bf16 %v3628_v27, %v3624_v23 }
 0x748   : > { %v3738_v39 = vadd.bf16 %v5878_v57, %v3681_v2 }
 0x749   : > { %v3739_v21 = vadd.bf16 %v5881_v22, %v3682_v17 }
 0x74a   : > { %v3758_v6 = vmax.bf16 %v5072_v33, %v3738_v39 }
 0x74b   : > { %v3632_v42 = vpop.f32.mrb[184].mxu0  ;;  %v3759_v26 = vmax.bf16 %v5072_v33, %v3739_v21 }
 0x74c   : > { %v3634_v40 = vpop.f32.mrb[185].mxu0 }
 0x74d   : > { %v3636_v46 = vpop.f32.mrb[186].mxu0  ;;  %3975 = vmatprep.mubr.bf16.mxu1 %v3759_v26 }
 0x74e   : > { %v3683_v30 = vpack.c.bf16 %v3636_v46, %v3632_v42  ;;  %v3638_v53 = vpop.f32.mrb[187].mxu0  ;;  %3976 = vmatmul.mubr.bf16.gmra.mrb[180].mxu1 %v3758_v6 }
 0x74f   : > { %v3684_v9 = vpack.c.bf16 %v3638_v53, %v3634_v40 }
 0x750   : > { %v3740_v37 = vadd.bf16 %v5878_v57, %v3683_v30 }
 0x751   : > { %v3741_v11 = vadd.bf16 %v5881_v22, %v3684_v9 }
 0x752   : > { %v3760_v14 = vmax.bf16 %v5072_v33, %v3740_v37 }
 0x753   : > { %v3642_v51 = vpop.f32.mrb[188].mxu0  ;;  %v3761_v62 = vmax.bf16 %v5072_v33, %v3741_v11 }
 0x754   : > { %v3644_v18 = vpop.f32.mrb[189].mxu0 }
 0x755   : > { %v3646_v44 = vpop.f32.mrb[190].mxu0  ;;  %3983 = vmatprep.mubr.bf16.mxu1 %v3761_v62 }
 0x756   : > { %v3685_v36 = vpack.c.bf16 %v3646_v44, %v3642_v51  ;;  %v3648_v50 = vpop.f32.mrb[191].mxu0  ;;  %3984 = vmatmul.mubr.bf16.gmra.mrb[184].mxu1 %v3760_v14 }
 0x757   : > { %v3686_v1 = vpack.c.bf16 %v3648_v50, %v3644_v18 }
 0x758   : > { %v3742_v28 = vadd.bf16 %v5878_v57, %v3685_v36 }
 0x759   : > { %v3743_v52 = vadd.bf16 %v5881_v22, %v3686_v1 }
 0x75a   : > { %v3762_v43 = vmax.bf16 %v5072_v33, %v3742_v28 }
 0x75b   : > { %v3652_v3 = vpop.f32.mrb[192].mxu0  ;;  %v3763_v34 = vmax.bf16 %v5072_v33, %v3743_v52 }
 0x75c   : > { %v3654_v25 = vpop.f32.mrb[193].mxu0 }
 0x75d   : > { %v3656_v54 = vpop.f32.mrb[194].mxu0  ;;  %3991 = vmatprep.mubr.bf16.mxu1 %v3763_v34 }
 0x75e   : > { %v3687_v4 = vpack.c.bf16 %v3656_v54, %v3652_v3  ;;  %v3658_v55 = vpop.f32.mrb[195].mxu0  ;;  %3992 = vmatmul.mubr.bf16.gmra.mrb[188].mxu1 %v3762_v43 }
 0x75f   : > { %v3688_v49 = vpack.c.bf16 %v3658_v55, %v3654_v25 }
 0x760   : > { %v3744_v7 = vadd.bf16 %v5878_v57, %v3687_v4 }
 0x761   : > { %v3745_v60 = vadd.bf16 %v5881_v22, %v3688_v49 }
 0x762   : > { %v3764_v58 = vmax.bf16 %v5072_v33, %v3744_v7 }
 0x763   : > { %v3662_v45 = vpop.f32.mrb[196].mxu0  ;;  %v3765_v47 = vmax.bf16 %v5072_v33, %v3745_v60 }
 0x764   : > { %v3689_v56 = vpack.c.bf16 %v3662_v45, %v3662_v45  ;;  %v3664_v16 = vpop.f32.mrb[197].mxu0 }
 0x765   : > { %v3690_v5 = vpack.c.bf16 %v3664_v16, %v3664_v16  ;;  %v3666_v24 = vpop.f32.mrb[198].mxu0  ;;  %3999 = vmatprep.mubr.bf16.mxu1 %v3765_v47 }
 0x766   : > { %v3667_v8 = vpop.f32.mrb[199].mxu0  ;;  %4000 = vmatmul.mubr.bf16.gmra.mrb[192].mxu1 %v3764_v58  ;;  %v3746_v59 = vadd.bf16 %v5878_v57, %v3689_v56 }
 0x767   : > { %v3747_v29 = vadd.bf16 %v5881_v22, %v3690_v5 }
 0x768   : > { %v3766_v13 = vmax.bf16 %v5072_v33, %v3746_v59 }
 0x769   : > { %v3767_v12 = vmax.bf16 %v5072_v33, %v3747_v29 }
 0x76b   : > { %4007 = vmatprep.mubr.bf16.mxu1 %v3767_v12 }
 0x76e   : > { %4008 = vmatmul.mubr.bf16.gmra.mrb[196].mxu1 %v3766_v13 }
 0x7f9   : > { %v4591_v38 = vpop.f32.mrb[160].mxu1 }
 0x7fa   : > { %v4592_v61 = vpop.f32.mrb[161].mxu1 }
 0x7fb   : > { %v4593_v15 = vadd.f32 %v4592_v61, %v4591_v38  ;;  %v4594_v19 = vpop.f32.mrb[162].mxu1 }
 0x7fc   : > { %v4595_v20 = vpop.f32.mrb[163].mxu1 }
 0x7fd   : > { %v4596_v22 = vadd.f32 %v4595_v20, %v4594_v19  ;;  %v3938_v57 = vadd.f32 %v4593_v15, %v5926_v35 }
 0x7ff   : > { %v3941_v0 = vadd.f32 %v4596_v22, %v5926_v35 }
 0x801   : > { %v4525_v33 = vpack.c.bf16 %v3941_v0, %v3938_v57  ;;  %v4597_v31 = vpop.f32.mrb[164].mxu1 }
 0x802   : > { %v4598_v41 = vpop.f32.mrb[165].mxu1 }
 0x803   : > { %4526 = vst [vmem:[%s5934_s15] sm:$0xff] %v4525_v33   ;;  %v4599_v32 = vadd.f32 %v4598_v41, %v4597_v31  ;;  %v4600_v63 = vpop.f32.mrb[166].mxu1 }
 0x804   : > { %v4601_v23 = vpop.f32.mrb[167].mxu1 }
 0x805   : > { %v4602_v48 = vadd.f32 %v4601_v23, %v4600_v63  ;;  %v3946_v10 = vadd.f32 %v4599_v32, %v5926_v35 }
 0x807   : > { %v3949_v2 = vadd.f32 %v4602_v48, %v5926_v35 }
 0x809   : > { %v4530_v27 = vpack.c.bf16 %v3949_v2, %v3946_v10  ;;  %v4603_v17 = vpop.f32.mrb[168].mxu1 }
 0x80a   : > { %v4604_v39 = vpop.f32.mrb[169].mxu1 }
 0x80b   : > { %4567 = vst [vmem:[%s5934_s15 + $0x8] sm:$0xff] %v4530_v27   ;;  %v4605_v21 = vadd.f32 %v4604_v39, %v4603_v17  ;;  %v4606_v42 = vpop.f32.mrb[170].mxu1 }
 0x80c   : > { %v4607_v26 = vpop.f32.mrb[171].mxu1 }
 0x80d   : > { %v4608_v40 = vadd.f32 %v4607_v26, %v4606_v42  ;;  %v3954_v6 = vadd.f32 %v4605_v21, %v5926_v35 }
 0x80f   : > { %v3957_v46 = vadd.f32 %v4608_v40, %v5926_v35 }
 0x811   : > { %v4535_v30 = vpack.c.bf16 %v3957_v46, %v3954_v6  ;;  %v4609_v53 = vpop.f32.mrb[172].mxu1 }
 0x812   : > { %v4610_v9 = vpop.f32.mrb[173].mxu1 }
 0x813   : > { %4568 = vst [vmem:[%s5934_s15 + $0x10] sm:$0xff] %v4535_v30   ;;  %v4611_v37 = vadd.f32 %v4610_v9, %v4609_v53  ;;  %v4612_v11 = vpop.f32.mrb[174].mxu1 }
 0x814   : > { %v4613_v51 = vpop.f32.mrb[175].mxu1 }
 0x815   : > { %v4614_v62 = vadd.f32 %v4613_v51, %v4612_v11  ;;  %v3962_v18 = vadd.f32 %v4611_v37, %v5926_v35 }
 0x817   : > { %v3965_v14 = vadd.f32 %v4614_v62, %v5926_v35 }
 0x819   : > { %v4540_v44 = vpack.c.bf16 %v3965_v14, %v3962_v18  ;;  %v4615_v36 = vpop.f32.mrb[176].mxu1 }
 0x81a   : > { %v4616_v50 = vpop.f32.mrb[177].mxu1 }
 0x81b   : > { %4569 = vst [vmem:[%s5934_s15 + $0x18] sm:$0xff] %v4540_v44   ;;  %v4617_v1 = vadd.f32 %v4616_v50, %v4615_v36  ;;  %v4618_v28 = vpop.f32.mrb[178].mxu1 }
 0x81c   : > { %v4619_v52 = vpop.f32.mrb[179].mxu1 }
 0x81d   : > { %v4620_v3 = vadd.f32 %v4619_v52, %v4618_v28  ;;  %v3970_v34 = vadd.f32 %v4617_v1, %v5926_v35 }
 0x81f   : > { %v3973_v25 = vadd.f32 %v4620_v3, %v5926_v35 }
 0x821   : > { %v4545_v43 = vpack.c.bf16 %v3973_v25, %v3970_v34  ;;  %v4621_v54 = vpop.f32.mrb[180].mxu1 }
 0x822   : > { %v4622_v4 = vpop.f32.mrb[181].mxu1 }
 0x823   : > { %4570 = vst [vmem:[%s5934_s15 + $0x20] sm:$0xff] %v4545_v43   ;;  %v4623_v55 = vadd.f32 %v4622_v4, %v4621_v54  ;;  %v4624_v49 = vpop.f32.mrb[182].mxu1 }
 0x824   : > { %v4625_v7 = vpop.f32.mrb[183].mxu1 }
 0x825   : > { %v4626_v60 = vadd.f32 %v4625_v7, %v4624_v49  ;;  %v3978_v45 = vadd.f32 %v4623_v55, %v5926_v35 }
 0x827   : > { %v3981_v47 = vadd.f32 %v4626_v60, %v5926_v35 }
 0x829   : > { %v4550_v56 = vpack.c.bf16 %v3981_v47, %v3978_v45  ;;  %v4627_v16 = vpop.f32.mrb[184].mxu1 }
 0x82a   : > { %v4628_v58 = vpop.f32.mrb[185].mxu1 }
 0x82b   : > { %4571 = vst [vmem:[%s5934_s15 + $0x28] sm:$0xff] %v4550_v56   ;;  %v4629_v5 = vadd.f32 %v4628_v58, %v4627_v16  ;;  %v4630_v24 = vpop.f32.mrb[186].mxu1 }
 0x82c   : > { %v4631_v8 = vpop.f32.mrb[187].mxu1 }
 0x82d   : > { %v4632_v29 = vadd.f32 %v4631_v8, %v4630_v24  ;;  %v3986_v59 = vadd.f32 %v4629_v5, %v5926_v35 }
 0x82f   : > { %v3989_v12 = vadd.f32 %v4632_v29, %v5926_v35 }
 0x831   : > { %v4555_v13 = vpack.c.bf16 %v3989_v12, %v3986_v59  ;;  %v4633_v38 = vpop.f32.mrb[188].mxu1 }
 0x832   : > { %v4634_v61 = vpop.f32.mrb[189].mxu1 }
 0x833   : > { %4572 = vst [vmem:[%s5934_s15 + $0x30] sm:$0xff] %v4555_v13   ;;  %v4635_v15 = vadd.f32 %v4634_v61, %v4633_v38  ;;  %v4636_v19 = vpop.f32.mrb[190].mxu1 }
 0x834   : > { %v4637_v20 = vpop.f32.mrb[191].mxu1 }
 0x835   : > { %v4638_v22 = vadd.f32 %v4637_v20, %v4636_v19  ;;  %v3994_v57 = vadd.f32 %v4635_v15, %v5926_v35 }
 0x837   : > { %v3997_v0 = vadd.f32 %v4638_v22, %v5926_v35 }
 0x839   : > { %v4560_v33 = vpack.c.bf16 %v3997_v0, %v3994_v57  ;;  %v4639_v31 = vpop.f32.mrb[192].mxu1 }
 0x83a   : > { %v4640_v41 = vpop.f32.mrb[193].mxu1 }
 0x83b   : > { %4573 = vst [vmem:[%s5934_s15 + $0x38] sm:$0xff] %v4560_v33   ;;  %v4641_v32 = vadd.f32 %v4640_v41, %v4639_v31  ;;  %v4642_v63 = vpop.f32.mrb[194].mxu1 }
 0x83c   : > { %v4643_v23 = vpop.f32.mrb[195].mxu1 }
 0x83d   : > { %v4644_v48 = vadd.f32 %v4643_v23, %v4642_v63  ;;  %v4002_v10 = vadd.f32 %v4641_v32, %v5926_v35 }
 0x83f   : > { %v4005_v2 = vadd.f32 %v4644_v48, %v5926_v35 }
 0x841   : > { %v4565_v27 = vpack.c.bf16 %v4005_v2, %v4002_v10  ;;  %v4645_v17 = vpop.f32.mrb[196].mxu1 }
 0x842   : > { %v4646_v39 = vpop.f32.mrb[197].mxu1 }
 0x843   : > { %4574 = vst [vmem:[%s5934_s15 + $0x40] sm:$0xff] %v4565_v27   ;;  %v4647_v21 = vadd.f32 %v4646_v39, %v4645_v17  ;;  %v4648_v42 = vpop.f32.mrb[198].mxu1 }
 0x844   : > { %v4649_v26 = vpop.f32.mrb[199].mxu1 }
 0x845   : > { %v4010_v40 = vadd.f32 %v4647_v21, %v5926_v35 }
 0x847   : > { %v4521_v6 = vpack.c.bf16 %v4010_v40, %v4010_v40 }
 0x849   : > { %4110 = vst [vmem:[%s5934_s15 + $0x48] sm:$0xf] %v4521_v6 }
 0x84a PF: > { %s17_s21 = sadd.s32 1, %s5065_s21  }
 0x84b   : > { %p14_p3 = scmp.ge.s32.totalorder %s17_s21, 4  }
 0x84d   :  { %16 = sbr.rel (!%p14_p3) target bundleno = 1 (0x1), region = 92 }
 0x854   :  { %4133 = vsyncpa [#allocation3], 1 }
 0x855   :  { %4135 = vsyncpa [#allocation3 + $0x1], 1 }

</bundles_post_ra>
